<compile_context>
chip_gen: v7x
topology: tpu7x:2x2x1
jax: 0.10.0
libtpu: 0.0.40
codegen_flags: <defaults>
</compile_context>

<pallas_src>
import functools

import jax
import jax.numpy as jnp
from jax.experimental import pallas as pl
from jax.experimental.pallas import tpu as pltpu


def _round_up(x, m):
    return (x + m - 1) // m * m


# -----------------------------------------------------------------------------
# Pallas kernels
# -----------------------------------------------------------------------------
def _mm_bias_kernel(a_ref, w_ref, b_ref, o_ref, *, relu):
    """Single-K-block matmul: out = (relu)(A @ W + b). bf16 MXU, f32 accumulate."""
    r = jnp.dot(a_ref[...], w_ref[...], preferred_element_type=jnp.float32)
    r = r + b_ref[...]
    if relu:
        r = jnp.maximum(r, 0.0)
    o_ref[...] = r.astype(o_ref.dtype)


def _mm_bias_acc_kernel(a_ref, w_ref, b_ref, o_ref, acc_ref, *, relu):
    """K-tiled matmul with f32 accumulator scratch; K is grid axis 2."""
    @pl.when(pl.program_id(2) == 0)
    def _():
        acc_ref[...] = jnp.zeros_like(acc_ref)

    acc_ref[...] += jnp.dot(a_ref[...], w_ref[...],
                            preferred_element_type=jnp.float32)

    @pl.when(pl.program_id(2) == pl.num_programs(2) - 1)
    def _():
        r = acc_ref[...] + b_ref[...]
        if relu:
            r = jnp.maximum(r, 0.0)
        o_ref[...] = r.astype(o_ref.dtype)


def _pick_m_tile(M):
    """Multiple-of-16 M tile; minimize padding, prefer >=2 blocks (v7x 2-TC)."""
    if M <= 128:
        return _round_up(max(M, 16), 16)
    best = None
    for t in (512, 256, 128):
        mp = _round_up(M, t)
        key = (mp, 0 if mp // t >= 2 else 1, -t)
        if best is None or key < best[0]:
            best = (key, t)
    return best[1]


def pallas_matmul_bias(a, w, bias, relu=False, out_dtype=jnp.bfloat16):
    """a:(M,K) @ w:(K,N) + bias:(N,), fused optional ReLU.

    bf16 MXU operands, f32 accumulation.  Small problems run with full-dim
    blocks (NO padded activation copy, optional 2-way M split so both v7x
    TensorCores get work); large problems fall back to a (tm,tn,tk) grid with
    K innermost ("arbitrary") and M/N "parallel".
    """
    a = a.astype(jnp.bfloat16)
    w = w.astype(jnp.bfloat16)
    M, K = a.shape
    K2, N = w.shape
    assert K == K2, (a.shape, w.shape)
    b2 = bias.reshape(1, N).astype(jnp.float32)

    vmem_est = 2 * M * K + 2 * K * N + 6 * M * N + 4 * N
    if vmem_est <= 8 * 1024 * 1024:
        # ---- small path: full-dim blocks, pad-free, optional 2-way M split ----
        mb = 2 if (M % 16 == 0 and M >= 256) else 1
        tm = M // mb
        return pl.pallas_call(
            functools.partial(_mm_bias_kernel, relu=relu),
            out_shape=jax.ShapeDtypeStruct((M, N), out_dtype),
            grid_spec=pltpu.PrefetchScalarGridSpec(
                num_scalar_prefetch=0,
                grid=(mb,),
                in_specs=[
                    pl.BlockSpec((tm, K), lambda i: (i, 0)),
                    pl.BlockSpec((K, N), lambda i: (0, 0)),
                    pl.BlockSpec((1, N), lambda i: (0, 0)),
                ],
                out_specs=pl.BlockSpec((tm, N), lambda i: (i, 0)),
            ),
            compiler_params=pltpu.CompilerParams(
                dimension_semantics=("parallel",),
                vmem_limit_bytes=48 * 1024 * 1024,
            ),
        )(a, w, b2)

    # ---- large-shape fallback: tiled grid, pad only the axes that need it ----
    tm = _pick_m_tile(M)
    tn = min(256, _round_up(max(N, 128), 128))
    tk = min(512, _round_up(max(K, 128), 128))
    Mp, Kp, Np = _round_up(M, tm), _round_up(K, tk), _round_up(N, tn)
    if (Mp, Kp) != (M, K):
        a = jnp.zeros((Mp, Kp), jnp.bfloat16).at[:M, :K].set(a)
    if (Kp, Np) != (K, N):
        w = jnp.zeros((Kp, Np), jnp.bfloat16).at[:K, :N].set(w)
    if Np != N:
        b2 = jnp.zeros((1, Np), jnp.float32).at[:, :N].set(b2)

    out = pl.pallas_call(
        functools.partial(_mm_bias_acc_kernel, relu=relu),
        out_shape=jax.ShapeDtypeStruct((Mp, Np), out_dtype),
        grid_spec=pltpu.PrefetchScalarGridSpec(
            num_scalar_prefetch=0,
            grid=(Mp // tm, Np // tn, Kp // tk),
            in_specs=[
                pl.BlockSpec((tm, tk), lambda i, j, k: (i, k)),
                pl.BlockSpec((tk, tn), lambda i, j, k: (k, j)),
                pl.BlockSpec((1, tn), lambda i, j, k: (0, j)),
            ],
            out_specs=pl.BlockSpec((tm, tn), lambda i, j, k: (i, j)),
            scratch_shapes=[pltpu.VMEM((tm, tn), jnp.float32)],
        ),
        compiler_params=pltpu.CompilerParams(
            dimension_semantics=("parallel", "parallel", "arbitrary"),
            vmem_limit_bytes=48 * 1024 * 1024,
        ),
    )(a, w, b2)
    return out[:M, :N]


def _pairwise_dist2_kernel(x1_ref, x2_ref, x3_ref, dap_ref, dan_ref, *, eps):
    """torch.pairwise_distance(p=2): ||x1 - x2 + eps||_2 and ||x1 - x3 + eps||_2."""
    a = x1_ref[...]
    d2 = a - x2_ref[...] + eps
    d3 = a - x3_ref[...] + eps
    dap_ref[...] = jnp.sqrt(jnp.sum(d2 * d2, axis=-1, keepdims=True))
    dan_ref[...] = jnp.sqrt(jnp.sum(d3 * d3, axis=-1, keepdims=True))


def pallas_pairwise_distances(x1, x2, x3, eps=1e-6):
    """Both siamese distances in a single pallas_call; un-padded (B,F) inputs."""
    B, _ = x1.shape
    dap, dan = pl.pallas_call(
        functools.partial(_pairwise_dist2_kernel, eps=eps),
        out_shape=(jax.ShapeDtypeStruct((B, 1), jnp.float32),
                   jax.ShapeDtypeStruct((B, 1), jnp.float32)),
    )(x1.astype(jnp.float32), x2.astype(jnp.float32), x3.astype(jnp.float32))
    return dap[:, 0], dan[:, 0]


# -----------------------------------------------------------------------------
# Convolution = im2col (bf16 JAX glue) + Pallas matmul
# -----------------------------------------------------------------------------
# TODO(synk): fold the im2col gather (and ConvUp's nearest-2x upsample) into the
#             matmul kernel's K-reduction DMA once feature maps outgrow VMEM; at
#             these sizes the JAX-side gather is a small fused bf16 copy.
def conv2d(x, w_mat, bias, k, stride=1, padding=0, relu=True,
           out_dtype=jnp.bfloat16):
    """x: (B,H,W,Cin) NHWC.  w_mat: (k*k*Cin, Cout) matmul-layout bf16."""
    x = x.astype(jnp.bfloat16)
    B, H, W, Cin = x.shape
    Cout = w_mat.shape[1]
    if padding:
        x = jnp.pad(x, ((0, 0), (padding, padding), (padding, padding), (0, 0)))
    Ho = (H + 2 * padding - k) // stride + 1
    Wo = (W + 2 * padding - k) // stride + 1

    cols = []
    for dy in range(k):
        for dx in range(k):
            cols.append(x[:, dy:dy + stride * (Ho - 1) + 1:stride,
                          dx:dx + stride * (Wo - 1) + 1:stride, :])
    patches = jnp.concatenate(cols, axis=-1) if len(cols) > 1 else cols[0]
    A = patches.reshape(B * Ho * Wo, k * k * Cin)
    out = pallas_matmul_bias(A, w_mat, bias, relu=relu, out_dtype=out_dtype)
    return out.reshape(B, Ho, Wo, Cout)


def upsample_nearest2x(x):
    # TODO(synk): fold into the following conv's gather to avoid the 4x HBM write.
    return jnp.repeat(jnp.repeat(x, 2, axis=1), 2, axis=2)


# -----------------------------------------------------------------------------
# Parameters (deterministic).  Weights are stored pre-transposed to matmul
# (K, N) layout, pre-cast to bf16, and layout-permuted once at init so the
# forward pass never transposes activations between NHWC/NCHW flattening.
# -----------------------------------------------------------------------------
class ParamGen:
    def __init__(self, key):
        self.key = key

    def normal(self, shape, scale=0.05):
        self.key, sub = jax.random.split(self.key)
        return scale * jax.random.normal(sub, shape, jnp.float32)


def make_conv(pg, in_c, out_c, k):
    w = pg.normal((out_c, in_c, k, k))                                   # OIHW
    w_mat = jnp.transpose(w, (2, 3, 1, 0)).reshape(k * k * in_c, out_c)  # (K,N)
    return {"w": w_mat.astype(jnp.bfloat16), "b": pg.normal((out_c,)), "k": k}


def make_dense_from_nhwc(pg, c, h, w, out_f):
    # torch-layout fc consumes the NCHW (C,H,W) flatten; permute its input rows
    # once at init (exact) so the kernel consumes the NHWC (H,W,C) flatten.
    wt = pg.normal((c, h, w, out_f))
    w_mat = jnp.transpose(wt, (1, 2, 0, 3)).reshape(h * w * c, out_f)
    return {"w": w_mat.astype(jnp.bfloat16), "b": pg.normal((out_f,))}


def make_dense_to_nhwc(pg, in_f, c, s):
    # torch-layout dense emits (C,s,s)-ordered columns for the NCHW reshape;
    # permute columns/bias once at init (exact) so reshape(B,s,s,C) is NHWC.
    wt = pg.normal((in_f, c, s, s))
    w_mat = jnp.transpose(wt, (0, 2, 3, 1)).reshape(in_f, s * s * c)
    bt = pg.normal((c, s, s))
    b = jnp.transpose(bt, (1, 2, 0)).reshape(-1)
    return {"w": w_mat.astype(jnp.bfloat16), "b": b}


def init_encoder(pg, cfg):
    width, depth = cfg["model_width"], cfg["model_depth"]
    chans = [width * 2 ** d for d in range(depth + 1)]
    stem = make_conv(pg, cfg["input_channels"], chans[0], 3)
    downs = [make_conv(pg, chans[d], chans[d + 1], 3) for d in range(depth)]
    s_out = cfg["image_size"] // 2 ** depth
    fc = make_dense_from_nhwc(pg, chans[-1], s_out, s_out, cfg["n_feature"])
    return {"stem": stem, "downs": downs, "fc": fc}


def init_decoder(pg, cfg):
    # DecoderNet(encoder.image_size, encoder.n_feature, [], encoder.model_depth,
    #            resize_method, encoder.model_width, encoder.input_channels)
    depth = cfg["model_depth"]
    init_size = cfg["image_size"] // 2 ** depth
    init_array_length = init_size * init_size * cfg["model_width"] * 2 ** depth
    in_channel = init_array_length // init_size ** 2
    dense = make_dense_to_nhwc(pg, cfg["n_feature"], in_channel, init_size)
    ups, c = [], in_channel
    for _ in range(depth):
        ups.append(make_conv(pg, c, c // 2, 3))     # ConvUp: up2x + conv3x3 C->C/2
        c //= 2
    out = make_conv(pg, c, cfg["input_channels"], 1)  # UnetOutConv: 1x1 conv
    return {"dense": dense, "ups": ups, "out": out,
            "in_channel": in_channel, "init_size": init_size}


def init_params(key, cfg):
    pg = ParamGen(key)
    return {"encoder": init_encoder(pg, cfg), "decoder": init_decoder(pg, cfg)}


# -----------------------------------------------------------------------------
# Forward pass
# -----------------------------------------------------------------------------
def encoder_forward(p, x_nchw):
    x = jnp.transpose(x_nchw, (0, 2, 3, 1)).astype(jnp.bfloat16)      # NHWC bf16
    s = p["stem"]
    x = conv2d(x, s["w"], s["b"], s["k"], stride=1, padding=1, relu=True)
    for d in p["downs"]:
        x = conv2d(x, d["w"], d["b"], d["k"], stride=2, padding=1, relu=True)
    flat = x.reshape(x.shape[0], -1)            # NHWC flatten; fc rows pre-permuted
    return pallas_matmul_bias(flat, p["fc"]["w"], p["fc"]["b"],
                              relu=False, out_dtype=jnp.float32)


def decoder_forward(p, code):
    B = code.shape[0]
    h = pallas_matmul_bias(code, p["dense"]["w"], p["dense"]["b"],
                           relu=True, out_dtype=jnp.bfloat16)
    s = p["init_size"]
    x = h.reshape(B, s, s, p["in_channel"])     # already NHWC (columns pre-permuted)
    for up in p["ups"]:
        x = upsample_nearest2x(x)
        x = conv2d(x, up["w"], up["b"], up["k"], stride=1, padding=1, relu=True)
    o = p["out"]
    x = conv2d(x, o["w"], o["b"], o["k"], stride=1, padding=0, relu=False,
               out_dtype=jnp.float32)
    return jnp.transpose(x, (0, 3, 1, 2))       # NHWC -> NCHW (PyTorch convention)


def rot_invar_siamese_forward(params, x):
    """x: (3, B, C, H, W) = (anchor, positive, negative) stacked."""
    three, B = x.shape[0], x.shape[1]
    # Shared encoder weights: run all three branches as one (3B,...) batch (exact).
    codes = encoder_forward(params["encoder"],
                            x.reshape((three * B,) + x.shape[2:]))
    x1, x2, x3 = codes[:B], codes[B:2 * B], codes[2 * B:]
    dap, dan = pallas_pairwise_distances(x1, x2, x3)
    # Shared decoder: run x1 and x3 as one (2B,...) batch (exact).
    rec = decoder_forward(params["decoder"], jnp.concatenate([x1, x3], axis=0))
    return dap, dan, rec[:B], rec[B:]


# -----------------------------------------------------------------------------
if __name__ == "__main__":
    cfg = {
        "image_size": 16,
        "input_channels": 4,
        "model_width": 8,
        "model_depth": 2,
        "n_feature": 32,     # encoder.n_feature; encoder.code_width assumed int
    }
    B = 2

    k_x, k_p = jax.random.split(jax.random.PRNGKey(0))
    x = jax.random.normal(
        k_x, (3, B, cfg["input_channels"], cfg["image_size"], cfg["image_size"]),
        jnp.float32)
    params = init_params(k_p, cfg)

    fwd = jax.jit(functools.partial(rot_invar_siamese_forward, params))
    dap, dan, rec1, rec3 = fwd(x)
    jax.block_until_ready((dap, dan, rec1, rec3))

    assert dap.shape == (B,), dap.shape
    assert dan.shape == (B,), dan.shape
    assert rec1.shape == (B, cfg["input_channels"], cfg["image_size"], cfg["image_size"]), rec1.shape
    assert rec3.shape == rec1.shape, rec3.shape
    assert all(bool(jnp.all(jnp.isfinite(t))) for t in (dap, dan, rec1, rec3))
    print("KERNEL_OK")
</pallas_src>

<mosaic_0001>
module attributes {stable_mosaic.version = 11 : i64} {
  func.func @_mm_bias_kernel(%arg0: i32, %arg1: memref<768x36xbf16, #tpu.memory_space<vmem>>, %arg2: memref<36x8xbf16, #tpu.memory_space<vmem>>, %arg3: memref<1x8xf32, #tpu.memory_space<vmem>>, %arg4: memref<768x8xbf16, #tpu.memory_space<vmem>>) attributes {dimension_semantics = [#tpu.dimension_semantics<parallel>], iteration_bounds = array<i64: 2>, scalar_prefetch = 0 : i64, scratch_operands = 0 : i64, tpu.core_type = #tpu.core_type<tc>, window_params = [{transform_indices = @transform_0, window_bounds = array<i64: 768, 36>}, {pipeline_mode = #tpu.pipeline_mode<synchronous>, transform_indices = @transform_1, window_bounds = array<i64: 36, 8>}, {pipeline_mode = #tpu.pipeline_mode<synchronous>, transform_indices = @transform_2, window_bounds = array<i64: 1, 8>}, {transform_indices = @transform_3, window_bounds = array<i64: 768, 8>}]} {
    %c0 = arith.constant 0 : index
    %c0_0 = arith.constant 0 : index
    %0 = vector.load %arg1[%c0, %c0_0] : memref<768x36xbf16, #tpu.memory_space<vmem>>, vector<768x36xbf16>
    %c0_1 = arith.constant 0 : index
    %c0_2 = arith.constant 0 : index
    %1 = vector.load %arg2[%c0_1, %c0_2] : memref<36x8xbf16, #tpu.memory_space<vmem>>, vector<36x8xbf16>
    %cst = arith.constant dense<0.000000e+00> : vector<768x8xf32>
    %2 = tpu.matmul %0, %1, %cst {dimension_numbers = #tpu.dot_dimension_numbers<[1], [0], [0], [1], [0, 0, 1, 1], [], []>} : vector<768x36xbf16>, vector<36x8xbf16>, vector<768x8xf32> -> vector<768x8xf32>
    %c0_3 = arith.constant 0 : index
    %c0_4 = arith.constant 0 : index
    %3 = vector.load %arg3[%c0_3, %c0_4] : memref<1x8xf32, #tpu.memory_space<vmem>>, vector<1x8xf32>
    %4 = vector.broadcast %3 : vector<1x8xf32> to vector<768x8xf32>
    %5 = arith.addf %2, %4 : vector<768x8xf32>
    %cst_5 = arith.constant 0.000000e+00 : f32
    %6 = vector.broadcast %cst_5 : f32 to vector<768x8xf32>
    %7 = arith.maximumf %5, %6 : vector<768x8xf32>
    %8 = arith.truncf %7 : vector<768x8xf32> to vector<768x8xbf16>
    %c0_6 = arith.constant 0 : index
    %c0_7 = arith.constant 0 : index
    %9 = vector.load %arg4[%c0_6, %c0_7] : memref<768x8xbf16, #tpu.memory_space<vmem>>, vector<768x8xbf16>
    tpu.vector_store %arg4[%c0_6, %c0_7], %8 {strides = array<i32>} : memref<768x8xbf16, #tpu.memory_space<vmem>>, vector<768x8xbf16>,
    return
  }
  func.func @transform_0(%arg0: i32) -> (i32, i32) {
    %c0_i32 = arith.constant 0 : i32
    %c0_i32_0 = arith.constant 0 : i32
    return %arg0, %c0_i32 : i32, i32
  }
  func.func @transform_1(%arg0: i32) -> (i32, i32) {
    %c0_i32 = arith.constant 0 : i32
    %c0_i32_0 = arith.constant 0 : i32
    %c0_i32_1 = arith.constant 0 : i32
    return %c0_i32, %c0_i32_0 : i32, i32
  }
  func.func @transform_2(%arg0: i32) -> (i32, i32) {
    %c0_i32 = arith.constant 0 : i32
    %c0_i32_0 = arith.constant 0 : i32
    %c0_i32_1 = arith.constant 0 : i32
    return %c0_i32, %c0_i32_0 : i32, i32
  }
  func.func @transform_3(%arg0: i32) -> (i32, i32) {
    %c0_i32 = arith.constant 0 : i32
    %c0_i32_0 = arith.constant 0 : i32
    return %arg0, %c0_i32 : i32, i32
  }
}

module attributes {stable_mosaic.version = 11 : i64} {
  func.func @_mm_bias_kernel(%arg0: i32, %arg1: memref<192x72xbf16, #tpu.memory_space<vmem>>, %arg2: memref<72x16xbf16, #tpu.memory_space<vmem>>, %arg3: memref<1x16xf32, #tpu.memory_space<vmem>>, %arg4: memref<192x16xbf16, #tpu.memory_space<vmem>>) attributes {dimension_semantics = [#tpu.dimension_semantics<parallel>], iteration_bounds = array<i64: 2>, scalar_prefetch = 0 : i64, scratch_operands = 0 : i64, tpu.core_type = #tpu.core_type<tc>, window_params = [{transform_indices = @transform_0, window_bounds = array<i64: 192, 72>}, {pipeline_mode = #tpu.pipeline_mode<synchronous>, transform_indices = @transform_1, window_bounds = array<i64: 72, 16>}, {pipeline_mode = #tpu.pipeline_mode<synchronous>, transform_indices = @transform_2, window_bounds = array<i64: 1, 16>}, {transform_indices = @transform_3, window_bounds = array<i64: 192, 16>}]} {
    %c0 = arith.constant 0 : index
    %c0_0 = arith.constant 0 : index
    %0 = vector.load %arg1[%c0, %c0_0] : memref<192x72xbf16, #tpu.memory_space<vmem>>, vector<192x72xbf16>
    %c0_1 = arith.constant 0 : index
    %c0_2 = arith.constant 0 : index
    %1 = vector.load %arg2[%c0_1, %c0_2] : memref<72x16xbf16, #tpu.memory_space<vmem>>, vector<72x16xbf16>
    %cst = arith.constant dense<0.000000e+00> : vector<192x16xf32>
    %2 = tpu.matmul %0, %1, %cst {dimension_numbers = #tpu.dot_dimension_numbers<[1], [0], [0], [1], [0, 0, 1, 1], [], []>} : vector<192x72xbf16>, vector<72x16xbf16>, vector<192x16xf32> -> vector<192x16xf32>
    %c0_3 = arith.constant 0 : index
    %c0_4 = arith.constant 0 : index
    %3 = vector.load %arg3[%c0_3, %c0_4] : memref<1x16xf32, #tpu.memory_space<vmem>>, vector<1x16xf32>
    %4 = vector.broadcast %3 : vector<1x16xf32> to vector<192x16xf32>
    %5 = arith.addf %2, %4 : vector<192x16xf32>
    %cst_5 = arith.constant 0.000000e+00 : f32
    %6 = vector.broadcast %cst_5 : f32 to vector<192x16xf32>
    %7 = arith.maximumf %5, %6 : vector<192x16xf32>
    %8 = arith.truncf %7 : vector<192x16xf32> to vector<192x16xbf16>
    %c0_6 = arith.constant 0 : index
    %c0_7 = arith.constant 0 : index
    %9 = vector.load %arg4[%c0_6, %c0_7] : memref<192x16xbf16, #tpu.memory_space<vmem>>, vector<192x16xbf16>
    tpu.vector_store %arg4[%c0_6, %c0_7], %8 {strides = array<i32>} : memref<192x16xbf16, #tpu.memory_space<vmem>>, vector<192x16xbf16>,
    return
  }
  func.func @transform_0(%arg0: i32) -> (i32, i32) {
    %c0_i32 = arith.constant 0 : i32
    %c0_i32_0 = arith.constant 0 : i32
    return %arg0, %c0_i32 : i32, i32
  }
  func.func @transform_1(%arg0: i32) -> (i32, i32) {
    %c0_i32 = arith.constant 0 : i32
    %c0_i32_0 = arith.constant 0 : i32
    %c0_i32_1 = arith.constant 0 : i32
    return %c0_i32, %c0_i32_0 : i32, i32
  }
  func.func @transform_2(%arg0: i32) -> (i32, i32) {
    %c0_i32 = arith.constant 0 : i32
    %c0_i32_0 = arith.constant 0 : i32
    %c0_i32_1 = arith.constant 0 : i32
    return %c0_i32, %c0_i32_0 : i32, i32
  }
  func.func @transform_3(%arg0: i32) -> (i32, i32) {
    %c0_i32 = arith.constant 0 : i32
    %c0_i32_0 = arith.constant 0 : i32
    return %arg0, %c0_i32 : i32, i32
  }
}

module attributes {stable_mosaic.version = 11 : i64} {
  func.func @_mm_bias_kernel(%arg0: i32, %arg1: memref<96x144xbf16, #tpu.memory_space<vmem>>, %arg2: memref<144x32xbf16, #tpu.memory_space<vmem>>, %arg3: memref<1x32xf32, #tpu.memory_space<vmem>>, %arg4: memref<96x32xbf16, #tpu.memory_space<vmem>>) attributes {dimension_semantics = [#tpu.dimension_semantics<parallel>], iteration_bounds = array<i64: 1>, scalar_prefetch = 0 : i64, scratch_operands = 0 : i64, tpu.core_type = #tpu.core_type<tc>, window_params = [{transform_indices = @transform_0, window_bounds = array<i64: 96, 144>}, {pipeline_mode = #tpu.pipeline_mode<synchronous>, transform_indices = @transform_1, window_bounds = array<i64: 144, 32>}, {pipeline_mode = #tpu.pipeline_mode<synchronous>, transform_indices = @transform_2, window_bounds = array<i64: 1, 32>}, {transform_indices = @transform_3, window_bounds = array<i64: 96, 32>}]} {
    %c0 = arith.constant 0 : index
    %c0_0 = arith.constant 0 : index
    %0 = vector.load %arg1[%c0, %c0_0] : memref<96x144xbf16, #tpu.memory_space<vmem>>, vector<96x144xbf16>
    %c0_1 = arith.constant 0 : index
    %c0_2 = arith.constant 0 : index
    %1 = vector.load %arg2[%c0_1, %c0_2] : memref<144x32xbf16, #tpu.memory_space<vmem>>, vector<144x32xbf16>
    %cst = arith.constant dense<0.000000e+00> : vector<96x32xf32>
    %2 = tpu.matmul %0, %1, %cst {dimension_numbers = #tpu.dot_dimension_numbers<[1], [0], [0], [1], [0, 0, 1, 1], [], []>} : vector<96x144xbf16>, vector<144x32xbf16>, vector<96x32xf32> -> vector<96x32xf32>
    %c0_3 = arith.constant 0 : index
    %c0_4 = arith.constant 0 : index
    %3 = vector.load %arg3[%c0_3, %c0_4] : memref<1x32xf32, #tpu.memory_space<vmem>>, vector<1x32xf32>
    %4 = vector.broadcast %3 : vector<1x32xf32> to vector<96x32xf32>
    %5 = arith.addf %2, %4 : vector<96x32xf32>
    %cst_5 = arith.constant 0.000000e+00 : f32
    %6 = vector.broadcast %cst_5 : f32 to vector<96x32xf32>
    %7 = arith.maximumf %5, %6 : vector<96x32xf32>
    %8 = arith.truncf %7 : vector<96x32xf32> to vector<96x32xbf16>
    %c0_6 = arith.constant 0 : index
    %c0_7 = arith.constant 0 : index
    %9 = vector.load %arg4[%c0_6, %c0_7] : memref<96x32xbf16, #tpu.memory_space<vmem>>, vector<96x32xbf16>
    tpu.vector_store %arg4[%c0_6, %c0_7], %8 {strides = array<i32>} : memref<96x32xbf16, #tpu.memory_space<vmem>>, vector<96x32xbf16>,
    return
  }
  func.func @transform_0(%arg0: i32) -> (i32, i32) {
    %c0_i32 = arith.constant 0 : i32
    %c0_i32_0 = arith.constant 0 : i32
    return %arg0, %c0_i32 : i32, i32
  }
  func.func @transform_1(%arg0: i32) -> (i32, i32) {
    %c0_i32 = arith.constant 0 : i32
    %c0_i32_0 = arith.constant 0 : i32
    %c0_i32_1 = arith.constant 0 : i32
    return %c0_i32, %c0_i32_0 : i32, i32
  }
  func.func @transform_2(%arg0: i32) -> (i32, i32) {
    %c0_i32 = arith.constant 0 : i32
    %c0_i32_0 = arith.constant 0 : i32
    %c0_i32_1 = arith.constant 0 : i32
    return %c0_i32, %c0_i32_0 : i32, i32
  }
  func.func @transform_3(%arg0: i32) -> (i32, i32) {
    %c0_i32 = arith.constant 0 : i32
    %c0_i32_0 = arith.constant 0 : i32
    return %arg0, %c0_i32 : i32, i32
  }
}

module attributes {stable_mosaic.version = 11 : i64} {
  func.func @_mm_bias_kernel(%arg0: i32, %arg1: memref<6x512xbf16, #tpu.memory_space<vmem>>, %arg2: memref<512x32xbf16, #tpu.memory_space<vmem>>, %arg3: memref<1x32xf32, #tpu.memory_space<vmem>>, %arg4: memref<6x32xf32, #tpu.memory_space<vmem>>) attributes {dimension_semantics = [#tpu.dimension_semantics<parallel>], iteration_bounds = array<i64: 1>, scalar_prefetch = 0 : i64, scratch_operands = 0 : i64, tpu.core_type = #tpu.core_type<tc>, window_params = [{transform_indices = @transform_0, window_bounds = array<i64: 6, 512>}, {pipeline_mode = #tpu.pipeline_mode<synchronous>, transform_indices = @transform_1, window_bounds = array<i64: 512, 32>}, {pipeline_mode = #tpu.pipeline_mode<synchronous>, transform_indices = @transform_2, window_bounds = array<i64: 1, 32>}, {transform_indices = @transform_3, window_bounds = array<i64: 6, 32>}]} {
    %c0 = arith.constant 0 : index
    %c0_0 = arith.constant 0 : index
    %0 = vector.load %arg1[%c0, %c0_0] : memref<6x512xbf16, #tpu.memory_space<vmem>>, vector<6x512xbf16>
    %c0_1 = arith.constant 0 : index
    %c0_2 = arith.constant 0 : index
    %1 = vector.load %arg2[%c0_1, %c0_2] : memref<512x32xbf16, #tpu.memory_space<vmem>>, vector<512x32xbf16>
    %cst = arith.constant dense<0.000000e+00> : vector<6x32xf32>
    %2 = tpu.matmul %0, %1, %cst {dimension_numbers = #tpu.dot_dimension_numbers<[1], [0], [0], [1], [0, 0, 1, 1], [], []>} : vector<6x512xbf16>, vector<512x32xbf16>, vector<6x32xf32> -> vector<6x32xf32>
    %c0_3 = arith.constant 0 : index
    %c0_4 = arith.constant 0 : index
    %3 = vector.load %arg3[%c0_3, %c0_4] : memref<1x32xf32, #tpu.memory_space<vmem>>, vector<1x32xf32>
    %4 = vector.broadcast %3 : vector<1x32xf32> to vector<6x32xf32>
    %5 = arith.addf %2, %4 : vector<6x32xf32>
    %c0_5 = arith.constant 0 : index
    %c0_6 = arith.constant 0 : index
    %6 = vector.load %arg4[%c0_5, %c0_6] : memref<6x32xf32, #tpu.memory_space<vmem>>, vector<6x32xf32>
    tpu.vector_store %arg4[%c0_5, %c0_6], %5 {strides = array<i32>} : memref<6x32xf32, #tpu.memory_space<vmem>>, vector<6x32xf32>,
    return
  }
  func.func @transform_0(%arg0: i32) -> (i32, i32) {
    %c0_i32 = arith.constant 0 : i32
    %c0_i32_0 = arith.constant 0 : i32
    return %arg0, %c0_i32 : i32, i32
  }
  func.func @transform_1(%arg0: i32) -> (i32, i32) {
    %c0_i32 = arith.constant 0 : i32
    %c0_i32_0 = arith.constant 0 : i32
    %c0_i32_1 = arith.constant 0 : i32
    return %c0_i32, %c0_i32_0 : i32, i32
  }
  func.func @transform_2(%arg0: i32) -> (i32, i32) {
    %c0_i32 = arith.constant 0 : i32
    %c0_i32_0 = arith.constant 0 : i32
    %c0_i32_1 = arith.constant 0 : i32
    return %c0_i32, %c0_i32_0 : i32, i32
  }
  func.func @transform_3(%arg0: i32) -> (i32, i32) {
    %c0_i32 = arith.constant 0 : i32
    %c0_i32_0 = arith.constant 0 : i32
    return %arg0, %c0_i32 : i32, i32
  }
}

module attributes {stable_mosaic.version = 11 : i64} {
  func.func @_mm_bias_kernel(%arg0: i32, %arg1: memref<4x32xbf16, #tpu.memory_space<vmem>>, %arg2: memref<32x512xbf16, #tpu.memory_space<vmem>>, %arg3: memref<1x512xf32, #tpu.memory_space<vmem>>, %arg4: memref<4x512xbf16, #tpu.memory_space<vmem>>) attributes {dimension_semantics = [#tpu.dimension_semantics<parallel>], iteration_bounds = array<i64: 1>, scalar_prefetch = 0 : i64, scratch_operands = 0 : i64, tpu.core_type = #tpu.core_type<tc>, window_params = [{transform_indices = @transform_0, window_bounds = array<i64: 4, 32>}, {pipeline_mode = #tpu.pipeline_mode<synchronous>, transform_indices = @transform_1, window_bounds = array<i64: 32, 512>}, {pipeline_mode = #tpu.pipeline_mode<synchronous>, transform_indices = @transform_2, window_bounds = array<i64: 1, 512>}, {transform_indices = @transform_3, window_bounds = array<i64: 4, 512>}]} {
    %c0 = arith.constant 0 : index
    %c0_0 = arith.constant 0 : index
    %0 = vector.load %arg1[%c0, %c0_0] : memref<4x32xbf16, #tpu.memory_space<vmem>>, vector<4x32xbf16>
    %c0_1 = arith.constant 0 : index
    %c0_2 = arith.constant 0 : index
    %1 = vector.load %arg2[%c0_1, %c0_2] : memref<32x512xbf16, #tpu.memory_space<vmem>>, vector<32x512xbf16>
    %cst = arith.constant dense<0.000000e+00> : vector<4x512xf32>
    %2 = tpu.matmul %0, %1, %cst {dimension_numbers = #tpu.dot_dimension_numbers<[1], [0], [0], [1], [0, 0, 1, 1], [], []>} : vector<4x32xbf16>, vector<32x512xbf16>, vector<4x512xf32> -> vector<4x512xf32>
    %c0_3 = arith.constant 0 : index
    %c0_4 = arith.constant 0 : index
    %3 = vector.load %arg3[%c0_3, %c0_4] : memref<1x512xf32, #tpu.memory_space<vmem>>, vector<1x512xf32>
    %4 = vector.broadcast %3 : vector<1x512xf32> to vector<4x512xf32>
    %5 = arith.addf %2, %4 : vector<4x512xf32>
    %cst_5 = arith.constant 0.000000e+00 : f32
    %6 = vector.broadcast %cst_5 : f32 to vector<4x512xf32>
    %7 = arith.maximumf %5, %6 : vector<4x512xf32>
    %8 = arith.truncf %7 : vector<4x512xf32> to vector<4x512xbf16>
    %c0_6 = arith.constant 0 : index
    %c0_7 = arith.constant 0 : index
    %9 = vector.load %arg4[%c0_6, %c0_7] : memref<4x512xbf16, #tpu.memory_space<vmem>>, vector<4x512xbf16>
    tpu.vector_store %arg4[%c0_6, %c0_7], %8 {strides = array<i32>} : memref<4x512xbf16, #tpu.memory_space<vmem>>, vector<4x512xbf16>,
    return
  }
  func.func @transform_0(%arg0: i32) -> (i32, i32) {
    %c0_i32 = arith.constant 0 : i32
    %c0_i32_0 = arith.constant 0 : i32
    return %arg0, %c0_i32 : i32, i32
  }
  func.func @transform_1(%arg0: i32) -> (i32, i32) {
    %c0_i32 = arith.constant 0 : i32
    %c0_i32_0 = arith.constant 0 : i32
    %c0_i32_1 = arith.constant 0 : i32
    return %c0_i32, %c0_i32_0 : i32, i32
  }
  func.func @transform_2(%arg0: i32) -> (i32, i32) {
    %c0_i32 = arith.constant 0 : i32
    %c0_i32_0 = arith.constant 0 : i32
    %c0_i32_1 = arith.constant 0 : i32
    return %c0_i32, %c0_i32_0 : i32, i32
  }
  func.func @transform_3(%arg0: i32) -> (i32, i32) {
    %c0_i32 = arith.constant 0 : i32
    %c0_i32_0 = arith.constant 0 : i32
    return %arg0, %c0_i32 : i32, i32
  }
}

module attributes {stable_mosaic.version = 11 : i64} {
  func.func @_mm_bias_kernel(%arg0: i32, %arg1: memref<128x288xbf16, #tpu.memory_space<vmem>>, %arg2: memref<288x16xbf16, #tpu.memory_space<vmem>>, %arg3: memref<1x16xf32, #tpu.memory_space<vmem>>, %arg4: memref<128x16xbf16, #tpu.memory_space<vmem>>) attributes {dimension_semantics = [#tpu.dimension_semantics<parallel>], iteration_bounds = array<i64: 2>, scalar_prefetch = 0 : i64, scratch_operands = 0 : i64, tpu.core_type = #tpu.core_type<tc>, window_params = [{transform_indices = @transform_0, window_bounds = array<i64: 128, 288>}, {pipeline_mode = #tpu.pipeline_mode<synchronous>, transform_indices = @transform_1, window_bounds = array<i64: 288, 16>}, {pipeline_mode = #tpu.pipeline_mode<synchronous>, transform_indices = @transform_2, window_bounds = array<i64: 1, 16>}, {transform_indices = @transform_3, window_bounds = array<i64: 128, 16>}]} {
    %c0 = arith.constant 0 : index
    %c0_0 = arith.constant 0 : index
    %0 = vector.load %arg1[%c0, %c0_0] : memref<128x288xbf16, #tpu.memory_space<vmem>>, vector<128x288xbf16>
    %c0_1 = arith.constant 0 : index
    %c0_2 = arith.constant 0 : index
    %1 = vector.load %arg2[%c0_1, %c0_2] : memref<288x16xbf16, #tpu.memory_space<vmem>>, vector<288x16xbf16>
    %cst = arith.constant dense<0.000000e+00> : vector<128x16xf32>
    %2 = tpu.matmul %0, %1, %cst {dimension_numbers = #tpu.dot_dimension_numbers<[1], [0], [0], [1], [0, 0, 1, 1], [], []>} : vector<128x288xbf16>, vector<288x16xbf16>, vector<128x16xf32> -> vector<128x16xf32>
    %c0_3 = arith.constant 0 : index
    %c0_4 = arith.constant 0 : index
    %3 = vector.load %arg3[%c0_3, %c0_4] : memref<1x16xf32, #tpu.memory_space<vmem>>, vector<1x16xf32>
    %4 = vector.broadcast %3 : vector<1x16xf32> to vector<128x16xf32>
    %5 = arith.addf %2, %4 : vector<128x16xf32>
    %cst_5 = arith.constant 0.000000e+00 : f32
    %6 = vector.broadcast %cst_5 : f32 to vector<128x16xf32>
    %7 = arith.maximumf %5, %6 : vector<128x16xf32>
    %8 = arith.truncf %7 : vector<128x16xf32> to vector<128x16xbf16>
    %c0_6 = arith.constant 0 : index
    %c0_7 = arith.constant 0 : index
    %9 = vector.load %arg4[%c0_6, %c0_7] : memref<128x16xbf16, #tpu.memory_space<vmem>>, vector<128x16xbf16>
    tpu.vector_store %arg4[%c0_6, %c0_7], %8 {strides = array<i32>} : memref<128x16xbf16, #tpu.memory_space<vmem>>, vector<128x16xbf16>,
    return
  }
  func.func @transform_0(%arg0: i32) -> (i32, i32) {
    %c0_i32 = arith.constant 0 : i32
    %c0_i32_0 = arith.constant 0 : i32
    return %arg0, %c0_i32 : i32, i32
  }
  func.func @transform_1(%arg0: i32) -> (i32, i32) {
    %c0_i32 = arith.constant 0 : i32
    %c0_i32_0 = arith.constant 0 : i32
    %c0_i32_1 = arith.constant 0 : i32
    return %c0_i32, %c0_i32_0 : i32, i32
  }
  func.func @transform_2(%arg0: i32) -> (i32, i32) {
    %c0_i32 = arith.constant 0 : i32
    %c0_i32_0 = arith.constant 0 : i32
    %c0_i32_1 = arith.constant 0 : i32
    return %c0_i32, %c0_i32_0 : i32, i32
  }
  func.func @transform_3(%arg0: i32) -> (i32, i32) {
    %c0_i32 = arith.constant 0 : i32
    %c0_i32_0 = arith.constant 0 : i32
    return %arg0, %c0_i32 : i32, i32
  }
}

module attributes {stable_mosaic.version = 11 : i64} {
  func.func @_mm_bias_kernel(%arg0: i32, %arg1: memref<512x144xbf16, #tpu.memory_space<vmem>>, %arg2: memref<144x8xbf16, #tpu.memory_space<vmem>>, %arg3: memref<1x8xf32, #tpu.memory_space<vmem>>, %arg4: memref<512x8xbf16, #tpu.memory_space<vmem>>) attributes {dimension_semantics = [#tpu.dimension_semantics<parallel>], iteration_bounds = array<i64: 2>, scalar_prefetch = 0 : i64, scratch_operands = 0 : i64, tpu.core_type = #tpu.core_type<tc>, window_params = [{transform_indices = @transform_0, window_bounds = array<i64: 512, 144>}, {pipeline_mode = #tpu.pipeline_mode<synchronous>, transform_indices = @transform_1, window_bounds = array<i64: 144, 8>}, {pipeline_mode = #tpu.pipeline_mode<synchronous>, transform_indices = @transform_2, window_bounds = array<i64: 1, 8>}, {transform_indices = @transform_3, window_bounds = array<i64: 512, 8>}]} {
    %c0 = arith.constant 0 : index
    %c0_0 = arith.constant 0 : index
    %0 = vector.load %arg1[%c0, %c0_0] : memref<512x144xbf16, #tpu.memory_space<vmem>>, vector<512x144xbf16>
    %c0_1 = arith.constant 0 : index
    %c0_2 = arith.constant 0 : index
    %1 = vector.load %arg2[%c0_1, %c0_2] : memref<144x8xbf16, #tpu.memory_space<vmem>>, vector<144x8xbf16>
    %cst = arith.constant dense<0.000000e+00> : vector<512x8xf32>
    %2 = tpu.matmul %0, %1, %cst {dimension_numbers = #tpu.dot_dimension_numbers<[1], [0], [0], [1], [0, 0, 1, 1], [], []>} : vector<512x144xbf16>, vector<144x8xbf16>, vector<512x8xf32> -> vector<512x8xf32>
    %c0_3 = arith.constant 0 : index
    %c0_4 = arith.constant 0 : index
    %3 = vector.load %arg3[%c0_3, %c0_4] : memref<1x8xf32, #tpu.memory_space<vmem>>, vector<1x8xf32>
    %4 = vector.broadcast %3 : vector<1x8xf32> to vector<512x8xf32>
    %5 = arith.addf %2, %4 : vector<512x8xf32>
    %cst_5 = arith.constant 0.000000e+00 : f32
    %6 = vector.broadcast %cst_5 : f32 to vector<512x8xf32>
    %7 = arith.maximumf %5, %6 : vector<512x8xf32>
    %8 = arith.truncf %7 : vector<512x8xf32> to vector<512x8xbf16>
    %c0_6 = arith.constant 0 : index
    %c0_7 = arith.constant 0 : index
    %9 = vector.load %arg4[%c0_6, %c0_7] : memref<512x8xbf16, #tpu.memory_space<vmem>>, vector<512x8xbf16>
    tpu.vector_store %arg4[%c0_6, %c0_7], %8 {strides = array<i32>} : memref<512x8xbf16, #tpu.memory_space<vmem>>, vector<512x8xbf16>,
    return
  }
  func.func @transform_0(%arg0: i32) -> (i32, i32) {
    %c0_i32 = arith.constant 0 : i32
    %c0_i32_0 = arith.constant 0 : i32
    return %arg0, %c0_i32 : i32, i32
  }
  func.func @transform_1(%arg0: i32) -> (i32, i32) {
    %c0_i32 = arith.constant 0 : i32
    %c0_i32_0 = arith.constant 0 : i32
    %c0_i32_1 = arith.constant 0 : i32
    return %c0_i32, %c0_i32_0 : i32, i32
  }
  func.func @transform_2(%arg0: i32) -> (i32, i32) {
    %c0_i32 = arith.constant 0 : i32
    %c0_i32_0 = arith.constant 0 : i32
    %c0_i32_1 = arith.constant 0 : i32
    return %c0_i32, %c0_i32_0 : i32, i32
  }
  func.func @transform_3(%arg0: i32) -> (i32, i32) {
    %c0_i32 = arith.constant 0 : i32
    %c0_i32_0 = arith.constant 0 : i32
    return %arg0, %c0_i32 : i32, i32
  }
}

module attributes {stable_mosaic.version = 11 : i64} {
  func.func @_mm_bias_kernel(%arg0: i32, %arg1: memref<512x8xbf16, #tpu.memory_space<vmem>>, %arg2: memref<8x4xbf16, #tpu.memory_space<vmem>>, %arg3: memref<1x4xf32, #tpu.memory_space<vmem>>, %arg4: memref<512x4xf32, #tpu.memory_space<vmem>>) attributes {dimension_semantics = [#tpu.dimension_semantics<parallel>], iteration_bounds = array<i64: 2>, scalar_prefetch = 0 : i64, scratch_operands = 0 : i64, tpu.core_type = #tpu.core_type<tc>, window_params = [{transform_indices = @transform_0, window_bounds = array<i64: 512, 8>}, {pipeline_mode = #tpu.pipeline_mode<synchronous>, transform_indices = @transform_1, window_bounds = array<i64: 8, 4>}, {pipeline_mode = #tpu.pipeline_mode<synchronous>, transform_indices = @transform_2, window_bounds = array<i64: 1, 4>}, {transform_indices = @transform_3, window_bounds = array<i64: 512, 4>}]} {
    %c0 = arith.constant 0 : index
    %c0_0 = arith.constant 0 : index
    %0 = vector.load %arg1[%c0, %c0_0] : memref<512x8xbf16, #tpu.memory_space<vmem>>, vector<512x8xbf16>
    %c0_1 = arith.constant 0 : index
    %c0_2 = arith.constant 0 : index
    %1 = vector.load %arg2[%c0_1, %c0_2] : memref<8x4xbf16, #tpu.memory_space<vmem>>, vector<8x4xbf16>
    %cst = arith.constant dense<0.000000e+00> : vector<512x4xf32>
    %2 = tpu.matmul %0, %1, %cst {dimension_numbers = #tpu.dot_dimension_numbers<[1], [0], [0], [1], [0, 0, 1, 1], [], []>} : vector<512x8xbf16>, vector<8x4xbf16>, vector<512x4xf32> -> vector<512x4xf32>
    %c0_3 = arith.constant 0 : index
    %c0_4 = arith.constant 0 : index
    %3 = vector.load %arg3[%c0_3, %c0_4] : memref<1x4xf32, #tpu.memory_space<vmem>>, vector<1x4xf32>
    %4 = vector.broadcast %3 : vector<1x4xf32> to vector<512x4xf32>
    %5 = arith.addf %2, %4 : vector<512x4xf32>
    %c0_5 = arith.constant 0 : index
    %c0_6 = arith.constant 0 : index
    %6 = vector.load %arg4[%c0_5, %c0_6] : memref<512x4xf32, #tpu.memory_space<vmem>>, vector<512x4xf32>
    tpu.vector_store %arg4[%c0_5, %c0_6], %5 {strides = array<i32>} : memref<512x4xf32, #tpu.memory_space<vmem>>, vector<512x4xf32>,
    return
  }
  func.func @transform_0(%arg0: i32) -> (i32, i32) {
    %c0_i32 = arith.constant 0 : i32
    %c0_i32_0 = arith.constant 0 : i32
    return %arg0, %c0_i32 : i32, i32
  }
  func.func @transform_1(%arg0: i32) -> (i32, i32) {
    %c0_i32 = arith.constant 0 : i32
    %c0_i32_0 = arith.constant 0 : i32
    %c0_i32_1 = arith.constant 0 : i32
    return %c0_i32, %c0_i32_0 : i32, i32
  }
  func.func @transform_2(%arg0: i32) -> (i32, i32) {
    %c0_i32 = arith.constant 0 : i32
    %c0_i32_0 = arith.constant 0 : i32
    %c0_i32_1 = arith.constant 0 : i32
    return %c0_i32, %c0_i32_0 : i32, i32
  }
  func.func @transform_3(%arg0: i32) -> (i32, i32) {
    %c0_i32 = arith.constant 0 : i32
    %c0_i32_0 = arith.constant 0 : i32
    return %arg0, %c0_i32 : i32, i32
  }
}

module attributes {stable_mosaic.version = 11 : i64} {
  func.func @_pairwise_dist2_kernel(%arg0: memref<2x32xf32, #tpu.memory_space<vmem>>, %arg1: memref<2x32xf32, #tpu.memory_space<vmem>>, %arg2: memref<2x32xf32, #tpu.memory_space<vmem>>, %arg3: memref<2x1xf32, #tpu.memory_space<vmem>>, %arg4: memref<2x1xf32, #tpu.memory_space<vmem>>) attributes {dimension_semantics = [], scalar_prefetch = 0 : i64, scratch_operands = 0 : i64, tpu.core_type = #tpu.core_type<tc>} {
    %c0 = arith.constant 0 : index
    %c0_0 = arith.constant 0 : index
    %0 = vector.load %arg0[%c0, %c0_0] : memref<2x32xf32, #tpu.memory_space<vmem>>, vector<2x32xf32>
    %c0_1 = arith.constant 0 : index
    %c0_2 = arith.constant 0 : index
    %1 = vector.load %arg1[%c0_1, %c0_2] : memref<2x32xf32, #tpu.memory_space<vmem>>, vector<2x32xf32>
    %2 = arith.subf %0, %1 : vector<2x32xf32>
    %cst = arith.constant 9.99999997E-7 : f32
    %3 = vector.broadcast %cst : f32 to vector<2x32xf32>
    %4 = arith.addf %2, %3 : vector<2x32xf32>
    %c0_3 = arith.constant 0 : index
    %c0_4 = arith.constant 0 : index
    %5 = vector.load %arg2[%c0_3, %c0_4] : memref<2x32xf32, #tpu.memory_space<vmem>>, vector<2x32xf32>
    %6 = arith.subf %0, %5 : vector<2x32xf32>
    %cst_5 = arith.constant 9.99999997E-7 : f32
    %7 = vector.broadcast %cst_5 : f32 to vector<2x32xf32>
    %8 = arith.addf %6, %7 : vector<2x32xf32>
    %9 = arith.mulf %4, %4 : vector<2x32xf32>
    %cst_6 = arith.constant dense<0.000000e+00> : vector<2xf32>
    %10 = vector.multi_reduction <add>, %9, %cst_6 [1] : vector<2x32xf32> to vector<2xf32>
    %11 = vector.shape_cast %10 : vector<2xf32> to vector<2x1xf32>
    %12 = math.sqrt %11 : vector<2x1xf32>
    %c0_7 = arith.constant 0 : index
    %c0_8 = arith.constant 0 : index
    %13 = vector.load %arg3[%c0_7, %c0_8] : memref<2x1xf32, #tpu.memory_space<vmem>>, vector<2x1xf32>
    tpu.vector_store %arg3[%c0_7, %c0_8], %12 {strides = array<i32>} : memref<2x1xf32, #tpu.memory_space<vmem>>, vector<2x1xf32>,
    %14 = arith.mulf %8, %8 : vector<2x32xf32>
    %cst_9 = arith.constant dense<0.000000e+00> : vector<2xf32>
    %15 = vector.multi_reduction <add>, %14, %cst_9 [1] : vector<2x32xf32> to vector<2xf32>
    %16 = vector.shape_cast %15 : vector<2xf32> to vector<2x1xf32>
    %17 = math.sqrt %16 : vector<2x1xf32>
    %c0_10 = arith.constant 0 : index
    %c0_11 = arith.constant 0 : index
    %18 = vector.load %arg4[%c0_10, %c0_11] : memref<2x1xf32, #tpu.memory_space<vmem>>, vector<2x1xf32>
    tpu.vector_store %arg4[%c0_10, %c0_11], %17 {strides = array<i32>} : memref<2x1xf32, #tpu.memory_space<vmem>>, vector<2x1xf32>,
    return
  }
}

</mosaic_0001>

<bundles_post_ra>
// kernel: rot_invar_siamese_forward.9
= control target key start
LH: loop header
LB: loop body
LE: loop exit
PB: predicated region body
PF: predicated region fallthrough
CT: control target
= control target key end

     0   :  { %s2286_s12 = smov 0   ;;  %s2712_s0 = inlined_call_operand.vmem [shape: bf16[1536,36], index: 0, kind: input, shape index: {}]   ;;  %s2713_s1 = inlined_call_operand.vmem [shape: bf16[36,8], index: 1, kind: input, shape index: {}]   ;;  %s2714_s2 = inlined_call_operand.vmem [shape: f32[1,8], index: 2, kind: input, shape index: {}]   ;;  %s2715_s3 = inlined_call_operand.vmem [shape: bf16[1536,8], index: 3, kind: output, shape index: {}]  }
   0x1 LB: > { %s1737_s13 = sadd.s32 4294967295, %s2264_s12   ;;  %p1741_p0 = scmp.ge.s32.totalorder %s2264_s12, 1  ;;  %s2264_s12 = sphi %s2286_s12, %s13_s12  }
   0x2   : > { %p138_p1 = scmp.lt.s32.totalorder %s2264_s12, 3 }
   0x4   : > { %p139_p2 = pnand %p1741_p0, %p138_p1 }
   0x5   : > { %v2207_v0 = vld [vmem:[%s2713_s1] sm:$0xff] (!%p139_p2)   ;;  %v2208_v1 = vld [vmem:[%s2713_s1 + $0x8] sm:$0xff] (!%p139_p2)   ;;  %s162_s18 = smul.u32 (!%p139_p2), 96, %s1737_s13  ;;  %v2209_v2 = vld [vmem:[%s2713_s1 + $0x10] ss:$0 sps:$4 sm:$0x33] (!%p139_p2)  }
   0x6   : > { %142 = sbr.rel (%p139_p2) target bundleno = 329 (0x149), region = 32  ;;  %2089 = vmatprep.subr.bf16.mxu0 (!%p139_p2), %v2207_v0  ;;  %2191 = vmatprep.subr.bf16.mxu1 (!%p139_p2), %v2207_v0  ;;  %vm683_vm0 = vcmask (!%p139_p2), 1041408   ;;  %vm538_vm1 = vcmask (!%p139_p2), 293888   ;;  %v2412_v52 = vld [vmem:[%s2714_s2] ss:$0 sm:$0xff] (!%p139_p2)  ;;  %vm1584_vm2 = vcmask (!%p139_p2), 60416  }
   0x7   : > { %2090 = vmatpush3.bf16.msra.mxu0 (!%p139_p2), %v2207_v0  ;;  %2194 = vmatpush3.bf16.msra.mxu1 (!%p139_p2), %v2207_v0  ;;  %p163_p3 = scmp.lt.s32.totalorder (!%p139_p2), %s162_s18, 191  ;;  %v685_v3 = vsel (!%p139_p2), %vm683_vm0, %v2209_v2, 0 }
   0x8   : > { %2091 = vmatprep.subr.bf16.mxu0 (!%p139_p2), %v2208_v1  ;;  %2192 = vmatprep.subr.bf16.mxu1 (!%p139_p2), %v2208_v1 }
   0xb   : > { %2092 = vmatpush3.bf16.msra.mxu0 (!%p139_p2), %v2208_v1  ;;  %2195 = vmatpush3.bf16.msra.mxu1 (!%p139_p2), %v2208_v1 }
   0xc   : > { %2197 = vmatprep.subr.msk.bf16.mxu0 (!%p139_p2), %vm683_vm0, %v2209_v2  ;;  %2198 = vmatprep.subr.msk.bf16.mxu1 (!%p139_p2), %vm683_vm0, %v2209_v2 }
   0xd   : > { %s2717_s18 = smov (!%p163_p3, %s162_s18), 191 }
   0xe   : > { %s1742_s21 = sshll.u32 %s2717_s18, 2 }
   0xf   : > { %s2311_s24 = scalar_lea.vmem %s2712_s0, %s1742_s21  ;;  %2094 = vmatpush3.bf16.msra.mxu0 %v685_v3  ;;  %2196 = vmatpush3.bf16.msra.mxu1 %v685_v3  ;;  %s2425_s29 = scalar_lea.vmem %s2715_s3, %s1742_s21 }
  0x10   : > { %v2210_v4 = vld [vmem:[%s2311_s24] sm:$0xff]   ;;  %v2212_v6 = vld [vmem:[%s2311_s24 + $0x8] sm:$0xff]   ;;  %v2214_v8 = vld [vmem:[%s2311_s24 + $0x10] sm:$0xff]  }
  0x11   : > { %v2211_v5 = vld [vmem:[%s2311_s24 + $0xc0] sm:$0xff]   ;;  %2095 = vmatprep.mubr.msk.bf16.mxu0 %vm538_vm1, %v2210_v4  ;;  %v2213_v7 = vld [vmem:[%s2311_s24 + $0xc8] sm:$0xff]   ;;  %v2215_v9 = vld [vmem:[%s2311_s24 + $0xd0] sm:$0xff]  }
  0x12   : > { %2143 = vmatprep.mubr.msk.bf16.mxu1 %vm538_vm1, %v2211_v5  ;;  %2096 = vmatmul.mubr.msk.bf16.vlgmr.msra.gmra.mrb[0].mxu0 %vm538_vm1, %v2212_v6  ;;  %v2216_v10 = vld [vmem:[%s2311_s24 + $0x18] sm:$0xff]   ;;  %v2218_v12 = vld [vmem:[%s2311_s24 + $0x20] sm:$0xff]   ;;  %v2220_v14 = vld [vmem:[%s2311_s24 + $0x28] sm:$0xff]  }
  0x13   : > { %2144 = vmatmul.mubr.msk.bf16.vlgmr.msra.gmra.mrb[0].mxu1 %vm538_vm1, %v2213_v7  ;;  %2099 = vmatprep.mubr.msk.bf16.mxu0 %vm538_vm1, %v2214_v8  ;;  %v2217_v11 = vld [vmem:[%s2311_s24 + $0xd8] sm:$0xff]   ;;  %v2219_v13 = vld [vmem:[%s2311_s24 + $0xe0] sm:$0xff]   ;;  %v2221_v15 = vld [vmem:[%s2311_s24 + $0xe8] sm:$0xff]  }
  0x14   : > { %2147 = vmatprep.mubr.msk.bf16.mxu1 %vm538_vm1, %v2215_v9  ;;  %v2222_v16 = vld [vmem:[%s2311_s24 + $0x30] sm:$0xff]   ;;  %v2224_v18 = vld [vmem:[%s2311_s24 + $0x38] sm:$0xff]   ;;  %v2226_v20 = vld [vmem:[%s2311_s24 + $0x40] sm:$0xff]  }
  0x15   : > { %v2223_v17 = vld [vmem:[%s2311_s24 + $0xf0] sm:$0xff]   ;;  %v2225_v19 = vld [vmem:[%s2311_s24 + $0xf8] sm:$0xff]   ;;  %v2227_v21 = vld [vmem:[%s2311_s24 + $0x100] sm:$0xff]  }
  0x16   : > { %v2228_v22 = vld [vmem:[%s2311_s24 + $0x48] sm:$0xff]   ;;  %v2230_v24 = vld [vmem:[%s2311_s24 + $0x50] sm:$0xff]   ;;  %v2232_v26 = vld [vmem:[%s2311_s24 + $0x58] sm:$0xff]  }
  0x17   : > { %v2229_v23 = vld [vmem:[%s2311_s24 + $0x108] sm:$0xff]   ;;  %v2231_v25 = vld [vmem:[%s2311_s24 + $0x110] sm:$0xff]   ;;  %v2233_v27 = vld [vmem:[%s2311_s24 + $0x118] sm:$0xff]  }
  0x18   : > { %v2234_v28 = vld [vmem:[%s2311_s24 + $0x60] sm:$0xff]   ;;  %v2236_v30 = vld [vmem:[%s2311_s24 + $0x68] sm:$0xff]   ;;  %v2238_v32 = vld [vmem:[%s2311_s24 + $0x70] sm:$0xff]  }
  0x19   : > { %v2235_v29 = vld [vmem:[%s2311_s24 + $0x120] sm:$0xff]   ;;  %v2237_v31 = vld [vmem:[%s2311_s24 + $0x128] sm:$0xff]   ;;  %v2239_v33 = vld [vmem:[%s2311_s24 + $0x130] sm:$0xff]  }
  0x1a   : > { %2100 = vmatmul.mubr.msk.bf16.gmra.mrb[4].mxu0 %vm538_vm1, %v2216_v10  ;;  %v2240_v34 = vld [vmem:[%s2311_s24 + $0x78] sm:$0xff]   ;;  %v2242_v36 = vld [vmem:[%s2311_s24 + $0x80] sm:$0xff]   ;;  %v2244_v38 = vld [vmem:[%s2311_s24 + $0x88] sm:$0xff]  }
  0x1b   : > { %2148 = vmatmul.mubr.msk.bf16.gmra.mrb[4].mxu1 %vm538_vm1, %v2217_v11  ;;  %2103 = vmatprep.mubr.msk.bf16.mxu0 %vm538_vm1, %v2218_v12  ;;  %v2241_v35 = vld [vmem:[%s2311_s24 + $0x138] sm:$0xff]   ;;  %v2243_v37 = vld [vmem:[%s2311_s24 + $0x140] sm:$0xff]   ;;  %v2245_v39 = vld [vmem:[%s2311_s24 + $0x148] sm:$0xff]  }
  0x1c   : > { %2151 = vmatprep.mubr.msk.bf16.mxu1 %vm538_vm1, %v2219_v13  ;;  %v2246_v40 = vld [vmem:[%s2311_s24 + $0x90] sm:$0xff]   ;;  %v2248_v42 = vld [vmem:[%s2311_s24 + $0x98] sm:$0xff]   ;;  %v2250_v44 = vld [vmem:[%s2311_s24 + $0xa0] sm:$0xff]  }
  0x1d   : > { %v2247_v41 = vld [vmem:[%s2311_s24 + $0x150] sm:$0xff]   ;;  %v2249_v43 = vld [vmem:[%s2311_s24 + $0x158] sm:$0xff]   ;;  %v2251_v45 = vld [vmem:[%s2311_s24 + $0x160] sm:$0xff]  }
  0x1e   : > { %v2252_v46 = vld [vmem:[%s2311_s24 + $0xa8] sm:$0xff]   ;;  %v2254_v48 = vld [vmem:[%s2311_s24 + $0xb0] sm:$0xff]   ;;  %v2256_v50 = vld [vmem:[%s2311_s24 + $0xb8] sm:$0xff]  }
  0x1f   : > { %v2253_v47 = vld [vmem:[%s2311_s24 + $0x168] sm:$0xff]   ;;  %v2255_v49 = vld [vmem:[%s2311_s24 + $0x170] sm:$0xff]   ;;  %v2257_v51 = vld [vmem:[%s2311_s24 + $0x178] sm:$0xff]  }
  0x22   : > { %2104 = vmatmul.mubr.msk.bf16.gmra.mrb[8].mxu0 %vm538_vm1, %v2220_v14 }
  0x23   : > { %2152 = vmatmul.mubr.msk.bf16.gmra.mrb[8].mxu1 %vm538_vm1, %v2221_v15  ;;  %2107 = vmatprep.mubr.msk.bf16.mxu0 %vm538_vm1, %v2222_v16 }
  0x24   : > { %2155 = vmatprep.mubr.msk.bf16.mxu1 %vm538_vm1, %v2223_v17 }
  0x2a   : > { %2108 = vmatmul.mubr.msk.bf16.gmra.mrb[12].mxu0 %vm538_vm1, %v2224_v18 }
  0x2b   : > { %2156 = vmatmul.mubr.msk.bf16.gmra.mrb[12].mxu1 %vm538_vm1, %v2225_v19  ;;  %2111 = vmatprep.mubr.msk.bf16.mxu0 %vm538_vm1, %v2226_v20 }
  0x2c   : > { %2159 = vmatprep.mubr.msk.bf16.mxu1 %vm538_vm1, %v2227_v21 }
  0x32   : > { %2112 = vmatmul.mubr.msk.bf16.gmra.mrb[16].mxu0 %vm538_vm1, %v2228_v22 }
  0x33   : > { %2160 = vmatmul.mubr.msk.bf16.gmra.mrb[16].mxu1 %vm538_vm1, %v2229_v23  ;;  %2115 = vmatprep.mubr.msk.bf16.mxu0 %vm538_vm1, %v2230_v24 }
  0x34   : > { %2163 = vmatprep.mubr.msk.bf16.mxu1 %vm538_vm1, %v2231_v25 }
  0x3a   : > { %2116 = vmatmul.mubr.msk.bf16.gmra.mrb[20].mxu0 %vm538_vm1, %v2232_v26 }
  0x3b   : > { %2164 = vmatmul.mubr.msk.bf16.gmra.mrb[20].mxu1 %vm538_vm1, %v2233_v27  ;;  %2119 = vmatprep.mubr.msk.bf16.mxu0 %vm538_vm1, %v2234_v28 }
  0x3c   : > { %2167 = vmatprep.mubr.msk.bf16.mxu1 %vm538_vm1, %v2235_v29 }
  0x42   : > { %2120 = vmatmul.mubr.msk.bf16.gmra.mrb[24].mxu0 %vm538_vm1, %v2236_v30 }
  0x43   : > { %2168 = vmatmul.mubr.msk.bf16.gmra.mrb[24].mxu1 %vm538_vm1, %v2237_v31  ;;  %2123 = vmatprep.mubr.msk.bf16.mxu0 %vm538_vm1, %v2238_v32 }
  0x44   : > { %2171 = vmatprep.mubr.msk.bf16.mxu1 %vm538_vm1, %v2239_v33 }
  0x4a   : > { %2124 = vmatmul.mubr.msk.bf16.gmra.mrb[28].mxu0 %vm538_vm1, %v2240_v34 }
  0x4b   : > { %2172 = vmatmul.mubr.msk.bf16.gmra.mrb[28].mxu1 %vm538_vm1, %v2241_v35  ;;  %2127 = vmatprep.mubr.msk.bf16.mxu0 %vm538_vm1, %v2242_v36 }
  0x4c   : > { %2175 = vmatprep.mubr.msk.bf16.mxu1 %vm538_vm1, %v2243_v37 }
  0x52   : > { %2128 = vmatmul.mubr.msk.bf16.gmra.mrb[32].mxu0 %vm538_vm1, %v2244_v38 }
  0x53   : > { %2176 = vmatmul.mubr.msk.bf16.gmra.mrb[32].mxu1 %vm538_vm1, %v2245_v39  ;;  %2131 = vmatprep.mubr.msk.bf16.mxu0 %vm538_vm1, %v2246_v40 }
  0x54   : > { %2179 = vmatprep.mubr.msk.bf16.mxu1 %vm538_vm1, %v2247_v41 }
  0x5a   : > { %2132 = vmatmul.mubr.msk.bf16.gmra.mrb[36].mxu0 %vm538_vm1, %v2248_v42 }
  0x5b   : > { %2180 = vmatmul.mubr.msk.bf16.gmra.mrb[36].mxu1 %vm538_vm1, %v2249_v43  ;;  %2135 = vmatprep.mubr.msk.bf16.mxu0 %vm538_vm1, %v2250_v44 }
  0x5c   : > { %2183 = vmatprep.mubr.msk.bf16.mxu1 %vm538_vm1, %v2251_v45 }
  0x62   : > { %2136 = vmatmul.mubr.msk.bf16.gmra.mrb[40].mxu0 %vm538_vm1, %v2252_v46 }
  0x63   : > { %2184 = vmatmul.mubr.msk.bf16.gmra.mrb[40].mxu1 %vm538_vm1, %v2253_v47  ;;  %2139 = vmatprep.mubr.msk.bf16.mxu0 %vm538_vm1, %v2254_v48 }
  0x64   : > { %2187 = vmatprep.mubr.msk.bf16.mxu1 %vm538_vm1, %v2255_v49 }
  0x6a   : > { %2140 = vmatmul.mubr.msk.bf16.gmra.mrb[44].mxu0 %vm538_vm1, %v2256_v50 }
  0x6b   : > { %2188 = vmatmul.mubr.msk.bf16.gmra.mrb[44].mxu1 %vm538_vm1, %v2257_v51 }
  0xe5   : > { %v2097_v53 = vpop.f32.mrb[0].mxu0 }
  0xe6   : > { %v2145_v54 = vpop.f32.mrb[0].mxu1  ;;  %v730_v55 = vadd.f32 %v2097_v53, %v2412_v52  ;;  %v721_v57 = vpop.f32.mrb[1].mxu0 }
  0xe7   : > { %v922_v56 = vadd.f32 %v2145_v54, %v2412_v52  ;;  %v913_v58 = vpop.f32.mrb[1].mxu1  ;;  %v722_v59 = vadd.f32 %v2412_v52, %v721_v57  ;;  %v2098_v61 = vpop.f32.mrb[2].mxu0 }
  0xe8   : > { %v914_v60 = vadd.f32 %v2412_v52, %v913_v58  ;;  %v2146_v62 = vpop.f32.mrb[2].mxu1  ;;  %v1106_v63 = vmax.f32 %v730_v55, 0.0  ;;  %v733_v1 = vadd.f32 %v2098_v61, %v2412_v52  ;;  %v724_v3 = vpop.f32.mrb[3].mxu0 }
  0xe9   : > { %v1154_v0 = vmax.f32 %v922_v56, 0.0  ;;  %v925_v2 = vadd.f32 %v2146_v62, %v2412_v52  ;;  %v916_v4 = vpop.f32.mrb[3].mxu1  ;;  %v1104_v5 = vmax.f32 %v722_v59, 0.0  ;;  %v725_v7 = vadd.f32 %v2412_v52, %v724_v3 }
  0xea   : > { %v1152_v6 = vmax.f32 %v914_v60, 0.0  ;;  %v917_v8 = vadd.f32 %v2412_v52, %v916_v4  ;;  %v1944_v9 = vpack.c.bf16 %v1106_v63, %v1106_v63  ;;  %v1107_v11 = vmax.f32 %v733_v1, 0.0 }
  0xeb   : > { %v1992_v10 = vpack.c.bf16 %v1154_v0, %v1154_v0  ;;  %v1155_v12 = vmax.f32 %v925_v2, 0.0  ;;  %v1942_v13 = vpack.c.bf16 %v1104_v5, %v1104_v5  ;;  %v1105_v15 = vmax.f32 %v725_v7, 0.0 }
  0xec   : > { %v1990_v14 = vpack.c.bf16 %v1152_v6, %v1152_v6  ;;  %v1153_v16 = vmax.f32 %v917_v8, 0.0  ;;  %1587 = vst.msk [vmem:[%s2425_s29 + $0x8] sm:$0xf] %vm1584_vm2, %v1944_v9  ;;  %v1945_v17 = vpack.c.bf16 %v1107_v11, %v1107_v11 }
  0xed   : > { %1635 = vst.msk [vmem:[%s2425_s29 + $0xc8] sm:$0xf] %vm1584_vm2, %v1992_v10  ;;  %v1993_v18 = vpack.c.bf16 %v1155_v12, %v1155_v12  ;;  %1585 = vst.msk [vmem:[%s2425_s29] sm:$0xf] %vm1584_vm2, %v1942_v13  ;;  %v1943_v19 = vpack.c.bf16 %v1105_v15, %v1105_v15  ;;  %v2101_v21 = vpop.f32.mrb[4].mxu0 }
  0xee   : > { %1633 = vst.msk [vmem:[%s2425_s29 + $0xc0] sm:$0xf] %vm1584_vm2, %v1990_v14  ;;  %v1991_v20 = vpack.c.bf16 %v1153_v16, %v1153_v16  ;;  %v2149_v22 = vpop.f32.mrb[4].mxu1  ;;  %1588 = vst.msk [vmem:[%s2425_s29 + $0xc] sm:$0xf] %vm1584_vm2, %v1945_v17  ;;  %v746_v23 = vadd.f32 %v2101_v21, %v2412_v52  ;;  %v737_v25 = vpop.f32.mrb[5].mxu0 }
  0xef   : > { %1636 = vst.msk [vmem:[%s2425_s29 + $0xcc] sm:$0xf] %vm1584_vm2, %v1993_v18  ;;  %v938_v24 = vadd.f32 %v2149_v22, %v2412_v52  ;;  %v929_v26 = vpop.f32.mrb[5].mxu1  ;;  %1586 = vst.msk [vmem:[%s2425_s29 + $0x4] sm:$0xf] %vm1584_vm2, %v1943_v19  ;;  %v738_v27 = vadd.f32 %v2412_v52, %v737_v25  ;;  %v2102_v29 = vpop.f32.mrb[6].mxu0 }
  0xf0   : > { %1634 = vst.msk [vmem:[%s2425_s29 + $0xc4] sm:$0xf] %vm1584_vm2, %v1991_v20  ;;  %v930_v28 = vadd.f32 %v2412_v52, %v929_v26  ;;  %v2150_v30 = vpop.f32.mrb[6].mxu1  ;;  %v1110_v31 = vmax.f32 %v746_v23, 0.0  ;;  %v749_v33 = vadd.f32 %v2102_v29, %v2412_v52  ;;  %v740_v35 = vpop.f32.mrb[7].mxu0 }
  0xf1   : > { %v1158_v32 = vmax.f32 %v938_v24, 0.0  ;;  %v941_v34 = vadd.f32 %v2150_v30, %v2412_v52  ;;  %v932_v36 = vpop.f32.mrb[7].mxu1  ;;  %v1108_v37 = vmax.f32 %v738_v27, 0.0  ;;  %v741_v39 = vadd.f32 %v2412_v52, %v740_v35 }
  0xf2   : > { %v1156_v38 = vmax.f32 %v930_v28, 0.0  ;;  %v933_v40 = vadd.f32 %v2412_v52, %v932_v36  ;;  %v1948_v41 = vpack.c.bf16 %v1110_v31, %v1110_v31  ;;  %v1111_v43 = vmax.f32 %v749_v33, 0.0 }
  0xf3   : > { %v1996_v42 = vpack.c.bf16 %v1158_v32, %v1158_v32  ;;  %v1159_v44 = vmax.f32 %v941_v34, 0.0  ;;  %v1946_v45 = vpack.c.bf16 %v1108_v37, %v1108_v37  ;;  %v1109_v47 = vmax.f32 %v741_v39, 0.0 }
  0xf4   : > { %v1994_v46 = vpack.c.bf16 %v1156_v38, %v1156_v38  ;;  %v1157_v48 = vmax.f32 %v933_v40, 0.0  ;;  %1591 = vst.msk [vmem:[%s2425_s29 + $0x18] sm:$0xf] %vm1584_vm2, %v1948_v41  ;;  %v1949_v49 = vpack.c.bf16 %v1111_v43, %v1111_v43 }
  0xf5   : > { %1639 = vst.msk [vmem:[%s2425_s29 + $0xd8] sm:$0xf] %vm1584_vm2, %v1996_v42  ;;  %v1997_v50 = vpack.c.bf16 %v1159_v44, %v1159_v44  ;;  %1589 = vst.msk [vmem:[%s2425_s29 + $0x10] sm:$0xf] %vm1584_vm2, %v1946_v45  ;;  %v1947_v51 = vpack.c.bf16 %v1109_v47, %v1109_v47  ;;  %v2105_v54 = vpop.f32.mrb[8].mxu0 }
  0xf6   : > { %1637 = vst.msk [vmem:[%s2425_s29 + $0xd0] sm:$0xf] %vm1584_vm2, %v1994_v46  ;;  %v1995_v53 = vpack.c.bf16 %v1157_v48, %v1157_v48  ;;  %v2153_v55 = vpop.f32.mrb[8].mxu1  ;;  %1592 = vst.msk [vmem:[%s2425_s29 + $0x1c] sm:$0xf] %vm1584_vm2, %v1949_v49  ;;  %v762_v56 = vadd.f32 %v2105_v54, %v2412_v52  ;;  %v753_v58 = vpop.f32.mrb[9].mxu0 }
  0xf7   : > { %1640 = vst.msk [vmem:[%s2425_s29 + $0xdc] sm:$0xf] %vm1584_vm2, %v1997_v50  ;;  %v954_v57 = vadd.f32 %v2153_v55, %v2412_v52  ;;  %v945_v59 = vpop.f32.mrb[9].mxu1  ;;  %1590 = vst.msk [vmem:[%s2425_s29 + $0x14] sm:$0xf] %vm1584_vm2, %v1947_v51  ;;  %v754_v60 = vadd.f32 %v2412_v52, %v753_v58  ;;  %v2106_v62 = vpop.f32.mrb[10].mxu0 }
  0xf8   : > { %1638 = vst.msk [vmem:[%s2425_s29 + $0xd4] sm:$0xf] %vm1584_vm2, %v1995_v53  ;;  %v946_v61 = vadd.f32 %v2412_v52, %v945_v59  ;;  %v2154_v63 = vpop.f32.mrb[10].mxu1  ;;  %v1114_v0 = vmax.f32 %v762_v56, 0.0  ;;  %v765_v2 = vadd.f32 %v2106_v62, %v2412_v52  ;;  %v756_v4 = vpop.f32.mrb[11].mxu0 }
  0xf9   : > { %v1162_v1 = vmax.f32 %v954_v57, 0.0  ;;  %v957_v3 = vadd.f32 %v2154_v63, %v2412_v52  ;;  %v948_v5 = vpop.f32.mrb[11].mxu1  ;;  %v1112_v6 = vmax.f32 %v754_v60, 0.0  ;;  %v757_v8 = vadd.f32 %v2412_v52, %v756_v4 }
  0xfa   : > { %v1160_v7 = vmax.f32 %v946_v61, 0.0  ;;  %v949_v9 = vadd.f32 %v2412_v52, %v948_v5  ;;  %v1952_v10 = vpack.c.bf16 %v1114_v0, %v1114_v0  ;;  %v1115_v12 = vmax.f32 %v765_v2, 0.0 }
  0xfb   : > { %v2000_v11 = vpack.c.bf16 %v1162_v1, %v1162_v1  ;;  %v1163_v13 = vmax.f32 %v957_v3, 0.0  ;;  %v1950_v14 = vpack.c.bf16 %v1112_v6, %v1112_v6  ;;  %v1113_v16 = vmax.f32 %v757_v8, 0.0 }
  0xfc   : > { %v1998_v15 = vpack.c.bf16 %v1160_v7, %v1160_v7  ;;  %v1161_v17 = vmax.f32 %v949_v9, 0.0  ;;  %1595 = vst.msk [vmem:[%s2425_s29 + $0x28] sm:$0xf] %vm1584_vm2, %v1952_v10  ;;  %v1953_v18 = vpack.c.bf16 %v1115_v12, %v1115_v12 }
  0xfd   : > { %1643 = vst.msk [vmem:[%s2425_s29 + $0xe8] sm:$0xf] %vm1584_vm2, %v2000_v11  ;;  %v2001_v19 = vpack.c.bf16 %v1163_v13, %v1163_v13  ;;  %1593 = vst.msk [vmem:[%s2425_s29 + $0x20] sm:$0xf] %vm1584_vm2, %v1950_v14  ;;  %v1951_v20 = vpack.c.bf16 %v1113_v16, %v1113_v16  ;;  %v2109_v22 = vpop.f32.mrb[12].mxu0 }
  0xfe   : > { %1641 = vst.msk [vmem:[%s2425_s29 + $0xe0] sm:$0xf] %vm1584_vm2, %v1998_v15  ;;  %v1999_v21 = vpack.c.bf16 %v1161_v17, %v1161_v17  ;;  %v2157_v23 = vpop.f32.mrb[12].mxu1  ;;  %1596 = vst.msk [vmem:[%s2425_s29 + $0x2c] sm:$0xf] %vm1584_vm2, %v1953_v18  ;;  %v778_v24 = vadd.f32 %v2109_v22, %v2412_v52  ;;  %v769_v26 = vpop.f32.mrb[13].mxu0 }
  0xff   : > { %1644 = vst.msk [vmem:[%s2425_s29 + $0xec] sm:$0xf] %vm1584_vm2, %v2001_v19  ;;  %v970_v25 = vadd.f32 %v2157_v23, %v2412_v52  ;;  %v961_v27 = vpop.f32.mrb[13].mxu1  ;;  %1594 = vst.msk [vmem:[%s2425_s29 + $0x24] sm:$0xf] %vm1584_vm2, %v1951_v20  ;;  %v770_v28 = vadd.f32 %v2412_v52, %v769_v26  ;;  %v2110_v30 = vpop.f32.mrb[14].mxu0 }
 0x100   : > { %1642 = vst.msk [vmem:[%s2425_s29 + $0xe4] sm:$0xf] %vm1584_vm2, %v1999_v21  ;;  %v962_v29 = vadd.f32 %v2412_v52, %v961_v27  ;;  %v2158_v31 = vpop.f32.mrb[14].mxu1  ;;  %v1118_v32 = vmax.f32 %v778_v24, 0.0  ;;  %v781_v34 = vadd.f32 %v2110_v30, %v2412_v52  ;;  %v772_v36 = vpop.f32.mrb[15].mxu0 }
 0x101   : > { %v1166_v33 = vmax.f32 %v970_v25, 0.0  ;;  %v973_v35 = vadd.f32 %v2158_v31, %v2412_v52  ;;  %v964_v37 = vpop.f32.mrb[15].mxu1  ;;  %v1116_v38 = vmax.f32 %v770_v28, 0.0  ;;  %v773_v40 = vadd.f32 %v2412_v52, %v772_v36 }
 0x102   : > { %v1164_v39 = vmax.f32 %v962_v29, 0.0  ;;  %v965_v41 = vadd.f32 %v2412_v52, %v964_v37  ;;  %v1956_v42 = vpack.c.bf16 %v1118_v32, %v1118_v32  ;;  %v1119_v44 = vmax.f32 %v781_v34, 0.0 }
 0x103   : > { %v2004_v43 = vpack.c.bf16 %v1166_v33, %v1166_v33  ;;  %v1167_v45 = vmax.f32 %v973_v35, 0.0  ;;  %v1954_v46 = vpack.c.bf16 %v1116_v38, %v1116_v38  ;;  %v1117_v48 = vmax.f32 %v773_v40, 0.0 }
 0x104   : > { %v2002_v47 = vpack.c.bf16 %v1164_v39, %v1164_v39  ;;  %v1165_v49 = vmax.f32 %v965_v41, 0.0  ;;  %1599 = vst.msk [vmem:[%s2425_s29 + $0x38] sm:$0xf] %vm1584_vm2, %v1956_v42  ;;  %v1957_v50 = vpack.c.bf16 %v1119_v44, %v1119_v44 }
 0x105   : > { %1647 = vst.msk [vmem:[%s2425_s29 + $0xf8] sm:$0xf] %vm1584_vm2, %v2004_v43  ;;  %v2005_v51 = vpack.c.bf16 %v1167_v45, %v1167_v45  ;;  %1597 = vst.msk [vmem:[%s2425_s29 + $0x30] sm:$0xf] %vm1584_vm2, %v1954_v46  ;;  %v1955_v53 = vpack.c.bf16 %v1117_v48, %v1117_v48  ;;  %v2113_v55 = vpop.f32.mrb[16].mxu0 }
 0x106   : > { %1645 = vst.msk [vmem:[%s2425_s29 + $0xf0] sm:$0xf] %vm1584_vm2, %v2002_v47  ;;  %v2003_v54 = vpack.c.bf16 %v1165_v49, %v1165_v49  ;;  %v2161_v56 = vpop.f32.mrb[16].mxu1  ;;  %1600 = vst.msk [vmem:[%s2425_s29 + $0x3c] sm:$0xf] %vm1584_vm2, %v1957_v50  ;;  %v794_v57 = vadd.f32 %v2113_v55, %v2412_v52  ;;  %v785_v59 = vpop.f32.mrb[17].mxu0 }
 0x107   : > { %1648 = vst.msk [vmem:[%s2425_s29 + $0xfc] sm:$0xf] %vm1584_vm2, %v2005_v51  ;;  %v986_v58 = vadd.f32 %v2161_v56, %v2412_v52  ;;  %v977_v60 = vpop.f32.mrb[17].mxu1  ;;  %1598 = vst.msk [vmem:[%s2425_s29 + $0x34] sm:$0xf] %vm1584_vm2, %v1955_v53  ;;  %v786_v61 = vadd.f32 %v2412_v52, %v785_v59  ;;  %v2114_v63 = vpop.f32.mrb[18].mxu0 }
 0x108   : > { %1646 = vst.msk [vmem:[%s2425_s29 + $0xf4] sm:$0xf] %vm1584_vm2, %v2003_v54  ;;  %v978_v62 = vadd.f32 %v2412_v52, %v977_v60  ;;  %v2162_v0 = vpop.f32.mrb[18].mxu1  ;;  %v1122_v1 = vmax.f32 %v794_v57, 0.0  ;;  %v797_v3 = vadd.f32 %v2114_v63, %v2412_v52  ;;  %v788_v5 = vpop.f32.mrb[19].mxu0 }
 0x109   : > { %v1170_v2 = vmax.f32 %v986_v58, 0.0  ;;  %v989_v4 = vadd.f32 %v2162_v0, %v2412_v52  ;;  %v980_v6 = vpop.f32.mrb[19].mxu1  ;;  %v1120_v7 = vmax.f32 %v786_v61, 0.0  ;;  %v789_v9 = vadd.f32 %v2412_v52, %v788_v5 }
 0x10a   : > { %v1168_v8 = vmax.f32 %v978_v62, 0.0  ;;  %v981_v10 = vadd.f32 %v2412_v52, %v980_v6  ;;  %v1960_v11 = vpack.c.bf16 %v1122_v1, %v1122_v1  ;;  %v1123_v13 = vmax.f32 %v797_v3, 0.0 }
 0x10b   : > { %v2008_v12 = vpack.c.bf16 %v1170_v2, %v1170_v2  ;;  %v1171_v14 = vmax.f32 %v989_v4, 0.0  ;;  %v1958_v15 = vpack.c.bf16 %v1120_v7, %v1120_v7  ;;  %v1121_v17 = vmax.f32 %v789_v9, 0.0 }
 0x10c   : > { %v2006_v16 = vpack.c.bf16 %v1168_v8, %v1168_v8  ;;  %v1169_v18 = vmax.f32 %v981_v10, 0.0  ;;  %1603 = vst.msk [vmem:[%s2425_s29 + $0x48] sm:$0xf] %vm1584_vm2, %v1960_v11  ;;  %v1961_v19 = vpack.c.bf16 %v1123_v13, %v1123_v13 }
 0x10d   : > { %1651 = vst.msk [vmem:[%s2425_s29 + $0x108] sm:$0xf] %vm1584_vm2, %v2008_v12  ;;  %v2009_v20 = vpack.c.bf16 %v1171_v14, %v1171_v14  ;;  %1601 = vst.msk [vmem:[%s2425_s29 + $0x40] sm:$0xf] %vm1584_vm2, %v1958_v15  ;;  %v1959_v21 = vpack.c.bf16 %v1121_v17, %v1121_v17  ;;  %v2117_v23 = vpop.f32.mrb[20].mxu0 }
 0x10e   : > { %1649 = vst.msk [vmem:[%s2425_s29 + $0x100] sm:$0xf] %vm1584_vm2, %v2006_v16  ;;  %v2007_v22 = vpack.c.bf16 %v1169_v18, %v1169_v18  ;;  %v2165_v24 = vpop.f32.mrb[20].mxu1  ;;  %1604 = vst.msk [vmem:[%s2425_s29 + $0x4c] sm:$0xf] %vm1584_vm2, %v1961_v19  ;;  %v810_v25 = vadd.f32 %v2117_v23, %v2412_v52  ;;  %v801_v27 = vpop.f32.mrb[21].mxu0 }
 0x10f   : > { %1652 = vst.msk [vmem:[%s2425_s29 + $0x10c] sm:$0xf] %vm1584_vm2, %v2009_v20  ;;  %v1002_v26 = vadd.f32 %v2165_v24, %v2412_v52  ;;  %v993_v28 = vpop.f32.mrb[21].mxu1  ;;  %1602 = vst.msk [vmem:[%s2425_s29 + $0x44] sm:$0xf] %vm1584_vm2, %v1959_v21  ;;  %v802_v29 = vadd.f32 %v2412_v52, %v801_v27  ;;  %v2118_v31 = vpop.f32.mrb[22].mxu0 }
 0x110   : > { %1650 = vst.msk [vmem:[%s2425_s29 + $0x104] sm:$0xf] %vm1584_vm2, %v2007_v22  ;;  %v994_v30 = vadd.f32 %v2412_v52, %v993_v28  ;;  %v2166_v32 = vpop.f32.mrb[22].mxu1  ;;  %v1126_v33 = vmax.f32 %v810_v25, 0.0  ;;  %v813_v35 = vadd.f32 %v2118_v31, %v2412_v52  ;;  %v804_v37 = vpop.f32.mrb[23].mxu0 }
 0x111   : > { %v1174_v34 = vmax.f32 %v1002_v26, 0.0  ;;  %v1005_v36 = vadd.f32 %v2166_v32, %v2412_v52  ;;  %v996_v38 = vpop.f32.mrb[23].mxu1  ;;  %v1124_v39 = vmax.f32 %v802_v29, 0.0  ;;  %v805_v41 = vadd.f32 %v2412_v52, %v804_v37 }
 0x112   : > { %v1172_v40 = vmax.f32 %v994_v30, 0.0  ;;  %v997_v42 = vadd.f32 %v2412_v52, %v996_v38  ;;  %v1964_v43 = vpack.c.bf16 %v1126_v33, %v1126_v33  ;;  %v1127_v45 = vmax.f32 %v813_v35, 0.0 }
 0x113   : > { %v2012_v44 = vpack.c.bf16 %v1174_v34, %v1174_v34  ;;  %v1175_v46 = vmax.f32 %v1005_v36, 0.0  ;;  %v1962_v47 = vpack.c.bf16 %v1124_v39, %v1124_v39  ;;  %v1125_v49 = vmax.f32 %v805_v41, 0.0 }
 0x114   : > { %v2010_v48 = vpack.c.bf16 %v1172_v40, %v1172_v40  ;;  %v1173_v50 = vmax.f32 %v997_v42, 0.0  ;;  %1607 = vst.msk [vmem:[%s2425_s29 + $0x58] sm:$0xf] %vm1584_vm2, %v1964_v43  ;;  %v1965_v51 = vpack.c.bf16 %v1127_v45, %v1127_v45 }
 0x115   : > { %1655 = vst.msk [vmem:[%s2425_s29 + $0x118] sm:$0xf] %vm1584_vm2, %v2012_v44  ;;  %v2013_v53 = vpack.c.bf16 %v1175_v46, %v1175_v46  ;;  %1605 = vst.msk [vmem:[%s2425_s29 + $0x50] sm:$0xf] %vm1584_vm2, %v1962_v47  ;;  %v1963_v54 = vpack.c.bf16 %v1125_v49, %v1125_v49  ;;  %v2121_v56 = vpop.f32.mrb[24].mxu0 }
 0x116   : > { %1653 = vst.msk [vmem:[%s2425_s29 + $0x110] sm:$0xf] %vm1584_vm2, %v2010_v48  ;;  %v2011_v55 = vpack.c.bf16 %v1173_v50, %v1173_v50  ;;  %v2169_v57 = vpop.f32.mrb[24].mxu1  ;;  %1608 = vst.msk [vmem:[%s2425_s29 + $0x5c] sm:$0xf] %vm1584_vm2, %v1965_v51  ;;  %v826_v58 = vadd.f32 %v2121_v56, %v2412_v52  ;;  %v817_v60 = vpop.f32.mrb[25].mxu0 }
 0x117   : > { %1656 = vst.msk [vmem:[%s2425_s29 + $0x11c] sm:$0xf] %vm1584_vm2, %v2013_v53  ;;  %v1018_v59 = vadd.f32 %v2169_v57, %v2412_v52  ;;  %v1009_v61 = vpop.f32.mrb[25].mxu1  ;;  %1606 = vst.msk [vmem:[%s2425_s29 + $0x54] sm:$0xf] %vm1584_vm2, %v1963_v54  ;;  %v818_v62 = vadd.f32 %v2412_v52, %v817_v60  ;;  %v2122_v0 = vpop.f32.mrb[26].mxu0 }
 0x118   : > { %1654 = vst.msk [vmem:[%s2425_s29 + $0x114] sm:$0xf] %vm1584_vm2, %v2011_v55  ;;  %v1010_v63 = vadd.f32 %v2412_v52, %v1009_v61  ;;  %v2170_v1 = vpop.f32.mrb[26].mxu1  ;;  %v1130_v2 = vmax.f32 %v826_v58, 0.0  ;;  %v829_v4 = vadd.f32 %v2122_v0, %v2412_v52  ;;  %v820_v6 = vpop.f32.mrb[27].mxu0 }
 0x119   : > { %v1178_v3 = vmax.f32 %v1018_v59, 0.0  ;;  %v1021_v5 = vadd.f32 %v2170_v1, %v2412_v52  ;;  %v1012_v7 = vpop.f32.mrb[27].mxu1  ;;  %v1128_v8 = vmax.f32 %v818_v62, 0.0  ;;  %v821_v10 = vadd.f32 %v2412_v52, %v820_v6 }
 0x11a   : > { %v1176_v9 = vmax.f32 %v1010_v63, 0.0  ;;  %v1013_v11 = vadd.f32 %v2412_v52, %v1012_v7  ;;  %v1968_v12 = vpack.c.bf16 %v1130_v2, %v1130_v2  ;;  %v1131_v14 = vmax.f32 %v829_v4, 0.0 }
 0x11b   : > { %v2016_v13 = vpack.c.bf16 %v1178_v3, %v1178_v3  ;;  %v1179_v15 = vmax.f32 %v1021_v5, 0.0  ;;  %v1966_v16 = vpack.c.bf16 %v1128_v8, %v1128_v8  ;;  %v1129_v18 = vmax.f32 %v821_v10, 0.0 }
 0x11c   : > { %v2014_v17 = vpack.c.bf16 %v1176_v9, %v1176_v9  ;;  %v1177_v19 = vmax.f32 %v1013_v11, 0.0  ;;  %1611 = vst.msk [vmem:[%s2425_s29 + $0x68] sm:$0xf] %vm1584_vm2, %v1968_v12  ;;  %v1969_v20 = vpack.c.bf16 %v1131_v14, %v1131_v14 }
 0x11d   : > { %1659 = vst.msk [vmem:[%s2425_s29 + $0x128] sm:$0xf] %vm1584_vm2, %v2016_v13  ;;  %v2017_v21 = vpack.c.bf16 %v1179_v15, %v1179_v15  ;;  %1609 = vst.msk [vmem:[%s2425_s29 + $0x60] sm:$0xf] %vm1584_vm2, %v1966_v16  ;;  %v1967_v22 = vpack.c.bf16 %v1129_v18, %v1129_v18  ;;  %v2125_v24 = vpop.f32.mrb[28].mxu0 }
 0x11e   : > { %1657 = vst.msk [vmem:[%s2425_s29 + $0x120] sm:$0xf] %vm1584_vm2, %v2014_v17  ;;  %v2015_v23 = vpack.c.bf16 %v1177_v19, %v1177_v19  ;;  %v2173_v25 = vpop.f32.mrb[28].mxu1  ;;  %1612 = vst.msk [vmem:[%s2425_s29 + $0x6c] sm:$0xf] %vm1584_vm2, %v1969_v20  ;;  %v842_v26 = vadd.f32 %v2125_v24, %v2412_v52  ;;  %v833_v28 = vpop.f32.mrb[29].mxu0 }
 0x11f   : > { %1660 = vst.msk [vmem:[%s2425_s29 + $0x12c] sm:$0xf] %vm1584_vm2, %v2017_v21  ;;  %v1034_v27 = vadd.f32 %v2173_v25, %v2412_v52  ;;  %v1025_v29 = vpop.f32.mrb[29].mxu1  ;;  %1610 = vst.msk [vmem:[%s2425_s29 + $0x64] sm:$0xf] %vm1584_vm2, %v1967_v22  ;;  %v834_v30 = vadd.f32 %v2412_v52, %v833_v28  ;;  %v2126_v32 = vpop.f32.mrb[30].mxu0 }
 0x120   : > { %1658 = vst.msk [vmem:[%s2425_s29 + $0x124] sm:$0xf] %vm1584_vm2, %v2015_v23  ;;  %v1026_v31 = vadd.f32 %v2412_v52, %v1025_v29  ;;  %v2174_v33 = vpop.f32.mrb[30].mxu1  ;;  %v1134_v34 = vmax.f32 %v842_v26, 0.0  ;;  %v845_v36 = vadd.f32 %v2126_v32, %v2412_v52  ;;  %v836_v38 = vpop.f32.mrb[31].mxu0 }
 0x121   : > { %v1182_v35 = vmax.f32 %v1034_v27, 0.0  ;;  %v1037_v37 = vadd.f32 %v2174_v33, %v2412_v52  ;;  %v1028_v39 = vpop.f32.mrb[31].mxu1  ;;  %v1132_v40 = vmax.f32 %v834_v30, 0.0  ;;  %v837_v42 = vadd.f32 %v2412_v52, %v836_v38 }
 0x122   : > { %v1180_v41 = vmax.f32 %v1026_v31, 0.0  ;;  %v1029_v43 = vadd.f32 %v2412_v52, %v1028_v39  ;;  %v1972_v44 = vpack.c.bf16 %v1134_v34, %v1134_v34  ;;  %v1135_v46 = vmax.f32 %v845_v36, 0.0 }
 0x123   : > { %v2020_v45 = vpack.c.bf16 %v1182_v35, %v1182_v35  ;;  %v1183_v47 = vmax.f32 %v1037_v37, 0.0  ;;  %v1970_v48 = vpack.c.bf16 %v1132_v40, %v1132_v40  ;;  %v1133_v50 = vmax.f32 %v837_v42, 0.0 }
 0x124   : > { %v2018_v49 = vpack.c.bf16 %v1180_v41, %v1180_v41  ;;  %v1181_v51 = vmax.f32 %v1029_v43, 0.0  ;;  %1615 = vst.msk [vmem:[%s2425_s29 + $0x78] sm:$0xf] %vm1584_vm2, %v1972_v44  ;;  %v1973_v53 = vpack.c.bf16 %v1135_v46, %v1135_v46 }
 0x125   : > { %1663 = vst.msk [vmem:[%s2425_s29 + $0x138] sm:$0xf] %vm1584_vm2, %v2020_v45  ;;  %v2021_v54 = vpack.c.bf16 %v1183_v47, %v1183_v47  ;;  %1613 = vst.msk [vmem:[%s2425_s29 + $0x70] sm:$0xf] %vm1584_vm2, %v1970_v48  ;;  %v1971_v55 = vpack.c.bf16 %v1133_v50, %v1133_v50  ;;  %v2129_v57 = vpop.f32.mrb[32].mxu0 }
 0x126   : > { %1661 = vst.msk [vmem:[%s2425_s29 + $0x130] sm:$0xf] %vm1584_vm2, %v2018_v49  ;;  %v2019_v56 = vpack.c.bf16 %v1181_v51, %v1181_v51  ;;  %v2177_v58 = vpop.f32.mrb[32].mxu1  ;;  %1616 = vst.msk [vmem:[%s2425_s29 + $0x7c] sm:$0xf] %vm1584_vm2, %v1973_v53  ;;  %v858_v59 = vadd.f32 %v2129_v57, %v2412_v52  ;;  %v849_v61 = vpop.f32.mrb[33].mxu0 }
 0x127   : > { %1664 = vst.msk [vmem:[%s2425_s29 + $0x13c] sm:$0xf] %vm1584_vm2, %v2021_v54  ;;  %v1050_v60 = vadd.f32 %v2177_v58, %v2412_v52  ;;  %v1041_v62 = vpop.f32.mrb[33].mxu1  ;;  %1614 = vst.msk [vmem:[%s2425_s29 + $0x74] sm:$0xf] %vm1584_vm2, %v1971_v55  ;;  %v850_v63 = vadd.f32 %v2412_v52, %v849_v61  ;;  %v2130_v1 = vpop.f32.mrb[34].mxu0 }
 0x128   : > { %1662 = vst.msk [vmem:[%s2425_s29 + $0x134] sm:$0xf] %vm1584_vm2, %v2019_v56  ;;  %v1042_v0 = vadd.f32 %v2412_v52, %v1041_v62  ;;  %v2178_v2 = vpop.f32.mrb[34].mxu1  ;;  %v1138_v3 = vmax.f32 %v858_v59, 0.0  ;;  %v861_v5 = vadd.f32 %v2130_v1, %v2412_v52  ;;  %v852_v7 = vpop.f32.mrb[35].mxu0 }
 0x129   : > { %v1186_v4 = vmax.f32 %v1050_v60, 0.0  ;;  %v1053_v6 = vadd.f32 %v2178_v2, %v2412_v52  ;;  %v1044_v8 = vpop.f32.mrb[35].mxu1  ;;  %v1136_v9 = vmax.f32 %v850_v63, 0.0  ;;  %v853_v11 = vadd.f32 %v2412_v52, %v852_v7 }
 0x12a   : > { %v1184_v10 = vmax.f32 %v1042_v0, 0.0  ;;  %v1045_v12 = vadd.f32 %v2412_v52, %v1044_v8  ;;  %v1976_v13 = vpack.c.bf16 %v1138_v3, %v1138_v3  ;;  %v1139_v15 = vmax.f32 %v861_v5, 0.0 }
 0x12b   : > { %v2024_v14 = vpack.c.bf16 %v1186_v4, %v1186_v4  ;;  %v1187_v16 = vmax.f32 %v1053_v6, 0.0  ;;  %v1974_v17 = vpack.c.bf16 %v1136_v9, %v1136_v9  ;;  %v1137_v19 = vmax.f32 %v853_v11, 0.0 }
 0x12c   : > { %v2022_v18 = vpack.c.bf16 %v1184_v10, %v1184_v10  ;;  %v1185_v20 = vmax.f32 %v1045_v12, 0.0  ;;  %1619 = vst.msk [vmem:[%s2425_s29 + $0x88] sm:$0xf] %vm1584_vm2, %v1976_v13  ;;  %v1977_v21 = vpack.c.bf16 %v1139_v15, %v1139_v15 }
 0x12d   : > { %1667 = vst.msk [vmem:[%s2425_s29 + $0x148] sm:$0xf] %vm1584_vm2, %v2024_v14  ;;  %v2025_v22 = vpack.c.bf16 %v1187_v16, %v1187_v16  ;;  %1617 = vst.msk [vmem:[%s2425_s29 + $0x80] sm:$0xf] %vm1584_vm2, %v1974_v17  ;;  %v1975_v23 = vpack.c.bf16 %v1137_v19, %v1137_v19  ;;  %v2133_v25 = vpop.f32.mrb[36].mxu0 }
 0x12e   : > { %1665 = vst.msk [vmem:[%s2425_s29 + $0x140] sm:$0xf] %vm1584_vm2, %v2022_v18  ;;  %v2023_v24 = vpack.c.bf16 %v1185_v20, %v1185_v20  ;;  %v2181_v26 = vpop.f32.mrb[36].mxu1  ;;  %1620 = vst.msk [vmem:[%s2425_s29 + $0x8c] sm:$0xf] %vm1584_vm2, %v1977_v21  ;;  %v874_v27 = vadd.f32 %v2133_v25, %v2412_v52  ;;  %v865_v29 = vpop.f32.mrb[37].mxu0 }
 0x12f   : > { %1668 = vst.msk [vmem:[%s2425_s29 + $0x14c] sm:$0xf] %vm1584_vm2, %v2025_v22  ;;  %v1066_v28 = vadd.f32 %v2181_v26, %v2412_v52  ;;  %v1057_v30 = vpop.f32.mrb[37].mxu1  ;;  %1618 = vst.msk [vmem:[%s2425_s29 + $0x84] sm:$0xf] %vm1584_vm2, %v1975_v23  ;;  %v866_v31 = vadd.f32 %v2412_v52, %v865_v29  ;;  %v2134_v33 = vpop.f32.mrb[38].mxu0 }
 0x130   : > { %1666 = vst.msk [vmem:[%s2425_s29 + $0x144] sm:$0xf] %vm1584_vm2, %v2023_v24  ;;  %v1058_v32 = vadd.f32 %v2412_v52, %v1057_v30  ;;  %v2182_v34 = vpop.f32.mrb[38].mxu1  ;;  %v1142_v35 = vmax.f32 %v874_v27, 0.0  ;;  %v877_v37 = vadd.f32 %v2134_v33, %v2412_v52  ;;  %v868_v39 = vpop.f32.mrb[39].mxu0 }
 0x131   : > { %v1190_v36 = vmax.f32 %v1066_v28, 0.0  ;;  %v1069_v38 = vadd.f32 %v2182_v34, %v2412_v52  ;;  %v1060_v40 = vpop.f32.mrb[39].mxu1  ;;  %v1140_v41 = vmax.f32 %v866_v31, 0.0  ;;  %v869_v43 = vadd.f32 %v2412_v52, %v868_v39 }
 0x132   : > { %v1188_v42 = vmax.f32 %v1058_v32, 0.0  ;;  %v1061_v44 = vadd.f32 %v2412_v52, %v1060_v40  ;;  %v1980_v45 = vpack.c.bf16 %v1142_v35, %v1142_v35  ;;  %v1143_v47 = vmax.f32 %v877_v37, 0.0 }
 0x133   : > { %v2028_v46 = vpack.c.bf16 %v1190_v36, %v1190_v36  ;;  %v1191_v48 = vmax.f32 %v1069_v38, 0.0  ;;  %v1978_v49 = vpack.c.bf16 %v1140_v41, %v1140_v41  ;;  %v1141_v51 = vmax.f32 %v869_v43, 0.0 }
 0x134   : > { %v2026_v50 = vpack.c.bf16 %v1188_v42, %v1188_v42  ;;  %v1189_v53 = vmax.f32 %v1061_v44, 0.0  ;;  %1623 = vst.msk [vmem:[%s2425_s29 + $0x98] sm:$0xf] %vm1584_vm2, %v1980_v45  ;;  %v1981_v54 = vpack.c.bf16 %v1143_v47, %v1143_v47 }
 0x135   : > { %1671 = vst.msk [vmem:[%s2425_s29 + $0x158] sm:$0xf] %vm1584_vm2, %v2028_v46  ;;  %v2029_v55 = vpack.c.bf16 %v1191_v48, %v1191_v48  ;;  %1621 = vst.msk [vmem:[%s2425_s29 + $0x90] sm:$0xf] %vm1584_vm2, %v1978_v49  ;;  %v1979_v56 = vpack.c.bf16 %v1141_v51, %v1141_v51  ;;  %v2137_v58 = vpop.f32.mrb[40].mxu0 }
 0x136   : > { %1669 = vst.msk [vmem:[%s2425_s29 + $0x150] sm:$0xf] %vm1584_vm2, %v2026_v50  ;;  %v2027_v57 = vpack.c.bf16 %v1189_v53, %v1189_v53  ;;  %v2185_v59 = vpop.f32.mrb[40].mxu1  ;;  %1624 = vst.msk [vmem:[%s2425_s29 + $0x9c] sm:$0xf] %vm1584_vm2, %v1981_v54  ;;  %v890_v60 = vadd.f32 %v2137_v58, %v2412_v52  ;;  %v881_v62 = vpop.f32.mrb[41].mxu0 }
 0x137   : > { %1672 = vst.msk [vmem:[%s2425_s29 + $0x15c] sm:$0xf] %vm1584_vm2, %v2029_v55  ;;  %v1082_v61 = vadd.f32 %v2185_v59, %v2412_v52  ;;  %v1073_v63 = vpop.f32.mrb[41].mxu1  ;;  %1622 = vst.msk [vmem:[%s2425_s29 + $0x94] sm:$0xf] %vm1584_vm2, %v1979_v56  ;;  %v882_v0 = vadd.f32 %v2412_v52, %v881_v62  ;;  %v2138_v2 = vpop.f32.mrb[42].mxu0 }
 0x138   : > { %1670 = vst.msk [vmem:[%s2425_s29 + $0x154] sm:$0xf] %vm1584_vm2, %v2027_v57  ;;  %v1074_v1 = vadd.f32 %v2412_v52, %v1073_v63  ;;  %v2186_v3 = vpop.f32.mrb[42].mxu1  ;;  %v1146_v4 = vmax.f32 %v890_v60, 0.0  ;;  %v893_v6 = vadd.f32 %v2138_v2, %v2412_v52  ;;  %v884_v8 = vpop.f32.mrb[43].mxu0 }
 0x139   : > { %v1194_v5 = vmax.f32 %v1082_v61, 0.0  ;;  %v1085_v7 = vadd.f32 %v2186_v3, %v2412_v52  ;;  %v1076_v9 = vpop.f32.mrb[43].mxu1  ;;  %v1144_v10 = vmax.f32 %v882_v0, 0.0  ;;  %v885_v12 = vadd.f32 %v2412_v52, %v884_v8 }
 0x13a   : > { %v1192_v11 = vmax.f32 %v1074_v1, 0.0  ;;  %v1077_v13 = vadd.f32 %v2412_v52, %v1076_v9  ;;  %v1984_v14 = vpack.c.bf16 %v1146_v4, %v1146_v4  ;;  %v1147_v16 = vmax.f32 %v893_v6, 0.0 }
 0x13b   : > { %v2032_v15 = vpack.c.bf16 %v1194_v5, %v1194_v5  ;;  %v1195_v17 = vmax.f32 %v1085_v7, 0.0  ;;  %v1982_v18 = vpack.c.bf16 %v1144_v10, %v1144_v10  ;;  %v1145_v20 = vmax.f32 %v885_v12, 0.0 }
 0x13c   : > { %v2030_v19 = vpack.c.bf16 %v1192_v11, %v1192_v11  ;;  %v1193_v21 = vmax.f32 %v1077_v13, 0.0  ;;  %1627 = vst.msk [vmem:[%s2425_s29 + $0xa8] sm:$0xf] %vm1584_vm2, %v1984_v14  ;;  %v1985_v22 = vpack.c.bf16 %v1147_v16, %v1147_v16 }
 0x13d   : > { %1675 = vst.msk [vmem:[%s2425_s29 + $0x168] sm:$0xf] %vm1584_vm2, %v2032_v15  ;;  %v2033_v23 = vpack.c.bf16 %v1195_v17, %v1195_v17  ;;  %1625 = vst.msk [vmem:[%s2425_s29 + $0xa0] sm:$0xf] %vm1584_vm2, %v1982_v18  ;;  %v1983_v24 = vpack.c.bf16 %v1145_v20, %v1145_v20  ;;  %v2141_v26 = vpop.f32.mrb[44].mxu0 }
 0x13e   : > { %1673 = vst.msk [vmem:[%s2425_s29 + $0x160] sm:$0xf] %vm1584_vm2, %v2030_v19  ;;  %v2031_v25 = vpack.c.bf16 %v1193_v21, %v1193_v21  ;;  %v2189_v27 = vpop.f32.mrb[44].mxu1  ;;  %1628 = vst.msk [vmem:[%s2425_s29 + $0xac] sm:$0xf] %vm1584_vm2, %v1985_v22  ;;  %v906_v28 = vadd.f32 %v2141_v26, %v2412_v52  ;;  %v897_v30 = vpop.f32.mrb[45].mxu0 }
 0x13f   : > { %1676 = vst.msk [vmem:[%s2425_s29 + $0x16c] sm:$0xf] %vm1584_vm2, %v2033_v23  ;;  %v1098_v29 = vadd.f32 %v2189_v27, %v2412_v52  ;;  %v1089_v31 = vpop.f32.mrb[45].mxu1  ;;  %1626 = vst.msk [vmem:[%s2425_s29 + $0xa4] sm:$0xf] %vm1584_vm2, %v1983_v24  ;;  %v898_v32 = vadd.f32 %v2412_v52, %v897_v30  ;;  %v2142_v34 = vpop.f32.mrb[46].mxu0 }
 0x140   : > { %1674 = vst.msk [vmem:[%s2425_s29 + $0x164] sm:$0xf] %vm1584_vm2, %v2031_v25  ;;  %v1090_v33 = vadd.f32 %v2412_v52, %v1089_v31  ;;  %v2190_v35 = vpop.f32.mrb[46].mxu1  ;;  %v1150_v36 = vmax.f32 %v906_v28, 0.0  ;;  %v909_v38 = vadd.f32 %v2142_v34, %v2412_v52  ;;  %v900_v40 = vpop.f32.mrb[47].mxu0 }
 0x141   : > { %v1198_v37 = vmax.f32 %v1098_v29, 0.0  ;;  %v1101_v39 = vadd.f32 %v2190_v35, %v2412_v52  ;;  %v1092_v41 = vpop.f32.mrb[47].mxu1  ;;  %v1148_v42 = vmax.f32 %v898_v32, 0.0  ;;  %v901_v44 = vadd.f32 %v2412_v52, %v900_v40 }
 0x142   : > { %v1196_v43 = vmax.f32 %v1090_v33, 0.0  ;;  %v1093_v45 = vadd.f32 %v2412_v52, %v1092_v41  ;;  %v1988_v46 = vpack.c.bf16 %v1150_v36, %v1150_v36  ;;  %v1151_v48 = vmax.f32 %v909_v38, 0.0 }
 0x143   : > { %v2036_v47 = vpack.c.bf16 %v1198_v37, %v1198_v37  ;;  %v1199_v49 = vmax.f32 %v1101_v39, 0.0  ;;  %v1986_v50 = vpack.c.bf16 %v1148_v42, %v1148_v42  ;;  %v1149_v53 = vmax.f32 %v901_v44, 0.0 }
 0x144   : > { %v2034_v51 = vpack.c.bf16 %v1196_v43, %v1196_v43  ;;  %v1197_v54 = vmax.f32 %v1093_v45, 0.0  ;;  %1631 = vst.msk [vmem:[%s2425_s29 + $0xb8] sm:$0xf] %vm1584_vm2, %v1988_v46  ;;  %v1989_v55 = vpack.c.bf16 %v1151_v48, %v1151_v48 }
 0x145   : > { %1679 = vst.msk [vmem:[%s2425_s29 + $0x178] sm:$0xf] %vm1584_vm2, %v2036_v47  ;;  %v2037_v56 = vpack.c.bf16 %v1199_v49, %v1199_v49  ;;  %1629 = vst.msk [vmem:[%s2425_s29 + $0xb0] sm:$0xf] %vm1584_vm2, %v1986_v50  ;;  %v1987_v52 = vpack.c.bf16 %v1149_v53, %v1149_v53 }
 0x146   : > { %1677 = vst.msk [vmem:[%s2425_s29 + $0x170] sm:$0xf] %vm1584_vm2, %v2034_v51  ;;  %v2035_v57 = vpack.c.bf16 %v1197_v54, %v1197_v54  ;;  %1632 = vst.msk [vmem:[%s2425_s29 + $0xbc] sm:$0xf] %vm1584_vm2, %v1989_v55 }
 0x147   : > { %1680 = vst.msk [vmem:[%s2425_s29 + $0x17c] sm:$0xf] %vm1584_vm2, %v2037_v56  ;;  %1630 = vst.msk [vmem:[%s2425_s29 + $0xb4] sm:$0xf] %vm1584_vm2, %v1987_v52 }
 0x148   : > { %1678 = vst.msk [vmem:[%s2425_s29 + $0x174] sm:$0xf] %vm1584_vm2, %v2035_v57 }
 0x149 PF: > { %s13_s12 = sadd.s32 1, %s2264_s12  }
 0x14a   : > { %p10_p4 = scmp.ge.s32.totalorder %s13_s12, 4  }
 0x14c   :  { %12 = sbr.rel (!%p10_p4) target bundleno = 1 (0x1), region = 62 }

// kernel: rot_invar_siamese_forward.10
= control target key start
LH: loop header
LB: loop body
LE: loop exit
PB: predicated region body
PF: predicated region fallthrough
CT: control target
= control target key end

     0   :  { %s876_s12 = smov 0   ;;  %s1020_s0 = inlined_call_operand.vmem [shape: bf16[384,72], index: 0, kind: input, shape index: {}]   ;;  %s1021_s1 = inlined_call_operand.vmem [shape: bf16[72,16], index: 1, kind: input, shape index: {}]   ;;  %s1022_s2 = inlined_call_operand.vmem [shape: f32[1,16], index: 2, kind: input, shape index: {}]   ;;  %s1023_s3 = inlined_call_operand.vmem [shape: bf16[384,16], index: 3, kind: output, shape index: {}]  }
   0x1 LB: > { %s673_s13 = sadd.s32 4294967295, %s854_s12   ;;  %p677_p0 = scmp.ge.s32.totalorder %s854_s12, 1  ;;  %s854_s12 = sphi %s876_s12, %s13_s12  }
   0x2   : > { %p138_p1 = scmp.lt.s32.totalorder %s854_s12, 3 }
   0x4   : > { %p139_p2 = pnand %p677_p0, %p138_p1 }
   0x5   : > { %v831_v0 = vld [vmem:[%s1021_s1] sm:$0xff] (!%p139_p2)   ;;  %v832_v1 = vld [vmem:[%s1021_s1 + $0x8] sm:$0xff] (!%p139_p2)   ;;  %s162_s18 = smul.u32 (!%p139_p2), 24, %s673_s13  ;;  %v833_v2 = vld [vmem:[%s1021_s1 + $0x10] sm:$0xff] (!%p139_p2)   ;;  %vm302_vm0 = vcmask (!%p139_p2), 588800   ;;  %vm339_vm1 = vcmask (!%p139_p2), 1043456  }
   0x6   : > { %142 = sbr.rel (%p139_p2) target bundleno = 264 (0x108), region = 32  ;;  %777 = vmatprep.subr.bf16.mxu0 (!%p139_p2), %v831_v0  ;;  %811 = vmatprep.subr.bf16.mxu1 (!%p139_p2), %v831_v0  ;;  %v834_v3 = vld [vmem:[%s1021_s1 + $0x18] sm:$0xff] (!%p139_p2)   ;;  %v835_v6 = vld [vmem:[%s1021_s1 + $0x20] ss:$0 sps:$4 sm:$0xff] (!%p139_p2)   ;;  %vm592_vm2 = vcmask (!%p139_p2), 125952  }
   0x7   : > { %778 = vmatpush3.bf16.msra.mxu0 (!%p139_p2), %v831_v0  ;;  %816 = vmatpush3.bf16.msra.mxu1 (!%p139_p2), %v831_v0  ;;  %p163_p3 = scmp.lt.s32.totalorder (!%p139_p2), %s162_s18, 47  ;;  %v341_v7 = vsel (!%p139_p2), %vm339_vm1, %v835_v6, 0  ;;  %v936_v18 = vld [vmem:[%s1022_s2] ss:$0 sm:$0xff] (!%p139_p2) }
   0x8   : > { %779 = vmatprep.subr.bf16.mxu0 (!%p139_p2), %v832_v1  ;;  %812 = vmatprep.subr.bf16.mxu1 (!%p139_p2), %v832_v1 }
   0xb   : > { %780 = vmatpush3.bf16.msra.mxu0 (!%p139_p2), %v832_v1  ;;  %817 = vmatpush3.bf16.msra.mxu1 (!%p139_p2), %v832_v1 }
   0xc   : > { %781 = vmatprep.subr.bf16.mxu0 (!%p139_p2), %v833_v2  ;;  %813 = vmatprep.subr.bf16.mxu1 (!%p139_p2), %v833_v2 }
   0xd   : > { %s1025_s18 = smov (!%p163_p3, %s162_s18), 47 }
   0xe   : > { %s678_s21 = sshll.u32 %s1025_s18, 2 }
   0xf   : > { %s904_s26 = scalar_lea.vmem %s1020_s0, %s678_s21  ;;  %782 = vmatpush3.bf16.msra.mxu0 %v833_v2  ;;  %818 = vmatpush3.bf16.msra.mxu1 %v833_v2  ;;  %s949_s6 = scalar_lea.vmem %s1023_s3, %s678_s21 }
  0x10   : > { %v836_v4 = vld [vmem:[%s904_s26] sm:$0xff]   ;;  %v837_v5 = vld [vmem:[%s904_s26 + $0x30] sm:$0xff]   ;;  %783 = vmatprep.subr.bf16.mxu0 %v834_v3  ;;  %814 = vmatprep.subr.bf16.mxu1 %v834_v3  ;;  %v838_v8 = vld [vmem:[%s904_s26 + $0x8] sm:$0xff]  }
  0x11   : > { %787 = vmatprep.mubr.msk.bf16.mxu0 %vm302_vm0, %v836_v4  ;;  %799 = vmatprep.mubr.msk.bf16.mxu1 %vm302_vm0, %v837_v5  ;;  %v839_v9 = vld [vmem:[%s904_s26 + $0x38] sm:$0xff]   ;;  %v840_v10 = vld [vmem:[%s904_s26 + $0x10] sm:$0xff]   ;;  %v841_v11 = vld [vmem:[%s904_s26 + $0x40] sm:$0xff]  }
  0x12   : > { %v842_v12 = vld [vmem:[%s904_s26 + $0x18] sm:$0xff]   ;;  %v843_v13 = vld [vmem:[%s904_s26 + $0x48] sm:$0xff]   ;;  %v844_v14 = vld [vmem:[%s904_s26 + $0x20] sm:$0xff]  }
  0x13   : > { %784 = vmatpush3.bf16.msra.mxu0 %v834_v3  ;;  %819 = vmatpush3.bf16.msra.mxu1 %v834_v3  ;;  %v845_v15 = vld [vmem:[%s904_s26 + $0x50] sm:$0xff]   ;;  %v846_v16 = vld [vmem:[%s904_s26 + $0x28] sm:$0xff]   ;;  %v847_v17 = vld [vmem:[%s904_s26 + $0x58] sm:$0xff]  }
  0x14   : > { %821 = vmatprep.subr.msk.bf16.mxu0 %vm339_vm1, %v835_v6  ;;  %822 = vmatprep.subr.msk.bf16.mxu1 %vm339_vm1, %v835_v6 }
  0x17   : > { %786 = vmatpush3.bf16.msra.mxu0 %v341_v7  ;;  %820 = vmatpush3.bf16.msra.mxu1 %v341_v7 }
  0x1a   : > { %788 = vmatmul.mubr.msk.bf16.vlgmr.msra.gmra.mrb[0].mxu0 %vm302_vm0, %v838_v8  ;;  %800 = vmatmul.mubr.msk.bf16.vlgmr.msra.gmra.mrb[0].mxu1 %vm302_vm0, %v839_v9 }
  0x1b   : > { %791 = vmatprep.mubr.msk.bf16.mxu0 %vm302_vm0, %v840_v10  ;;  %803 = vmatprep.mubr.msk.bf16.mxu1 %vm302_vm0, %v841_v11 }
  0x22   : > { %792 = vmatmul.mubr.msk.bf16.gmra.mrb[4].mxu0 %vm302_vm0, %v842_v12  ;;  %804 = vmatmul.mubr.msk.bf16.gmra.mrb[4].mxu1 %vm302_vm0, %v843_v13 }
  0x23   : > { %795 = vmatprep.mubr.msk.bf16.mxu0 %vm302_vm0, %v844_v14  ;;  %807 = vmatprep.mubr.msk.bf16.mxu1 %vm302_vm0, %v845_v15 }
  0x2a   : > { %796 = vmatmul.mubr.msk.bf16.gmra.mrb[8].mxu0 %vm302_vm0, %v846_v16  ;;  %808 = vmatmul.mubr.msk.bf16.gmra.mrb[8].mxu1 %vm302_vm0, %v847_v17 }
  0xed   : > { %v789_v19 = vpop.f32.mrb[0].mxu0  ;;  %v801_v20 = vpop.f32.mrb[0].mxu1 }
  0xee   : > { %v386_v21 = vadd.f32 %v789_v19, %v936_v18  ;;  %v434_v22 = vadd.f32 %v801_v20, %v936_v18  ;;  %v377_v23 = vpop.f32.mrb[1].mxu0  ;;  %v425_v24 = vpop.f32.mrb[1].mxu1 }
  0xef   : > { %v378_v25 = vadd.f32 %v936_v18, %v377_v23  ;;  %v426_v26 = vadd.f32 %v936_v18, %v425_v24  ;;  %v790_v27 = vpop.f32.mrb[2].mxu0  ;;  %v802_v28 = vpop.f32.mrb[2].mxu1 }
  0xf0   : > { %v474_v29 = vmax.f32 %v386_v21, 0.0  ;;  %v486_v30 = vmax.f32 %v434_v22, 0.0  ;;  %v389_v31 = vadd.f32 %v790_v27, %v936_v18  ;;  %v437_v32 = vadd.f32 %v802_v28, %v936_v18  ;;  %v380_v33 = vpop.f32.mrb[3].mxu0  ;;  %v428_v34 = vpop.f32.mrb[3].mxu1 }
  0xf1   : > { %v472_v35 = vmax.f32 %v378_v25, 0.0  ;;  %v484_v36 = vmax.f32 %v426_v26, 0.0  ;;  %v381_v37 = vadd.f32 %v936_v18, %v380_v33  ;;  %v429_v38 = vadd.f32 %v936_v18, %v428_v34 }
  0xf2   : > { %v738_v39 = vpack.c.bf16 %v474_v29, %v474_v29  ;;  %v750_v40 = vpack.c.bf16 %v486_v30, %v486_v30  ;;  %v475_v41 = vmax.f32 %v389_v31, 0.0  ;;  %v487_v42 = vmax.f32 %v437_v32, 0.0 }
  0xf3   : > { %v736_v43 = vpack.c.bf16 %v472_v35, %v472_v35  ;;  %v748_v44 = vpack.c.bf16 %v484_v36, %v484_v36  ;;  %v473_v45 = vmax.f32 %v381_v37, 0.0  ;;  %v485_v46 = vmax.f32 %v429_v38, 0.0 }
  0xf4   : > { %595 = vst.msk [vmem:[%s949_s6 + $0x8] sm:$0xf] %vm592_vm2, %v738_v39  ;;  %607 = vst.msk [vmem:[%s949_s6 + $0x38] sm:$0xf] %vm592_vm2, %v750_v40  ;;  %v739_v47 = vpack.c.bf16 %v475_v41, %v475_v41  ;;  %v751_v48 = vpack.c.bf16 %v487_v42, %v487_v42 }
  0xf5   : > { %593 = vst.msk [vmem:[%s949_s6] sm:$0xf] %vm592_vm2, %v736_v43  ;;  %605 = vst.msk [vmem:[%s949_s6 + $0x30] sm:$0xf] %vm592_vm2, %v748_v44  ;;  %v737_v49 = vpack.c.bf16 %v473_v45, %v473_v45  ;;  %v749_v50 = vpack.c.bf16 %v485_v46, %v485_v46  ;;  %v793_v51 = vpop.f32.mrb[4].mxu0  ;;  %v805_v52 = vpop.f32.mrb[4].mxu1 }
  0xf6   : > { %596 = vst.msk [vmem:[%s949_s6 + $0xc] sm:$0xf] %vm592_vm2, %v739_v47  ;;  %608 = vst.msk [vmem:[%s949_s6 + $0x3c] sm:$0xf] %vm592_vm2, %v751_v48  ;;  %v402_v53 = vadd.f32 %v793_v51, %v936_v18  ;;  %v450_v54 = vadd.f32 %v805_v52, %v936_v18  ;;  %v393_v55 = vpop.f32.mrb[5].mxu0  ;;  %v441_v56 = vpop.f32.mrb[5].mxu1 }
  0xf7   : > { %594 = vst.msk [vmem:[%s949_s6 + $0x4] sm:$0xf] %vm592_vm2, %v737_v49  ;;  %606 = vst.msk [vmem:[%s949_s6 + $0x34] sm:$0xf] %vm592_vm2, %v749_v50  ;;  %v394_v57 = vadd.f32 %v936_v18, %v393_v55  ;;  %v442_v58 = vadd.f32 %v936_v18, %v441_v56  ;;  %v794_v59 = vpop.f32.mrb[6].mxu0  ;;  %v806_v60 = vpop.f32.mrb[6].mxu1 }
  0xf8   : > { %v478_v61 = vmax.f32 %v402_v53, 0.0  ;;  %v490_v62 = vmax.f32 %v450_v54, 0.0  ;;  %v405_v63 = vadd.f32 %v794_v59, %v936_v18  ;;  %v453_v0 = vadd.f32 %v806_v60, %v936_v18  ;;  %v396_v1 = vpop.f32.mrb[7].mxu0  ;;  %v444_v2 = vpop.f32.mrb[7].mxu1 }
  0xf9   : > { %v476_v3 = vmax.f32 %v394_v57, 0.0  ;;  %v488_v4 = vmax.f32 %v442_v58, 0.0  ;;  %v397_v5 = vadd.f32 %v936_v18, %v396_v1  ;;  %v445_v6 = vadd.f32 %v936_v18, %v444_v2 }
  0xfa   : > { %v742_v7 = vpack.c.bf16 %v478_v61, %v478_v61  ;;  %v754_v8 = vpack.c.bf16 %v490_v62, %v490_v62  ;;  %v479_v9 = vmax.f32 %v405_v63, 0.0  ;;  %v491_v10 = vmax.f32 %v453_v0, 0.0 }
  0xfb   : > { %v740_v11 = vpack.c.bf16 %v476_v3, %v476_v3  ;;  %v752_v12 = vpack.c.bf16 %v488_v4, %v488_v4  ;;  %v477_v13 = vmax.f32 %v397_v5, 0.0  ;;  %v489_v14 = vmax.f32 %v445_v6, 0.0 }
  0xfc   : > { %599 = vst.msk [vmem:[%s949_s6 + $0x18] sm:$0xf] %vm592_vm2, %v742_v7  ;;  %611 = vst.msk [vmem:[%s949_s6 + $0x48] sm:$0xf] %vm592_vm2, %v754_v8  ;;  %v743_v15 = vpack.c.bf16 %v479_v9, %v479_v9  ;;  %v755_v16 = vpack.c.bf16 %v491_v10, %v491_v10 }
  0xfd   : > { %597 = vst.msk [vmem:[%s949_s6 + $0x10] sm:$0xf] %vm592_vm2, %v740_v11  ;;  %609 = vst.msk [vmem:[%s949_s6 + $0x40] sm:$0xf] %vm592_vm2, %v752_v12  ;;  %v741_v17 = vpack.c.bf16 %v477_v13, %v477_v13  ;;  %v753_v19 = vpack.c.bf16 %v489_v14, %v489_v14  ;;  %v797_v20 = vpop.f32.mrb[8].mxu0  ;;  %v809_v21 = vpop.f32.mrb[8].mxu1 }
  0xfe   : > { %600 = vst.msk [vmem:[%s949_s6 + $0x1c] sm:$0xf] %vm592_vm2, %v743_v15  ;;  %612 = vst.msk [vmem:[%s949_s6 + $0x4c] sm:$0xf] %vm592_vm2, %v755_v16  ;;  %v418_v22 = vadd.f32 %v797_v20, %v936_v18  ;;  %v466_v23 = vadd.f32 %v809_v21, %v936_v18  ;;  %v409_v24 = vpop.f32.mrb[9].mxu0  ;;  %v457_v25 = vpop.f32.mrb[9].mxu1 }
  0xff   : > { %598 = vst.msk [vmem:[%s949_s6 + $0x14] sm:$0xf] %vm592_vm2, %v741_v17  ;;  %610 = vst.msk [vmem:[%s949_s6 + $0x44] sm:$0xf] %vm592_vm2, %v753_v19  ;;  %v410_v26 = vadd.f32 %v936_v18, %v409_v24  ;;  %v458_v27 = vadd.f32 %v936_v18, %v457_v25  ;;  %v798_v28 = vpop.f32.mrb[10].mxu0  ;;  %v810_v29 = vpop.f32.mrb[10].mxu1 }
 0x100   : > { %v482_v30 = vmax.f32 %v418_v22, 0.0  ;;  %v494_v31 = vmax.f32 %v466_v23, 0.0  ;;  %v421_v32 = vadd.f32 %v798_v28, %v936_v18  ;;  %v469_v33 = vadd.f32 %v810_v29, %v936_v18  ;;  %v412_v34 = vpop.f32.mrb[11].mxu0  ;;  %v460_v35 = vpop.f32.mrb[11].mxu1 }
 0x101   : > { %v480_v36 = vmax.f32 %v410_v26, 0.0  ;;  %v492_v37 = vmax.f32 %v458_v27, 0.0  ;;  %v413_v38 = vadd.f32 %v936_v18, %v412_v34  ;;  %v461_v39 = vadd.f32 %v936_v18, %v460_v35 }
 0x102   : > { %v746_v40 = vpack.c.bf16 %v482_v30, %v482_v30  ;;  %v758_v41 = vpack.c.bf16 %v494_v31, %v494_v31  ;;  %v483_v42 = vmax.f32 %v421_v32, 0.0  ;;  %v495_v43 = vmax.f32 %v469_v33, 0.0 }
 0x103   : > { %v744_v44 = vpack.c.bf16 %v480_v36, %v480_v36  ;;  %v756_v45 = vpack.c.bf16 %v492_v37, %v492_v37  ;;  %v481_v46 = vmax.f32 %v413_v38, 0.0  ;;  %v493_v47 = vmax.f32 %v461_v39, 0.0 }
 0x104   : > { %603 = vst.msk [vmem:[%s949_s6 + $0x28] sm:$0xf] %vm592_vm2, %v746_v40  ;;  %615 = vst.msk [vmem:[%s949_s6 + $0x58] sm:$0xf] %vm592_vm2, %v758_v41  ;;  %v747_v48 = vpack.c.bf16 %v483_v42, %v483_v42  ;;  %v759_v49 = vpack.c.bf16 %v495_v43, %v495_v43 }
 0x105   : > { %601 = vst.msk [vmem:[%s949_s6 + $0x20] sm:$0xf] %vm592_vm2, %v744_v44  ;;  %613 = vst.msk [vmem:[%s949_s6 + $0x50] sm:$0xf] %vm592_vm2, %v756_v45  ;;  %v745_v18 = vpack.c.bf16 %v481_v46, %v481_v46  ;;  %v757_v50 = vpack.c.bf16 %v493_v47, %v493_v47 }
 0x106   : > { %604 = vst.msk [vmem:[%s949_s6 + $0x2c] sm:$0xf] %vm592_vm2, %v747_v48  ;;  %616 = vst.msk [vmem:[%s949_s6 + $0x5c] sm:$0xf] %vm592_vm2, %v759_v49 }
 0x107   : > { %602 = vst.msk [vmem:[%s949_s6 + $0x24] sm:$0xf] %vm592_vm2, %v745_v18  ;;  %614 = vst.msk [vmem:[%s949_s6 + $0x54] sm:$0xf] %vm592_vm2, %v757_v50 }
 0x108 PF: > { %s13_s12 = sadd.s32 1, %s854_s12  }
 0x109   : > { %p10_p4 = scmp.ge.s32.totalorder %s13_s12, 4  }
 0x10b   :  { %12 = sbr.rel (!%p10_p4) target bundleno = 1 (0x1), region = 62 }

// kernel: rot_invar_siamese_forward.11
= control target key start
LH: loop header
LB: loop body
LE: loop exit
PB: predicated region body
PF: predicated region fallthrough
CT: control target
= control target key end

     0   :  { %v435_v0 = vmov 0   ;;  %vm160_vm0 = vcmask 130048   ;;  %vm320_vm1 = vcmask 257024   ;;  %s576_s1 = inlined_call_operand.vmem [shape: bf16[144,32], index: 1, kind: input, shape index: {}]   ;;  %s577_s0 = inlined_call_operand.vmem [shape: bf16[96,144], index: 0, kind: input, shape index: {}]   ;;  %s578_s2 = inlined_call_operand.vmem [shape: f32[1,32], index: 2, kind: input, shape index: {}]   ;;  %s579_s3 = inlined_call_operand.vmem [shape: bf16[96,32], index: 3, kind: output, shape index: {}]  }
   0x1   :  { %179 = vmatprep.subr.bf16.mxu0 %v435_v0  ;;  %389 = vmatprep.subr.bf16.mxu1 %v435_v0  ;;  %v408_v1 = vld [vmem:[%s576_s1] sm:$0xff]   ;;  %v409_v2 = vld [vmem:[%s576_s1 + $0x8] sm:$0xff]   ;;  %v410_v3 = vld [vmem:[%s576_s1 + $0x10] sm:$0xff]  }
   0x2   :  { %180 = vmatpush1.bf16.msra.mxu0 %v408_v1  ;;  %398 = vmatpush1.bf16.msra.mxu1 %v408_v1  ;;  %v411_v4 = vld [vmem:[%s576_s1 + $0x18] sm:$0xff]   ;;  %v419_v5 = vld [vmem:[%s577_s0 + $0x4] ss:$8 sps:$4 sm:$0xff]   ;;  %v414_v9 = vld [vmem:[%s576_s1 + $0x30] sm:$0xff]  }
   0x3   :  { %181 = vmatprep.subr.bf16.mxu0 %v435_v0  ;;  %390 = vmatprep.subr.bf16.mxu1 %v435_v0  ;;  %v422_v6 = vld [vmem:[%s577_s0 + $0x34] ss:$8 sps:$4 sm:$0xff]   ;;  %v412_v7 = vld [vmem:[%s576_s1 + $0x20] sm:$0xff]   ;;  %v413_v8 = vld [vmem:[%s576_s1 + $0x28] sm:$0xff]  }
   0x4   :  { %359 = vmatprep.mubr.msk.bf16.mxu0 %vm160_vm0, %v419_v5  ;;  %362 = vmatprep.mubr.msk.bf16.mxu1 %vm160_vm0, %v422_v6  ;;  %v415_v10 = vld [vmem:[%s576_s1 + $0x38] sm:$0xff]   ;;  %v416_v11 = vld [vmem:[%s576_s1 + $0x40] sm:$0xff]  }
   0x5   :  { %v417_v12 = vld [vmem:[%s577_s0] ss:$8 sps:$4 sm:$0xff]   ;;  %v420_v13 = vld [vmem:[%s577_s0 + $0x30] ss:$8 sps:$4 sm:$0xff]   ;;  %v423_v14 = vld [vmem:[%s577_s0 + $0x14] ss:$8 sps:$4 sm:$0xff]  }
   0x6   :  { %182 = vmatpush1.bf16.msra.mxu0 %v409_v2  ;;  %399 = vmatpush1.bf16.msra.mxu1 %v409_v2  ;;  %v425_v15 = vld [vmem:[%s577_s0 + $0x44] ss:$8 sps:$4 sm:$0xff]   ;;  %v427_v16 = vld [vmem:[%s577_s0 + $0x10] ss:$8 sps:$4 sm:$0xff]   ;;  %v428_v17 = vld [vmem:[%s577_s0 + $0x40] ss:$8 sps:$4 sm:$0xff]  }
   0x7   :  { %183 = vmatprep.subr.bf16.mxu0 %v435_v0  ;;  %391 = vmatprep.subr.bf16.mxu1 %v435_v0  ;;  %v429_v18 = vld [vmem:[%s577_s0 + $0x24] ss:$8 sps:$4 sm:$0xff]   ;;  %v431_v19 = vld [vmem:[%s577_s0 + $0x54] ss:$8 sps:$4 sm:$0xff]   ;;  %v433_v20 = vld [vmem:[%s577_s0 + $0x20] ss:$8 sps:$4 sm:$0xff]  }
   0x8   :  { %v434_v21 = vld [vmem:[%s577_s0 + $0x50] ss:$8 sps:$4 sm:$0xff]   ;;  %v337_v22 = vld [vmem:[%s578_s2] ss:$0 sm:$0xff] }
   0xa   :  { %184 = vmatpush1.bf16.msra.mxu0 %v410_v3  ;;  %400 = vmatpush1.bf16.msra.mxu1 %v410_v3 }
   0xb   :  { %185 = vmatprep.subr.bf16.mxu0 %v435_v0  ;;  %392 = vmatprep.subr.bf16.mxu1 %v435_v0 }
   0xe   :  { %186 = vmatpush1.bf16.msra.mxu0 %v411_v4  ;;  %401 = vmatpush1.bf16.msra.mxu1 %v411_v4 }
   0xf   :  { %187 = vmatprep.subr.bf16.mxu0 %v435_v0  ;;  %393 = vmatprep.subr.bf16.mxu1 %v435_v0 }
  0x12   :  { %188 = vmatpush1.bf16.msra.mxu0 %v412_v7  ;;  %402 = vmatpush1.bf16.msra.mxu1 %v412_v7 }
  0x13   :  { %189 = vmatprep.subr.bf16.mxu0 %v435_v0  ;;  %394 = vmatprep.subr.bf16.mxu1 %v435_v0 }
  0x16   :  { %190 = vmatpush1.bf16.msra.mxu0 %v413_v8  ;;  %403 = vmatpush1.bf16.msra.mxu1 %v413_v8 }
  0x17   :  { %191 = vmatprep.subr.bf16.mxu0 %v435_v0  ;;  %395 = vmatprep.subr.bf16.mxu1 %v435_v0 }
  0x1a   :  { %192 = vmatpush1.bf16.msra.mxu0 %v414_v9  ;;  %404 = vmatpush1.bf16.msra.mxu1 %v414_v9 }
  0x1b   :  { %193 = vmatprep.subr.bf16.mxu0 %v435_v0  ;;  %396 = vmatprep.subr.bf16.mxu1 %v435_v0 }
  0x1e   :  { %194 = vmatpush1.bf16.msra.mxu0 %v415_v10  ;;  %405 = vmatpush1.bf16.msra.mxu1 %v415_v10 }
  0x1f   :  { %195 = vmatprep.subr.bf16.mxu0 %v435_v0  ;;  %397 = vmatprep.subr.bf16.mxu1 %v435_v0 }
  0x22   :  { %196 = vmatpush1.bf16.msra.mxu0 %v416_v11  ;;  %406 = vmatpush1.bf16.msra.mxu1 %v416_v11 }
  0x25   :  { %212 = vmatmul.mubr.bf16.vlgmr.msra.gmra.mrb[0].mxu0 %v417_v12  ;;  %236 = vmatmul.mubr.bf16.vlgmr.msra.gmra.mrb[0].mxu1 %v420_v13 }
  0x26   :  { %360 = vmatprep.mubr.msk.bf16.mxu0 %vm160_vm0, %v423_v14  ;;  %363 = vmatprep.mubr.msk.bf16.mxu1 %vm160_vm0, %v425_v15 }
  0x2d   :  { %220 = vmatmul.mubr.bf16.gmra.mrb[4].mxu0 %v427_v16  ;;  %244 = vmatmul.mubr.bf16.gmra.mrb[4].mxu1 %v428_v17 }
  0x2e   :  { %361 = vmatprep.mubr.msk.bf16.mxu0 %vm160_vm0, %v429_v18  ;;  %364 = vmatprep.mubr.msk.bf16.mxu1 %vm160_vm0, %v431_v19 }
  0x35   :  { %228 = vmatmul.mubr.bf16.gmra.mrb[8].mxu0 %v433_v20  ;;  %252 = vmatmul.mubr.bf16.gmra.mrb[8].mxu1 %v434_v21 }
  0xf8   :  { %v213_v23 = vpop.f32.mrb[0].mxu0  ;;  %v237_v24 = vpop.f32.mrb[0].mxu1 }
  0xf9   :  { %v214_v25 = vadd.f32 %v337_v22, %v213_v23  ;;  %v238_v26 = vadd.f32 %v337_v22, %v237_v24  ;;  %v215_v27 = vpop.f32.mrb[1].mxu0  ;;  %v239_v28 = vpop.f32.mrb[1].mxu1 }
  0xfa   :  { %v216_v29 = vpop.f32.mrb[2].mxu0  ;;  %v240_v30 = vpop.f32.mrb[2].mxu1 }
  0xfb   :  { %v260_v31 = vmax.f32 %v214_v25, 0.0  ;;  %v266_v32 = vmax.f32 %v238_v26, 0.0  ;;  %v217_v33 = vadd.f32 %v337_v22, %v216_v29  ;;  %v241_v34 = vadd.f32 %v337_v22, %v240_v30  ;;  %v218_v35 = vpop.f32.mrb[3].mxu0  ;;  %v242_v36 = vpop.f32.mrb[3].mxu1 }
  0xfd   :  { %v377_v37 = vpack.c.bf16 %v260_v31, %v260_v31  ;;  %v383_v38 = vpack.c.bf16 %v266_v32, %v266_v32  ;;  %v261_v39 = vmax.f32 %v217_v33, 0.0  ;;  %v267_v40 = vmax.f32 %v241_v34, 0.0 }
  0xff   :  { %321 = vst.msk [vmem:[%s579_s3] sm:$0xf] %vm320_vm1, %v377_v37  ;;  %327 = vst.msk [vmem:[%s579_s3 + $0x18] sm:$0xf] %vm320_vm1, %v383_v38  ;;  %v378_v41 = vpack.c.bf16 %v261_v39, %v261_v39  ;;  %v384_v42 = vpack.c.bf16 %v267_v40, %v267_v40 }
 0x100   :  { %v221_v43 = vpop.f32.mrb[4].mxu0  ;;  %v245_v44 = vpop.f32.mrb[4].mxu1 }
 0x101   :  { %322 = vst.msk [vmem:[%s579_s3 + $0x4] sm:$0xf] %vm320_vm1, %v378_v41  ;;  %328 = vst.msk [vmem:[%s579_s3 + $0x1c] sm:$0xf] %vm320_vm1, %v384_v42  ;;  %v222_v45 = vadd.f32 %v337_v22, %v221_v43  ;;  %v246_v46 = vadd.f32 %v337_v22, %v245_v44  ;;  %v223_v47 = vpop.f32.mrb[5].mxu0  ;;  %v247_v48 = vpop.f32.mrb[5].mxu1 }
 0x102   :  { %v224_v49 = vpop.f32.mrb[6].mxu0  ;;  %v248_v50 = vpop.f32.mrb[6].mxu1 }
 0x103   :  { %v262_v51 = vmax.f32 %v222_v45, 0.0  ;;  %v268_v52 = vmax.f32 %v246_v46, 0.0  ;;  %v225_v53 = vadd.f32 %v337_v22, %v224_v49  ;;  %v249_v54 = vadd.f32 %v337_v22, %v248_v50  ;;  %v226_v55 = vpop.f32.mrb[7].mxu0  ;;  %v250_v56 = vpop.f32.mrb[7].mxu1 }
 0x105   :  { %v379_v57 = vpack.c.bf16 %v262_v51, %v262_v51  ;;  %v385_v58 = vpack.c.bf16 %v268_v52, %v268_v52  ;;  %v263_v59 = vmax.f32 %v225_v53, 0.0  ;;  %v269_v60 = vmax.f32 %v249_v54, 0.0 }
 0x107   :  { %323 = vst.msk [vmem:[%s579_s3 + $0x8] sm:$0xf] %vm320_vm1, %v379_v57  ;;  %329 = vst.msk [vmem:[%s579_s3 + $0x20] sm:$0xf] %vm320_vm1, %v385_v58  ;;  %v380_v61 = vpack.c.bf16 %v263_v59, %v263_v59  ;;  %v386_v62 = vpack.c.bf16 %v269_v60, %v269_v60 }
 0x108   :  { %v229_v63 = vpop.f32.mrb[8].mxu0  ;;  %v253_v0 = vpop.f32.mrb[8].mxu1 }
 0x109   :  { %324 = vst.msk [vmem:[%s579_s3 + $0xc] sm:$0xf] %vm320_vm1, %v380_v61  ;;  %330 = vst.msk [vmem:[%s579_s3 + $0x24] sm:$0xf] %vm320_vm1, %v386_v62  ;;  %v230_v1 = vadd.f32 %v337_v22, %v229_v63  ;;  %v254_v2 = vadd.f32 %v337_v22, %v253_v0  ;;  %v231_v3 = vpop.f32.mrb[9].mxu0  ;;  %v255_v4 = vpop.f32.mrb[9].mxu1 }
 0x10a   :  { %v232_v5 = vpop.f32.mrb[10].mxu0  ;;  %v256_v6 = vpop.f32.mrb[10].mxu1 }
 0x10b   :  { %v264_v7 = vmax.f32 %v230_v1, 0.0  ;;  %v270_v8 = vmax.f32 %v254_v2, 0.0  ;;  %v233_v9 = vadd.f32 %v337_v22, %v232_v5  ;;  %v257_v10 = vadd.f32 %v337_v22, %v256_v6  ;;  %v234_v11 = vpop.f32.mrb[11].mxu0  ;;  %v258_v12 = vpop.f32.mrb[11].mxu1 }
 0x10d   :  { %v381_v13 = vpack.c.bf16 %v264_v7, %v264_v7  ;;  %v387_v14 = vpack.c.bf16 %v270_v8, %v270_v8  ;;  %v265_v15 = vmax.f32 %v233_v9, 0.0  ;;  %v271_v16 = vmax.f32 %v257_v10, 0.0 }
 0x10f   :  { %325 = vst.msk [vmem:[%s579_s3 + $0x10] sm:$0xf] %vm320_vm1, %v381_v13  ;;  %331 = vst.msk [vmem:[%s579_s3 + $0x28] sm:$0xf] %vm320_vm1, %v387_v14  ;;  %v382_v17 = vpack.c.bf16 %v265_v15, %v265_v15  ;;  %v388_v18 = vpack.c.bf16 %v271_v16, %v271_v16 }
 0x111   :  { %326 = vst.msk [vmem:[%s579_s3 + $0x14] sm:$0xf] %vm320_vm1, %v382_v17  ;;  %332 = vst.msk [vmem:[%s579_s3 + $0x2c] sm:$0xf] %vm320_vm1, %v388_v18 }

// kernel: rot_invar_siamese_forward.12
= control target key start
LH: loop header
LB: loop body
LE: loop exit
PB: predicated region body
PF: predicated region fallthrough
CT: control target
= control target key end

     0   :  { %vm374_vm0 = vcmask 259072   ;;  %s625_s1 = inlined_call_operand.vmem [shape: bf16[512,32], index: 1, kind: input, shape index: {}]   ;;  %s626_s0 = inlined_call_operand.vmem [shape: bf16[6,512], index: 0, kind: input, shape index: {}]   ;;  %s627_s2 = inlined_call_operand.vmem [shape: f32[1,32], index: 2, kind: input, shape index: {}]   ;;  %s628_s3 = inlined_call_operand.vmem [shape: f32[6,32], index: 3, kind: output, shape index: {}]  }
   0x1   :  { %v461_v0 = vld [vmem:[%s625_s1 + $0x40] sm:$0xff]   ;;  %v465_v4 = vld [vmem:[%s625_s1 + $0x48] sm:$0xff]   ;;  %v469_v8 = vld [vmem:[%s625_s1 + $0x50] sm:$0xff]  }
   0x2   :  { %v462_v1 = vld [vmem:[%s625_s1 + $0xc0] sm:$0xff]   ;;  %417 = vmatprep.subr.bf16.mxu0 %v461_v0  ;;  %v466_v5 = vld [vmem:[%s625_s1 + $0xc8] sm:$0xff]   ;;  %v470_v9 = vld [vmem:[%s625_s1 + $0xd0] sm:$0xff]  }
   0x3   :  { %v463_v2 = vld [vmem:[%s625_s1] sm:$0xff]   ;;  %439 = vmatprep.subr.bf16.mxu1 %v462_v1  ;;  %v467_v6 = vld [vmem:[%s625_s1 + $0x8] sm:$0xff]   ;;  %v471_v10 = vld [vmem:[%s625_s1 + $0x10] sm:$0xff]  }
   0x4   :  { %v464_v3 = vld [vmem:[%s625_s1 + $0x80] sm:$0xff]   ;;  %418 = vmatpush3.bf16.msra.mxu0 %v463_v2  ;;  %v468_v7 = vld [vmem:[%s625_s1 + $0x88] sm:$0xff]   ;;  %v472_v11 = vld [vmem:[%s625_s1 + $0x90] sm:$0xff]  }
   0x5   :  { %440 = vmatpush3.bf16.msra.mxu1 %v464_v3  ;;  %419 = vmatprep.subr.bf16.mxu0 %v465_v4  ;;  %v473_v12 = vld [vmem:[%s625_s1 + $0x58] sm:$0xff]   ;;  %v477_v16 = vld [vmem:[%s625_s1 + $0x60] sm:$0xff]   ;;  %v481_v20 = vld [vmem:[%s625_s1 + $0x68] sm:$0xff]  }
   0x6   :  { %441 = vmatprep.subr.bf16.mxu1 %v466_v5  ;;  %v474_v13 = vld [vmem:[%s625_s1 + $0xd8] sm:$0xff]   ;;  %v478_v17 = vld [vmem:[%s625_s1 + $0xe0] sm:$0xff]   ;;  %v482_v21 = vld [vmem:[%s625_s1 + $0xe8] sm:$0xff]  }
   0x7   :  { %v475_v14 = vld [vmem:[%s625_s1 + $0x18] sm:$0xff]   ;;  %v479_v18 = vld [vmem:[%s625_s1 + $0x20] sm:$0xff]   ;;  %v483_v22 = vld [vmem:[%s625_s1 + $0x28] sm:$0xff]  }
   0x8   :  { %420 = vmatpush3.bf16.msra.mxu0 %v467_v6  ;;  %v476_v15 = vld [vmem:[%s625_s1 + $0x98] sm:$0xff]   ;;  %v480_v19 = vld [vmem:[%s625_s1 + $0xa0] sm:$0xff]   ;;  %v484_v23 = vld [vmem:[%s625_s1 + $0xa8] sm:$0xff]  }
   0x9   :  { %442 = vmatpush3.bf16.msra.mxu1 %v468_v7  ;;  %421 = vmatprep.subr.bf16.mxu0 %v469_v8  ;;  %v485_v24 = vld [vmem:[%s625_s1 + $0x70] sm:$0xff]   ;;  %v489_v28 = vld [vmem:[%s625_s1 + $0x78] sm:$0xff]   ;;  %v15_v32 = vld [vmem:[%s626_s0] sm:$0x77] }
   0xa   :  { %443 = vmatprep.subr.bf16.mxu1 %v470_v9  ;;  %v486_v25 = vld [vmem:[%s625_s1 + $0xf0] sm:$0xff]   ;;  %v490_v29 = vld [vmem:[%s625_s1 + $0xf8] sm:$0xff]   ;;  %v16_v33 = vld [vmem:[%s626_s0 + $0x8] sm:$0x77]  ;;  %v381_v34 = vcombine.low %v15_v32, %v15_v32  ;;  %v382_v35 = vcombine.high %v15_v32, %v15_v32 }
   0xb   :  { %v487_v26 = vld [vmem:[%s625_s1 + $0x30] sm:$0xff]   ;;  %v491_v30 = vld [vmem:[%s625_s1 + $0x38] sm:$0xff]   ;;  %v383_v36 = vcombine.low %v16_v33, %v16_v33  ;;  %v384_v37 = vcombine.high %v16_v33, %v16_v33  ;;  %v380_v40 = vld [vmem:[%s627_s2] ss:$0 sm:$0xff] }
   0xc   :  { %422 = vmatpush3.bf16.msra.mxu0 %v471_v10  ;;  %v488_v27 = vld [vmem:[%s625_s1 + $0xb0] sm:$0xff]   ;;  %v492_v31 = vld [vmem:[%s625_s1 + $0xb8] sm:$0xff]   ;;  %326 = vmatprep.mubr.bf16.mxu0 %v382_v35 }
   0xd   :  { %444 = vmatpush3.bf16.msra.mxu1 %v472_v11  ;;  %423 = vmatprep.subr.bf16.mxu0 %v473_v12 }
   0xe   :  { %445 = vmatprep.subr.bf16.mxu1 %v474_v13  ;;  %366 = vmatprep.mubr.bf16.mxu1 %v384_v37 }
  0x10   :  { %424 = vmatpush3.bf16.msra.mxu0 %v475_v14 }
  0x11   :  { %446 = vmatpush3.bf16.msra.mxu1 %v476_v15  ;;  %425 = vmatprep.subr.bf16.mxu0 %v477_v16 }
  0x12   :  { %447 = vmatprep.subr.bf16.mxu1 %v478_v17 }
  0x14   :  { %426 = vmatpush3.bf16.msra.mxu0 %v479_v18 }
  0x15   :  { %448 = vmatpush3.bf16.msra.mxu1 %v480_v19  ;;  %427 = vmatprep.subr.bf16.mxu0 %v481_v20 }
  0x16   :  { %449 = vmatprep.subr.bf16.mxu1 %v482_v21 }
  0x18   :  { %428 = vmatpush3.bf16.msra.mxu0 %v483_v22 }
  0x19   :  { %450 = vmatpush3.bf16.msra.mxu1 %v484_v23  ;;  %429 = vmatprep.subr.bf16.mxu0 %v485_v24 }
  0x1a   :  { %451 = vmatprep.subr.bf16.mxu1 %v486_v25 }
  0x1c   :  { %430 = vmatpush3.bf16.msra.mxu0 %v487_v26 }
  0x1d   :  { %452 = vmatpush3.bf16.msra.mxu1 %v488_v27  ;;  %431 = vmatprep.subr.bf16.mxu0 %v489_v28 }
  0x1e   :  { %453 = vmatprep.subr.bf16.mxu1 %v490_v29 }
  0x20   :  { %432 = vmatpush3.bf16.msra.mxu0 %v491_v30 }
  0x21   :  { %454 = vmatpush3.bf16.msra.mxu1 %v492_v31 }
  0x23   :  { %327 = vmatmul.mubr.bf16.vlgmr.msra.gmra.mrb[0].mxu0 %v381_v34 }
  0x24   :  { %367 = vmatmul.mubr.bf16.vlgmr.msra.gmra.mrb[0].mxu1 %v383_v36 }
  0xf6   :  { %v433_v38 = vpop.f32.mrb[0].mxu0 }
  0xf7   :  { %v455_v39 = vpop.f32.mrb[0].mxu1  ;;  %v434_v41 = vpop.f32.mrb[1].mxu0 }
  0xf8   :  { %v456_v42 = vpop.f32.mrb[1].mxu1  ;;  %v435_v43 = vadd.f32 %v434_v41, %v433_v38  ;;  %v436_v45 = vpop.f32.mrb[2].mxu0 }
  0xf9   :  { %v457_v44 = vadd.f32 %v456_v42, %v455_v39  ;;  %v458_v46 = vpop.f32.mrb[2].mxu1  ;;  %v437_v47 = vpop.f32.mrb[3].mxu0 }
  0xfa   :  { %v459_v48 = vpop.f32.mrb[3].mxu1  ;;  %v329_v49 = vadd.f32 %v435_v43, %v380_v40 }
  0xfc   :  { %v369_v50 = vadd.f32 %v457_v44, %v329_v49 }
  0xfe   :  { %375 = vst.msk [vmem:[%s628_s3] sm:$0x3f] %vm374_vm0, %v369_v50 }

// kernel: rot_invar_siamese_forward.14
= control target key start
LH: loop header
LB: loop body
LE: loop exit
PB: predicated region body
PF: predicated region fallthrough
CT: control target
= control target key end

     0   :  { %v233_v1 = vmov 0   ;;  %vm86_vm0 = vcmask 261120   ;;  %v26_v10 = vlaneseq  ;;  %v234_v17 = vmov 1983009808   ;;  %s288_s1 = inlined_call_operand.vmem [shape: bf16[32,512], index: 1, kind: input, shape index: {}]   ;;  %s289_s0 = inlined_call_operand.vmem [shape: bf16[4,32], index: 0, kind: input, shape index: {}]   ;;  %s290_s2 = inlined_call_operand.vmem [shape: f32[1,512], index: 2, kind: input, shape index: {}]   ;;  %s291_s3 = inlined_call_operand.vmem [shape: bf16[4,512], index: 3, kind: output, shape index: {}]  }
   0x1   :  { %v221_v0 = vld [vmem:[%s288_s1 + $0x4] ss:$16 sps:$4 sm:$0xff]   ;;  %122 = vmatprep.mubr.bf16.mxu0 %v233_v1  ;;  %163 = vmatprep.mubr.bf16.mxu1 %v233_v1  ;;  %v223_v2 = vld [vmem:[%s288_s1 + $0xc] ss:$16 sps:$4 sm:$0xff]   ;;  %v225_v3 = vld [vmem:[%s288_s1] ss:$16 sps:$4 sm:$0xff]   ;;  %v187_v18 = vunpack.c.l.s4 %v234_v17 }
   0x2   :  { %90 = vmatprep.subr.bf16.mxu0 %v221_v0  ;;  %v226_v4 = vld [vmem:[%s288_s1 + $0x8] ss:$16 sps:$4 sm:$0xff]   ;;  %131 = vmatprep.subr.bf16.mxu1 %v223_v2  ;;  %v227_v5 = vld [vmem:[%s288_s1 + $0x24] ss:$16 sps:$4 sm:$0xff]   ;;  %v229_v6 = vld [vmem:[%s288_s1 + $0x2c] ss:$16 sps:$4 sm:$0xff]  }
   0x3   :  { %91 = vmatpush1.bf16.msra.mxu0 %v225_v3  ;;  %132 = vmatpush1.bf16.msra.mxu1 %v226_v4  ;;  %v231_v7 = vld [vmem:[%s288_s1 + $0x20] ss:$16 sps:$4 sm:$0xff]   ;;  %v232_v8 = vld [vmem:[%s288_s1 + $0x28] ss:$16 sps:$4 sm:$0xff]   ;;  %v27_v11 = vshrl.u32 %v26_v10, 7  ;;  %v188_v25 = vunpack.c.0.s8 %v187_v18 }
   0x4   :  { %92 = vmatprep.subr.bf16.mxu0 %v227_v5  ;;  %133 = vmatprep.subr.bf16.mxu1 %v229_v6  ;;  %v15_v9 = vld [vmem:[%s289_s0] sm:$0x3] }
   0x5   :  { %v28_v12 = vsub.s32 0, %v27_v11  ;;  %v36_v13 = vsub.s32 2, %v27_v11  ;;  %v24_v14 = vld [vmem:[%s290_s2] sm:$0xf]  ;;  %v32_v15 = vsub.s32 1, %v27_v11  ;;  %v40_v16 = vsub.s32 3, %v27_v11 }
   0x6   :  { %v191_v39 = vsub.s32 %v188_v25, %v27_v11 }
   0x7   :  { %93 = vmatpush1.bf16.msra.mxu0 %v231_v7  ;;  %134 = vmatpush1.bf16.msra.mxu1 %v232_v8  ;;  %v29_v19 = vrot.slane %v24_v14, %v28_v12  ;;  %v37_v20 = vrot.slane %v24_v14, %v36_v13  ;;  %v33_v21 = vrot.slane %v24_v14, %v32_v15 }
   0x8   :  { %v41_v22 = vrot.slane %v24_v14, %v40_v16 }
   0xa   :  { %215 = vmatmul.mubr.msk.bf16.vlgmr.msra.gmra.mrb[0].mxu0 %vm86_vm0, %v15_v9  ;;  %216 = vmatmul.mubr.msk.bf16.vlgmr.msra.gmra.mrb[0].mxu1 %vm86_vm0, %v15_v9 }
  0xdd   :  { %v124_v23 = vpop.f32.mrb[0].mxu0  ;;  %v165_v24 = vpop.f32.mrb[0].mxu1 }
  0xde   :  { %v125_v26 = vadd.f32 %v124_v23, %v29_v19  ;;  %v166_v27 = vadd.f32 %v165_v24, %v37_v20  ;;  %v126_v28 = vpop.f32.mrb[1].mxu0  ;;  %v167_v29 = vpop.f32.mrb[1].mxu1 }
  0xdf   :  { %v127_v30 = vadd.f32 %v126_v28, %v33_v21  ;;  %v168_v31 = vadd.f32 %v167_v29, %v41_v22  ;;  %v128_v32 = vpop.f32.mrb[2].mxu0  ;;  %v169_v33 = vpop.f32.mrb[2].mxu1 }
  0xe0   :  { %v172_v34 = vmax.f32 %v125_v26, 0.0  ;;  %v174_v35 = vmax.f32 %v166_v27, 0.0  ;;  %v129_v36 = vpop.f32.mrb[3].mxu0  ;;  %v170_v37 = vpop.f32.mrb[3].mxu1 }
  0xe1   :  { %v173_v38 = vmax.f32 %v127_v30, 0.0  ;;  %v175_v40 = vmax.f32 %v168_v31, 0.0 }
  0xe3   :  { %v217_v41 = vpack.c.bf16 %v173_v38, %v172_v34  ;;  %v218_v42 = vpack.c.bf16 %v175_v40, %v174_v35 }
  0xe5   :  { %v192_v43 = vrot.slane %v217_v41, %v191_v39  ;;  %v199_v44 = vrot.slane %v218_v42, %v191_v39 }
  0xe7   :  { %v200_v45 = vcombine.low %v192_v43, %v199_v44 }
  0xe9   :  { %202 = vst [vmem:[%s291_s3] sm:$0xff] %v200_v45 }

// kernel: rot_invar_siamese_forward.15
= control target key start
LH: loop header
LB: loop body
LE: loop exit
PB: predicated region body
PF: predicated region fallthrough
CT: control target
= control target key end

     0   :  { %s1144_s12 = smov 0   ;;  %s1320_s0 = inlined_call_operand.vmem [shape: bf16[256,288], index: 0, kind: input, shape index: {}]   ;;  %s1321_s1 = inlined_call_operand.vmem [shape: bf16[288,16], index: 1, kind: input, shape index: {}]   ;;  %s1322_s2 = inlined_call_operand.vmem [shape: f32[1,16], index: 2, kind: input, shape index: {}]   ;;  %s1323_s3 = inlined_call_operand.vmem [shape: bf16[256,16], index: 3, kind: output, shape index: {}]  }
   0x1 LB: > { %s853_s13 = sadd.s32 4294967295, %s1122_s12   ;;  %p857_p0 = scmp.ge.s32.totalorder %s1122_s12, 1  ;;  %s1122_s12 = sphi %s1144_s12, %s13_s12  }
   0x2   : > { %p139_p1 = scmp.lt.s32.totalorder %s1122_s12, 3 }
   0x4   : > { %p140_p2 = pnand %p857_p0, %p139_p1 }
   0x5   : > { %v1066_v0 = vld [vmem:[%s1321_s1 + $0x40] sm:$0xff] (!%p140_p2)   ;;  %s858_s16 = sshll.u32 (!%p140_p2), %s853_s13, 4  ;;  %v1068_v2 = vld [vmem:[%s1321_s1 + $0x48] sm:$0xff] (!%p140_p2)   ;;  %v1070_v4 = vld [vmem:[%s1321_s1 + $0x50] sm:$0xff] (!%p140_p2)   ;;  %vm481_vm0 = vcmask (!%p140_p2), 261120   ;;  %vm780_vm1 = vcmask (!%p140_p2), 125952  }
   0x6   : > { %143 = sbr.rel (%p140_p2) target bundleno = 304 (0x130), region = 32  ;;  %v1067_v1 = vld [vmem:[%s1321_s1] sm:$0xff] (!%p140_p2)   ;;  %947 = vmatprep.subr.bf16.mxu0 (!%p140_p2), %v1066_v0  ;;  %1041 = vmatprep.subr.bf16.mxu1 (!%p140_p2), %v1066_v0  ;;  %p165_p3 = scmp.lt.s32.totalorder (!%p140_p2), %s858_s16, 31  ;;  %v1069_v3 = vld [vmem:[%s1321_s1 + $0x8] sm:$0xff] (!%p140_p2)   ;;  %v1071_v5 = vld [vmem:[%s1321_s1 + $0x10] sm:$0xff] (!%p140_p2)  }
   0x7   : > { %948 = vmatpush3.bf16.msra.mxu0 (!%p140_p2), %v1067_v1  ;;  %1049 = vmatpush3.bf16.msra.mxu1 (!%p140_p2), %v1067_v1  ;;  %v1072_v6 = vld [vmem:[%s1321_s1 + $0x58] sm:$0xff] (!%p140_p2)   ;;  %v1074_v8 = vld [vmem:[%s1321_s1 + $0x60] sm:$0xff] (!%p140_p2)   ;;  %v1076_v10 = vld [vmem:[%s1321_s1 + $0x68] sm:$0xff] (!%p140_p2)  }
   0x8   : > { %949 = vmatprep.subr.bf16.mxu0 (!%p140_p2), %v1068_v2  ;;  %1042 = vmatprep.subr.bf16.mxu1 (!%p140_p2), %v1068_v2  ;;  %v1073_v7 = vld [vmem:[%s1321_s1 + $0x18] sm:$0xff] (!%p140_p2)   ;;  %v1075_v9 = vld [vmem:[%s1321_s1 + $0x20] sm:$0xff] (!%p140_p2)   ;;  %v1077_v13 = vld [vmem:[%s1321_s1 + $0x28] sm:$0xff] (!%p140_p2)  }
   0x9   : > { %v1078_v14 = vld [vmem:[%s1321_s1 + $0x70] sm:$0xff] (!%p140_p2)   ;;  %v1080_v16 = vld [vmem:[%s1321_s1 + $0x78] sm:$0xff] (!%p140_p2)   ;;  %v1088_v19 = vld [vmem:[%s1321_s1 + $0x80] sm:$0xff] (!%p140_p2)  }
   0xa   : > { %v1079_v15 = vld [vmem:[%s1321_s1 + $0x30] sm:$0xff] (!%p140_p2)   ;;  %v1081_v17 = vld [vmem:[%s1321_s1 + $0x38] sm:$0xff] (!%p140_p2)   ;;  %v1095_v23 = vld [vmem:[%s1321_s1 + $0x88] sm:$0xff] (!%p140_p2)  }
   0xb   : > { %950 = vmatpush3.bf16.msra.mxu0 (!%p140_p2), %v1069_v3  ;;  %1050 = vmatpush3.bf16.msra.mxu1 (!%p140_p2), %v1069_v3  ;;  %v1257_v2 = vld [vmem:[%s1322_s2] ss:$0 sm:$0xff] (!%p140_p2) }
   0xc   : > { %951 = vmatprep.subr.bf16.mxu0 (!%p140_p2), %v1070_v4  ;;  %1043 = vmatprep.subr.bf16.mxu1 (!%p140_p2), %v1070_v4 }
   0xd   : > { %s1325_s16 = smov (!%p165_p3, %s858_s16), 31 }
   0xe   : > { %s1057_s29 = smul.u32 12, %s1325_s16  ;;  %s861_s5 = sshll.u32 %s1325_s16, 2 }
   0xf   : > { %952 = vmatpush3.bf16.msra.mxu0 %v1071_v5  ;;  %1051 = vmatpush3.bf16.msra.mxu1 %v1071_v5  ;;  %s1267_s8 = scalar_lea.vmem %s1323_s3, %s861_s5 }
  0x10   : > { %953 = vmatprep.subr.bf16.mxu0 %v1072_v6  ;;  %1044 = vmatprep.subr.bf16.mxu1 %v1072_v6  ;;  %s1185_s9 = scalar_lea.vmem %s1320_s0, %s1057_s29 }
  0x11   : > { %v1084_v11 = vld [vmem:[%s1185_s9 + $0x4] ss:$12 sps:$4 sm:$0xff]   ;;  %v1087_v12 = vld [vmem:[%s1185_s9 + $0x94] ss:$12 sps:$4 sm:$0xff]   ;;  %v1089_v21 = vld [vmem:[%s1185_s9 + $0x1c] ss:$12 sps:$4 sm:$0xff]  }
  0x12   : > { %538 = vmatprep.mubr.bf16.mxu0 %v1084_v11  ;;  %586 = vmatprep.mubr.bf16.mxu1 %v1087_v12  ;;  %v1082_v18 = vld [vmem:[%s1185_s9] ss:$12 sps:$4 sm:$0xff]   ;;  %v1085_v20 = vld [vmem:[%s1185_s9 + $0x90] ss:$12 sps:$4 sm:$0xff]   ;;  %v1093_v24 = vld [vmem:[%s1185_s9 + $0x18] ss:$12 sps:$4 sm:$0xff]  }
  0x13   : > { %954 = vmatpush3.bf16.msra.mxu0 %v1073_v7  ;;  %1052 = vmatpush3.bf16.msra.mxu1 %v1073_v7  ;;  %v1091_v22 = vld [vmem:[%s1185_s9 + $0xac] ss:$12 sps:$4 sm:$0xff]   ;;  %v1094_v25 = vld [vmem:[%s1185_s9 + $0xa8] ss:$12 sps:$4 sm:$0xff]   ;;  %v1099_v28 = vld [vmem:[%s1185_s9 + $0x30] ss:$12 sps:$4 sm:$0xff]  }
  0x14   : > { %955 = vmatprep.subr.bf16.mxu0 %v1074_v8  ;;  %1045 = vmatprep.subr.bf16.mxu1 %v1074_v8  ;;  %v1096_v26 = vld [vmem:[%s1185_s9 + $0x34] ss:$12 sps:$4 sm:$0xff]   ;;  %v1101_v30 = vld [vmem:[%s1185_s9 + $0x4c] ss:$12 sps:$4 sm:$0xff]   ;;  %v1105_v33 = vld [vmem:[%s1185_s9 + $0x50] ss:$12 sps:$4 sm:$0xff]  }
  0x15   : > { %v1098_v27 = vld [vmem:[%s1185_s9 + $0x8] ss:$12 sps:$4 sm:$0xff]   ;;  %v1100_v29 = vld [vmem:[%s1185_s9 + $0x20] ss:$12 sps:$4 sm:$0xff]   ;;  %v1103_v31 = vld [vmem:[%s1185_s9 + $0x38] ss:$12 sps:$4 sm:$0xff]  }
  0x16   : > { %v1104_v32 = vld [vmem:[%s1185_s9 + $0x48] ss:$12 sps:$4 sm:$0xff]   ;;  %v1106_v34 = vld [vmem:[%s1185_s9 + $0x64] ss:$12 sps:$4 sm:$0xff]   ;;  %v1109_v36 = vld [vmem:[%s1185_s9 + $0x60] ss:$12 sps:$4 sm:$0xff]  }
  0x17   : > { %956 = vmatpush3.bf16.msra.mxu0 %v1075_v9  ;;  %1053 = vmatpush3.bf16.msra.mxu1 %v1075_v9  ;;  %v1108_v35 = vld [vmem:[%s1185_s9 + $0x68] ss:$12 sps:$4 sm:$0xff]   ;;  %v1110_v37 = vld [vmem:[%s1185_s9 + $0x80] ss:$12 sps:$4 sm:$0xff]   ;;  %v1113_v39 = vld [vmem:[%s1185_s9 + $0x98] ss:$12 sps:$4 sm:$0xff]  }
  0x18   : > { %957 = vmatprep.subr.bf16.mxu0 %v1076_v10  ;;  %1046 = vmatprep.subr.bf16.mxu1 %v1076_v10  ;;  %v1111_v38 = vld [vmem:[%s1185_s9 + $0x7c] ss:$12 sps:$4 sm:$0xff]   ;;  %v1114_v40 = vld [vmem:[%s1185_s9 + $0x78] ss:$12 sps:$4 sm:$0xff]  }
  0x19   : > { %v1115_v41 = vld [vmem:[%s1185_s9 + $0xb0] ss:$12 sps:$4 sm:$0xff]  }
  0x1b   : > { %958 = vmatpush3.bf16.msra.mxu0 %v1077_v13  ;;  %1054 = vmatpush3.bf16.msra.mxu1 %v1077_v13 }
  0x1c   : > { %959 = vmatprep.subr.bf16.mxu0 %v1078_v14  ;;  %1047 = vmatprep.subr.bf16.mxu1 %v1078_v14 }
  0x1f   : > { %960 = vmatpush3.bf16.msra.mxu0 %v1079_v15  ;;  %1055 = vmatpush3.bf16.msra.mxu1 %v1079_v15 }
  0x20   : > { %961 = vmatprep.subr.bf16.mxu0 %v1080_v16  ;;  %1048 = vmatprep.subr.bf16.mxu1 %v1080_v16 }
  0x23   : > { %962 = vmatpush3.bf16.msra.mxu0 %v1081_v17  ;;  %1056 = vmatpush3.bf16.msra.mxu1 %v1081_v17 }
  0x24   : > { %1021 = vmatprep.subr.bf16.mxu1 %v1088_v19 }
  0x26   : > { %539 = vmatmul.mubr.bf16.vlgmr.msra.gmra.mrb[0].mxu0 %v1082_v18  ;;  %587 = vmatmul.mubr.bf16.vlgmr.msra.gmra.mrb[0].mxu1 %v1085_v20 }
  0x27   : > { %1022 = vmatpush3.bf16.msra.mxu1 %v1088_v19  ;;  %546 = vmatprep.mubr.bf16.mxu0 %v1089_v21 }
  0x28   : > { %594 = vmatprep.mubr.bf16.mxu1 %v1091_v22  ;;  %1023 = vmatprep.subr.bf16.mxu1 %v1095_v23 }
  0x2b   : > { %1024 = vmatpush3.bf16.msra.mxu1 %v1095_v23 }
  0x2e   : > { %547 = vmatmul.mubr.bf16.gmra.mrb[4].mxu0 %v1093_v24  ;;  %595 = vmatmul.mubr.bf16.gmra.mrb[4].mxu1 %v1094_v25 }
  0x2f   : > { %554 = vmatprep.mubr.bf16.mxu0 %v1096_v26  ;;  %1025 = vmatprep.mubr.msk.bf16.mxu1 %vm481_vm0, %v1098_v27 }
  0x36   : > { %555 = vmatmul.mubr.bf16.gmra.mrb[8].mxu0 %v1099_v28  ;;  %1026 = vmatmul.mubr.msk.bf16.vlgmr.msra.gmra.mrb[8].mxu1 %vm481_vm0, %v1100_v29 }
  0x37   : > { %562 = vmatprep.mubr.bf16.mxu0 %v1101_v30  ;;  %1029 = vmatprep.mubr.msk.bf16.mxu1 %vm481_vm0, %v1103_v31 }
  0x3e   : > { %563 = vmatmul.mubr.bf16.gmra.mrb[12].mxu0 %v1104_v32  ;;  %1030 = vmatmul.mubr.msk.bf16.gmra.mrb[12].mxu1 %vm481_vm0, %v1105_v33 }
  0x3f   : > { %570 = vmatprep.mubr.bf16.mxu0 %v1106_v34  ;;  %1033 = vmatprep.mubr.msk.bf16.mxu1 %vm481_vm0, %v1108_v35 }
  0x46   : > { %571 = vmatmul.mubr.bf16.gmra.mrb[16].mxu0 %v1109_v36  ;;  %1034 = vmatmul.mubr.msk.bf16.gmra.mrb[16].mxu1 %vm481_vm0, %v1110_v37 }
  0x47   : > { %578 = vmatprep.mubr.bf16.mxu0 %v1111_v38  ;;  %1037 = vmatprep.mubr.msk.bf16.mxu1 %vm481_vm0, %v1113_v39 }
  0x4e   : > { %579 = vmatmul.mubr.bf16.gmra.mrb[20].mxu0 %v1114_v40  ;;  %1038 = vmatmul.mubr.msk.bf16.gmra.mrb[20].mxu1 %vm481_vm0, %v1115_v41 }
  0xf9   : > { %v963_v42 = vpop.f32.mrb[0].mxu0  ;;  %v999_v43 = vpop.f32.mrb[0].mxu1 }
  0xfa   : > { %v964_v44 = vpop.f32.mrb[1].mxu0  ;;  %v1000_v45 = vpop.f32.mrb[1].mxu1 }
  0xfb   : > { %v965_v46 = vadd.f32 %v964_v44, %v963_v42  ;;  %v966_v47 = vpop.f32.mrb[2].mxu0  ;;  %v1246_v48 = vadd.f32 %v1000_v45, %v999_v43  ;;  %v1002_v49 = vpop.f32.mrb[2].mxu1 }
  0xfc   : > { %v967_v50 = vpop.f32.mrb[3].mxu0  ;;  %v1003_v51 = vpop.f32.mrb[3].mxu1 }
  0xfd   : > { %v968_v52 = vadd.f32 %v967_v50, %v966_v47  ;;  %v1248_v53 = vadd.f32 %v1003_v51, %v1002_v49  ;;  %v541_v6 = vadd.f32 %v965_v46, %v1257_v2 }
  0xff   : > { %v544_v15 = vadd.f32 %v968_v52, %v1257_v2 }
 0x101   : > { %v969_v54 = vpop.f32.mrb[4].mxu0  ;;  %v1005_v55 = vpop.f32.mrb[4].mxu1 }
 0x102   : > { %v970_v56 = vpop.f32.mrb[5].mxu0  ;;  %v1006_v57 = vpop.f32.mrb[5].mxu1 }
 0x103   : > { %v971_v58 = vadd.f32 %v970_v56, %v969_v54  ;;  %v972_v59 = vpop.f32.mrb[6].mxu0  ;;  %v1250_v60 = vadd.f32 %v1006_v57, %v1005_v55  ;;  %v1008_v61 = vpop.f32.mrb[6].mxu1 }
 0x104   : > { %v973_v62 = vpop.f32.mrb[7].mxu0  ;;  %v1009_v63 = vpop.f32.mrb[7].mxu1 }
 0x105   : > { %v974_v0 = vadd.f32 %v973_v62, %v972_v59  ;;  %v1252_v1 = vadd.f32 %v1009_v63, %v1008_v61  ;;  %v549_v3 = vadd.f32 %v971_v58, %v1257_v2 }
 0x107   : > { %v552_v10 = vadd.f32 %v974_v0, %v1257_v2 }
 0x109   : > { %v975_v4 = vpop.f32.mrb[8].mxu0  ;;  %v1027_v5 = vpop.f32.mrb[8].mxu1 }
 0x10a   : > { %v646_v7 = vadd.f32 %v1027_v5, %v549_v3  ;;  %v976_v8 = vpop.f32.mrb[9].mxu0  ;;  %v637_v9 = vpop.f32.mrb[9].mxu1 }
 0x10b   : > { %v977_v11 = vadd.f32 %v976_v8, %v975_v4  ;;  %v638_v12 = vadd.f32 %v637_v9, %v541_v6  ;;  %v978_v13 = vpop.f32.mrb[10].mxu0  ;;  %v1028_v14 = vpop.f32.mrb[10].mxu1  ;;  %v597_v9 = vadd.f32 %v1250_v60, %v1257_v2 }
 0x10c   : > { %v702_v16 = vmax.f32 %v646_v7, 0.0  ;;  %v649_v17 = vadd.f32 %v1028_v14, %v552_v10  ;;  %v979_v18 = vpop.f32.mrb[11].mxu0  ;;  %v640_v19 = vpop.f32.mrb[11].mxu1  ;;  %v589_v14 = vadd.f32 %v1246_v48, %v1257_v2  ;;  %v592_v48 = vadd.f32 %v1248_v53, %v1257_v2 }
 0x10d   : > { %v700_v20 = vmax.f32 %v638_v12, 0.0  ;;  %v980_v21 = vadd.f32 %v979_v18, %v978_v13  ;;  %v641_v22 = vadd.f32 %v640_v19, %v544_v15  ;;  %v557_v31 = vadd.f32 %v977_v11, %v1257_v2 }
 0x10e   : > { %v933_v23 = vpack.c.bf16 %v702_v16, %v702_v16  ;;  %v703_v24 = vmax.f32 %v649_v17, 0.0  ;;  %v600_v18 = vadd.f32 %v1252_v1, %v1257_v2 }
 0x10f   : > { %v931_v25 = vpack.c.bf16 %v700_v20, %v700_v20  ;;  %v701_v26 = vmax.f32 %v641_v22, 0.0  ;;  %v560_v38 = vadd.f32 %v980_v21, %v1257_v2 }
 0x110   : > { %783 = vst.msk [vmem:[%s1267_s8 + $0x8] sm:$0xf] %vm780_vm1, %v933_v23  ;;  %v934_v27 = vpack.c.bf16 %v703_v24, %v703_v24 }
 0x111   : > { %781 = vst.msk [vmem:[%s1267_s8] sm:$0xf] %vm780_vm1, %v931_v25  ;;  %v932_v28 = vpack.c.bf16 %v701_v26, %v701_v26  ;;  %v981_v29 = vpop.f32.mrb[12].mxu0  ;;  %v1031_v30 = vpop.f32.mrb[12].mxu1 }
 0x112   : > { %784 = vst.msk [vmem:[%s1267_s8 + $0xc] sm:$0xf] %vm780_vm1, %v934_v27  ;;  %v982_v32 = vpop.f32.mrb[13].mxu0  ;;  %v653_v33 = vpop.f32.mrb[13].mxu1 }
 0x113   : > { %782 = vst.msk [vmem:[%s1267_s8 + $0x4] sm:$0xf] %vm780_vm1, %v932_v28  ;;  %v983_v34 = vadd.f32 %v982_v32, %v981_v29  ;;  %v654_v35 = vadd.f32 %v653_v33, %v557_v31  ;;  %v984_v36 = vpop.f32.mrb[14].mxu0  ;;  %v1032_v37 = vpop.f32.mrb[14].mxu1 }
 0x114   : > { %v985_v39 = vpop.f32.mrb[15].mxu0  ;;  %v656_v40 = vpop.f32.mrb[15].mxu1 }
 0x115   : > { %v565_v41 = vadd.f32 %v983_v34, %v1257_v2  ;;  %v704_v42 = vmax.f32 %v654_v35, 0.0  ;;  %v986_v43 = vadd.f32 %v985_v39, %v984_v36  ;;  %v657_v44 = vadd.f32 %v656_v40, %v560_v38 }
 0x117   : > { %v662_v45 = vadd.f32 %v1031_v30, %v565_v41  ;;  %v935_v46 = vpack.c.bf16 %v704_v42, %v704_v42  ;;  %v568_v47 = vadd.f32 %v986_v43, %v1257_v2  ;;  %v705_v49 = vmax.f32 %v657_v44, 0.0 }
 0x119   : > { %v706_v50 = vmax.f32 %v662_v45, 0.0  ;;  %785 = vst.msk [vmem:[%s1267_s8 + $0x10] sm:$0xf] %vm780_vm1, %v935_v46  ;;  %v665_v51 = vadd.f32 %v1032_v37, %v568_v47  ;;  %v936_v52 = vpack.c.bf16 %v705_v49, %v705_v49  ;;  %v987_v54 = vpop.f32.mrb[16].mxu0  ;;  %v1035_v55 = vpop.f32.mrb[16].mxu1 }
 0x11a   : > { %v988_v56 = vpop.f32.mrb[17].mxu0  ;;  %v669_v57 = vpop.f32.mrb[17].mxu1 }
 0x11b   : > { %v937_v58 = vpack.c.bf16 %v706_v50, %v706_v50  ;;  %v707_v59 = vmax.f32 %v665_v51, 0.0  ;;  %786 = vst.msk [vmem:[%s1267_s8 + $0x14] sm:$0xf] %vm780_vm1, %v936_v52  ;;  %v989_v61 = vadd.f32 %v988_v56, %v987_v54  ;;  %v990_v62 = vpop.f32.mrb[18].mxu0  ;;  %v1036_v63 = vpop.f32.mrb[18].mxu1 }
 0x11c   : > { %v991_v0 = vpop.f32.mrb[19].mxu0  ;;  %v672_v3 = vpop.f32.mrb[19].mxu1 }
 0x11d   : > { %787 = vst.msk [vmem:[%s1267_s8 + $0x18] sm:$0xf] %vm780_vm1, %v937_v58  ;;  %v938_v4 = vpack.c.bf16 %v707_v59, %v707_v59  ;;  %v573_v5 = vadd.f32 %v989_v61, %v1257_v2  ;;  %v992_v6 = vadd.f32 %v991_v0, %v990_v62 }
 0x11f   : > { %788 = vst.msk [vmem:[%s1267_s8 + $0x1c] sm:$0xf] %vm780_vm1, %v938_v4  ;;  %v670_v7 = vadd.f32 %v669_v57, %v573_v5  ;;  %v576_v8 = vadd.f32 %v992_v6, %v1257_v2 }
 0x121   : > { %v708_v10 = vmax.f32 %v670_v7, 0.0  ;;  %v673_v11 = vadd.f32 %v672_v3, %v576_v8  ;;  %v993_v12 = vpop.f32.mrb[20].mxu0  ;;  %v1039_v13 = vpop.f32.mrb[20].mxu1 }
 0x122   : > { %v694_v15 = vadd.f32 %v1039_v13, %v597_v9  ;;  %v994_v16 = vpop.f32.mrb[21].mxu0  ;;  %v685_v17 = vpop.f32.mrb[21].mxu1 }
 0x123   : > { %v939_v19 = vpack.c.bf16 %v708_v10, %v708_v10  ;;  %v709_v20 = vmax.f32 %v673_v11, 0.0  ;;  %v995_v21 = vadd.f32 %v994_v16, %v993_v12  ;;  %v686_v22 = vadd.f32 %v685_v17, %v589_v14  ;;  %v996_v60 = vpop.f32.mrb[22].mxu0  ;;  %v1040_v23 = vpop.f32.mrb[22].mxu1 }
 0x124   : > { %v714_v24 = vmax.f32 %v694_v15, 0.0  ;;  %v697_v25 = vadd.f32 %v1040_v23, %v600_v18  ;;  %v997_v26 = vpop.f32.mrb[23].mxu0  ;;  %v688_v27 = vpop.f32.mrb[23].mxu1 }
 0x125   : > { %789 = vst.msk [vmem:[%s1267_s8 + $0x20] sm:$0xf] %vm780_vm1, %v939_v19  ;;  %v940_v28 = vpack.c.bf16 %v709_v20, %v709_v20  ;;  %v581_v1 = vadd.f32 %v995_v21, %v1257_v2  ;;  %v712_v29 = vmax.f32 %v686_v22, 0.0  ;;  %v998_v30 = vadd.f32 %v997_v26, %v996_v60 }
 0x126   : > { %v945_v31 = vpack.c.bf16 %v714_v24, %v714_v24  ;;  %v715_v32 = vmax.f32 %v697_v25, 0.0  ;;  %v689_v33 = vadd.f32 %v688_v27, %v592_v48 }
 0x127   : > { %790 = vst.msk [vmem:[%s1267_s8 + $0x24] sm:$0xf] %vm780_vm1, %v940_v28  ;;  %v678_v34 = vadd.f32 %v1035_v55, %v581_v1  ;;  %v943_v53 = vpack.c.bf16 %v712_v29, %v712_v29  ;;  %v584_v35 = vadd.f32 %v998_v30, %v1257_v2 }
 0x128   : > { %795 = vst.msk [vmem:[%s1267_s8 + $0x38] sm:$0xf] %vm780_vm1, %v945_v31  ;;  %v946_v36 = vpack.c.bf16 %v715_v32, %v715_v32  ;;  %v713_v37 = vmax.f32 %v689_v33, 0.0 }
 0x129   : > { %v710_v38 = vmax.f32 %v678_v34, 0.0  ;;  %793 = vst.msk [vmem:[%s1267_s8 + $0x30] sm:$0xf] %vm780_vm1, %v943_v53  ;;  %v681_v39 = vadd.f32 %v1036_v63, %v584_v35 }
 0x12a   : > { %796 = vst.msk [vmem:[%s1267_s8 + $0x3c] sm:$0xf] %vm780_vm1, %v946_v36  ;;  %v944_v40 = vpack.c.bf16 %v713_v37, %v713_v37 }
 0x12b   : > { %v941_v41 = vpack.c.bf16 %v710_v38, %v710_v38  ;;  %v711_v42 = vmax.f32 %v681_v39, 0.0 }
 0x12c   : > { %794 = vst.msk [vmem:[%s1267_s8 + $0x34] sm:$0xf] %vm780_vm1, %v944_v40 }
 0x12d   : > { %791 = vst.msk [vmem:[%s1267_s8 + $0x28] sm:$0xf] %vm780_vm1, %v941_v41  ;;  %v942_v43 = vpack.c.bf16 %v711_v42, %v711_v42 }
 0x12f   : > { %792 = vst.msk [vmem:[%s1267_s8 + $0x2c] sm:$0xf] %vm780_vm1, %v942_v43 }
 0x130 PF: > { %s13_s12 = sadd.s32 1, %s1122_s12  }
 0x131   : > { %p10_p4 = scmp.ge.s32.totalorder %s13_s12, 4  }
 0x133   :  { %12 = sbr.rel (!%p10_p4) target bundleno = 1 (0x1), region = 62 }

// kernel: rot_invar_siamese_forward.16
= control target key start
LH: loop header
LB: loop body
LE: loop exit
PB: predicated region body
PF: predicated region fallthrough
CT: control target
= control target key end

     0   :  { %s1844_s12 = smov 0   ;;  %s2189_s0 = inlined_call_operand.vmem [shape: bf16[1024,144], index: 0, kind: input, shape index: {}]   ;;  %s2190_s1 = inlined_call_operand.vmem [shape: bf16[144,8], index: 1, kind: input, shape index: {}]   ;;  %s2191_s2 = inlined_call_operand.vmem [shape: f32[1,8], index: 2, kind: input, shape index: {}]   ;;  %s2192_s3 = inlined_call_operand.vmem [shape: bf16[1024,8], index: 3, kind: output, shape index: {}]  }
   0x1 LB: > { %s1436_s13 = sadd.s32 4294967295, %s1821_s12   ;;  %p1440_p0 = scmp.ge.s32.totalorder %s1821_s12, 1  ;;  %s1821_s12 = sphi %s1844_s12, %s13_s12  }
   0x2   : > { %p139_p1 = scmp.lt.s32.totalorder %s1821_s12, 3 }
   0x4   : > { %p140_p2 = pnand %p1440_p0, %p139_p1 }
   0x5   : > { %v1710_v0 = vld [vmem:[%s2190_s1] sm:$0xff] (!%p140_p2)   ;;  %v1823_v1 = vmov (!%p140_p2), 0   ;;  %s1441_s16 = sshll.u32 (!%p140_p2), %s1436_s13, 6  ;;  %v1711_v2 = vld [vmem:[%s2190_s1 + $0x8] sm:$0xff] (!%p140_p2)   ;;  %v1712_v3 = vld [vmem:[%s2190_s1 + $0x10] sm:$0xff] (!%p140_p2)   ;;  %vm609_vm0 = vcmask (!%p140_p2), 130048  }
   0x6   : > { %143 = sbr.rel (%p140_p2) target bundleno = 383 (0x17f), region = 32  ;;  %706 = vmatprep.subr.bf16.mxu0 (!%p140_p2), %v1823_v1  ;;  %1683 = vmatprep.subr.bf16.mxu1 (!%p140_p2), %v1823_v1  ;;  %p165_p3 = scmp.lt.s32.totalorder (!%p140_p2), %s1441_s16, 127  ;;  %v1713_v4 = vld [vmem:[%s2190_s1 + $0x18] sm:$0xff] (!%p140_p2)   ;;  %v1714_v7 = vld [vmem:[%s2190_s1 + $0x20] sm:$0xff] (!%p140_p2)   ;;  %v1715_v8 = vld [vmem:[%s2190_s1 + $0x28] sm:$0xff] (!%p140_p2)   ;;  %vm1315_vm1 = vcmask (!%p140_p2), 60416  }
   0x7   : > { %707 = vmatpush1.bf16.msra.mxu0 (!%p140_p2), %v1710_v0  ;;  %1692 = vmatpush1.bf16.msra.mxu1 (!%p140_p2), %v1710_v0  ;;  %v1716_v9 = vld [vmem:[%s2190_s1 + $0x30] sm:$0xff] (!%p140_p2)   ;;  %v1717_v10 = vld [vmem:[%s2190_s1 + $0x38] sm:$0xff] (!%p140_p2)   ;;  %v1718_v11 = vld [vmem:[%s2190_s1 + $0x40] sm:$0xff] (!%p140_p2)  }
   0x8   : > { %708 = vmatprep.subr.bf16.mxu0 (!%p140_p2), %v1823_v1  ;;  %1684 = vmatprep.subr.bf16.mxu1 (!%p140_p2), %v1823_v1 }
   0xb   : > { %709 = vmatpush1.bf16.msra.mxu0 (!%p140_p2), %v1711_v2  ;;  %1693 = vmatpush1.bf16.msra.mxu1 (!%p140_p2), %v1711_v2 }
   0xc   : > { %710 = vmatprep.subr.bf16.mxu0 (!%p140_p2), %v1823_v1  ;;  %1685 = vmatprep.subr.bf16.mxu1 (!%p140_p2), %v1823_v1 }
   0xd   : > { %s2194_s16 = smov (!%p165_p3, %s1441_s16), 127 }
   0xe   : > { %s1618_s21 = sshll.u32 %s2194_s16, 3  ;;  %s1445_s13 = sshll.u32 %s2194_s16, 2 }
   0xf   : > { %s1867_s24 = scalar_lea.vmem %s2189_s0, %s1618_s21  ;;  %711 = vmatpush1.bf16.msra.mxu0 %v1712_v3  ;;  %1694 = vmatpush1.bf16.msra.mxu1 %v1712_v3  ;;  %s1996_s16 = scalar_lea.vmem %s2192_s3, %s1445_s13 }
  0x10   : > { %v1721_v5 = vld [vmem:[%s1867_s24 + $0x4] ss:$8 sps:$4 sm:$0xff]   ;;  %712 = vmatprep.subr.bf16.mxu0 %v1823_v1  ;;  %1686 = vmatprep.subr.bf16.mxu1 %v1823_v1  ;;  %v1719_v12 = vld [vmem:[%s1867_s24] ss:$8 sps:$4 sm:$0xff]   ;;  %v1725_v14 = vld [vmem:[%s1867_s24 + $0x14] ss:$8 sps:$4 sm:$0xff]  }
  0x11   : > { %v1724_v6 = vld [vmem:[%s1867_s24 + $0x104] ss:$8 sps:$4 sm:$0xff]   ;;  %1520 = vmatprep.mubr.msk.bf16.mxu0 %vm609_vm0, %v1721_v5  ;;  %v1722_v13 = vld [vmem:[%s1867_s24 + $0x100] ss:$8 sps:$4 sm:$0xff]   ;;  %v1727_v15 = vld [vmem:[%s1867_s24 + $0x114] ss:$8 sps:$4 sm:$0xff]  }
  0x12   : > { %1536 = vmatprep.mubr.msk.bf16.mxu1 %vm609_vm0, %v1724_v6  ;;  %v1729_v16 = vld [vmem:[%s1867_s24 + $0x10] ss:$8 sps:$4 sm:$0xff]   ;;  %v1731_v18 = vld [vmem:[%s1867_s24 + $0x24] ss:$8 sps:$4 sm:$0xff]   ;;  %v1735_v20 = vld [vmem:[%s1867_s24 + $0x20] ss:$8 sps:$4 sm:$0xff]  }
  0x13   : > { %713 = vmatpush1.bf16.msra.mxu0 %v1713_v4  ;;  %1695 = vmatpush1.bf16.msra.mxu1 %v1713_v4  ;;  %v1730_v17 = vld [vmem:[%s1867_s24 + $0x110] ss:$8 sps:$4 sm:$0xff]   ;;  %v1733_v19 = vld [vmem:[%s1867_s24 + $0x124] ss:$8 sps:$4 sm:$0xff]   ;;  %v1736_v21 = vld [vmem:[%s1867_s24 + $0x120] ss:$8 sps:$4 sm:$0xff]  }
  0x14   : > { %714 = vmatprep.subr.bf16.mxu0 %v1823_v1  ;;  %1687 = vmatprep.subr.bf16.mxu1 %v1823_v1  ;;  %v1737_v22 = vld [vmem:[%s1867_s24 + $0x34] ss:$8 sps:$4 sm:$0xff]   ;;  %v1741_v24 = vld [vmem:[%s1867_s24 + $0x30] ss:$8 sps:$4 sm:$0xff]   ;;  %v1743_v26 = vld [vmem:[%s1867_s24 + $0x44] ss:$8 sps:$4 sm:$0xff]  }
  0x15   : > { %v1739_v23 = vld [vmem:[%s1867_s24 + $0x134] ss:$8 sps:$4 sm:$0xff]   ;;  %v1742_v25 = vld [vmem:[%s1867_s24 + $0x130] ss:$8 sps:$4 sm:$0xff]   ;;  %v1745_v27 = vld [vmem:[%s1867_s24 + $0x144] ss:$8 sps:$4 sm:$0xff]  }
  0x16   : > { %v1747_v28 = vld [vmem:[%s1867_s24 + $0x40] ss:$8 sps:$4 sm:$0xff]   ;;  %v1749_v30 = vld [vmem:[%s1867_s24 + $0x54] ss:$8 sps:$4 sm:$0xff]   ;;  %v1753_v32 = vld [vmem:[%s1867_s24 + $0x50] ss:$8 sps:$4 sm:$0xff]  }
  0x17   : > { %715 = vmatpush1.bf16.msra.mxu0 %v1714_v7  ;;  %1696 = vmatpush1.bf16.msra.mxu1 %v1714_v7  ;;  %v1748_v29 = vld [vmem:[%s1867_s24 + $0x140] ss:$8 sps:$4 sm:$0xff]   ;;  %v1751_v31 = vld [vmem:[%s1867_s24 + $0x154] ss:$8 sps:$4 sm:$0xff]   ;;  %v1754_v33 = vld [vmem:[%s1867_s24 + $0x150] ss:$8 sps:$4 sm:$0xff]  }
  0x18   : > { %716 = vmatprep.subr.bf16.mxu0 %v1823_v1  ;;  %1688 = vmatprep.subr.bf16.mxu1 %v1823_v1  ;;  %v1755_v34 = vld [vmem:[%s1867_s24 + $0x64] ss:$8 sps:$4 sm:$0xff]   ;;  %v1759_v36 = vld [vmem:[%s1867_s24 + $0x60] ss:$8 sps:$4 sm:$0xff]   ;;  %v1761_v38 = vld [vmem:[%s1867_s24 + $0x74] ss:$8 sps:$4 sm:$0xff]  }
  0x19   : > { %v1757_v35 = vld [vmem:[%s1867_s24 + $0x164] ss:$8 sps:$4 sm:$0xff]   ;;  %v1760_v37 = vld [vmem:[%s1867_s24 + $0x160] ss:$8 sps:$4 sm:$0xff]   ;;  %v1763_v39 = vld [vmem:[%s1867_s24 + $0x174] ss:$8 sps:$4 sm:$0xff]  }
  0x1a   : > { %v1765_v40 = vld [vmem:[%s1867_s24 + $0x70] ss:$8 sps:$4 sm:$0xff]   ;;  %v1767_v42 = vld [vmem:[%s1867_s24 + $0x84] ss:$8 sps:$4 sm:$0xff]   ;;  %v1771_v44 = vld [vmem:[%s1867_s24 + $0x80] ss:$8 sps:$4 sm:$0xff]  }
  0x1b   : > { %717 = vmatpush1.bf16.msra.mxu0 %v1715_v8  ;;  %1697 = vmatpush1.bf16.msra.mxu1 %v1715_v8  ;;  %v1766_v41 = vld [vmem:[%s1867_s24 + $0x170] ss:$8 sps:$4 sm:$0xff]   ;;  %v1769_v43 = vld [vmem:[%s1867_s24 + $0x184] ss:$8 sps:$4 sm:$0xff]   ;;  %v1772_v45 = vld [vmem:[%s1867_s24 + $0x180] ss:$8 sps:$4 sm:$0xff]  }
  0x1c   : > { %718 = vmatprep.subr.bf16.mxu0 %v1823_v1  ;;  %1689 = vmatprep.subr.bf16.mxu1 %v1823_v1  ;;  %v1773_v46 = vld [vmem:[%s1867_s24 + $0x94] ss:$8 sps:$4 sm:$0xff]   ;;  %v1777_v48 = vld [vmem:[%s1867_s24 + $0x90] ss:$8 sps:$4 sm:$0xff]   ;;  %v1779_v50 = vld [vmem:[%s1867_s24 + $0xa4] ss:$8 sps:$4 sm:$0xff]  }
  0x1d   : > { %v1775_v47 = vld [vmem:[%s1867_s24 + $0x194] ss:$8 sps:$4 sm:$0xff]   ;;  %v1778_v49 = vld [vmem:[%s1867_s24 + $0x190] ss:$8 sps:$4 sm:$0xff]   ;;  %v1781_v51 = vld [vmem:[%s1867_s24 + $0x1a4] ss:$8 sps:$4 sm:$0xff]  }
  0x1e   : > { %v1783_v52 = vld [vmem:[%s1867_s24 + $0xa0] ss:$8 sps:$4 sm:$0xff]   ;;  %v1785_v54 = vld [vmem:[%s1867_s24 + $0xb4] ss:$8 sps:$4 sm:$0xff]   ;;  %v1789_v56 = vld [vmem:[%s1867_s24 + $0xb0] ss:$8 sps:$4 sm:$0xff]  }
  0x1f   : > { %719 = vmatpush1.bf16.msra.mxu0 %v1716_v9  ;;  %1698 = vmatpush1.bf16.msra.mxu1 %v1716_v9  ;;  %v1784_v53 = vld [vmem:[%s1867_s24 + $0x1a0] ss:$8 sps:$4 sm:$0xff]   ;;  %v1787_v55 = vld [vmem:[%s1867_s24 + $0x1b4] ss:$8 sps:$4 sm:$0xff]   ;;  %v1790_v57 = vld [vmem:[%s1867_s24 + $0x1b0] ss:$8 sps:$4 sm:$0xff]  }
  0x20   : > { %720 = vmatprep.subr.bf16.mxu0 %v1823_v1  ;;  %1690 = vmatprep.subr.bf16.mxu1 %v1823_v1  ;;  %v1791_v58 = vld [vmem:[%s1867_s24 + $0xc4] ss:$8 sps:$4 sm:$0xff]   ;;  %v1795_v60 = vld [vmem:[%s1867_s24 + $0xc0] ss:$8 sps:$4 sm:$0xff]   ;;  %v1797_v62 = vld [vmem:[%s1867_s24 + $0xd4] ss:$8 sps:$4 sm:$0xff]  }
  0x21   : > { %v1793_v59 = vld [vmem:[%s1867_s24 + $0x1c4] ss:$8 sps:$4 sm:$0xff]   ;;  %v1796_v61 = vld [vmem:[%s1867_s24 + $0x1c0] ss:$8 sps:$4 sm:$0xff]   ;;  %v1799_v63 = vld [vmem:[%s1867_s24 + $0x1d4] ss:$8 sps:$4 sm:$0xff]  }
  0x22   : > { %v1801_v0 = vld [vmem:[%s1867_s24 + $0xd0] ss:$8 sps:$4 sm:$0xff]   ;;  %v1803_v2 = vld [vmem:[%s1867_s24 + $0xe4] ss:$8 sps:$4 sm:$0xff]   ;;  %v1807_v4 = vld [vmem:[%s1867_s24 + $0xe0] ss:$8 sps:$4 sm:$0xff]  }
  0x23   : > { %721 = vmatpush1.bf16.msra.mxu0 %v1717_v10  ;;  %1699 = vmatpush1.bf16.msra.mxu1 %v1717_v10  ;;  %v1805_v3 = vld [vmem:[%s1867_s24 + $0x1e4] ss:$8 sps:$4 sm:$0xff]   ;;  %v1808_v5 = vld [vmem:[%s1867_s24 + $0x1e0] ss:$8 sps:$4 sm:$0xff]   ;;  %v1809_v6 = vld [vmem:[%s1867_s24 + $0xf4] ss:$8 sps:$4 sm:$0xff]  }
  0x24   : > { %722 = vmatprep.subr.bf16.mxu0 %v1823_v1  ;;  %1691 = vmatprep.subr.bf16.mxu1 %v1823_v1  ;;  %v1802_v1 = vld [vmem:[%s1867_s24 + $0x1d0] ss:$8 sps:$4 sm:$0xff]   ;;  %v1811_v7 = vld [vmem:[%s1867_s24 + $0x1f4] ss:$8 sps:$4 sm:$0xff]   ;;  %v1986_v10 = vld [vmem:[%s2191_s2] ss:$0 sm:$0xff] }
  0x25   : > { %v1813_v8 = vld [vmem:[%s1867_s24 + $0xf0] ss:$8 sps:$4 sm:$0xff]  }
  0x26   : > { %v1814_v9 = vld [vmem:[%s1867_s24 + $0x1f0] ss:$8 sps:$4 sm:$0xff]  }
  0x27   : > { %723 = vmatpush1.bf16.msra.mxu0 %v1718_v11  ;;  %1700 = vmatpush1.bf16.msra.mxu1 %v1718_v11 }
  0x2a   : > { %739 = vmatmul.mubr.bf16.vlgmr.msra.gmra.mrb[0].mxu0 %v1719_v12  ;;  %867 = vmatmul.mubr.bf16.vlgmr.msra.gmra.mrb[0].mxu1 %v1722_v13 }
  0x2b   : > { %1521 = vmatprep.mubr.msk.bf16.mxu0 %vm609_vm0, %v1725_v14  ;;  %1537 = vmatprep.mubr.msk.bf16.mxu1 %vm609_vm0, %v1727_v15 }
  0x32   : > { %747 = vmatmul.mubr.bf16.gmra.mrb[4].mxu0 %v1729_v16  ;;  %875 = vmatmul.mubr.bf16.gmra.mrb[4].mxu1 %v1730_v17 }
  0x33   : > { %1522 = vmatprep.mubr.msk.bf16.mxu0 %vm609_vm0, %v1731_v18  ;;  %1538 = vmatprep.mubr.msk.bf16.mxu1 %vm609_vm0, %v1733_v19 }
  0x3a   : > { %755 = vmatmul.mubr.bf16.gmra.mrb[8].mxu0 %v1735_v20  ;;  %883 = vmatmul.mubr.bf16.gmra.mrb[8].mxu1 %v1736_v21 }
  0x3b   : > { %1523 = vmatprep.mubr.msk.bf16.mxu0 %vm609_vm0, %v1737_v22  ;;  %1539 = vmatprep.mubr.msk.bf16.mxu1 %vm609_vm0, %v1739_v23 }
  0x42   : > { %763 = vmatmul.mubr.bf16.gmra.mrb[12].mxu0 %v1741_v24  ;;  %891 = vmatmul.mubr.bf16.gmra.mrb[12].mxu1 %v1742_v25 }
  0x43   : > { %1524 = vmatprep.mubr.msk.bf16.mxu0 %vm609_vm0, %v1743_v26  ;;  %1540 = vmatprep.mubr.msk.bf16.mxu1 %vm609_vm0, %v1745_v27 }
  0x4a   : > { %771 = vmatmul.mubr.bf16.gmra.mrb[16].mxu0 %v1747_v28  ;;  %899 = vmatmul.mubr.bf16.gmra.mrb[16].mxu1 %v1748_v29 }
  0x4b   : > { %1525 = vmatprep.mubr.msk.bf16.mxu0 %vm609_vm0, %v1749_v30  ;;  %1541 = vmatprep.mubr.msk.bf16.mxu1 %vm609_vm0, %v1751_v31 }
  0x52   : > { %779 = vmatmul.mubr.bf16.gmra.mrb[20].mxu0 %v1753_v32  ;;  %907 = vmatmul.mubr.bf16.gmra.mrb[20].mxu1 %v1754_v33 }
  0x53   : > { %1526 = vmatprep.mubr.msk.bf16.mxu0 %vm609_vm0, %v1755_v34  ;;  %1542 = vmatprep.mubr.msk.bf16.mxu1 %vm609_vm0, %v1757_v35 }
  0x5a   : > { %787 = vmatmul.mubr.bf16.gmra.mrb[24].mxu0 %v1759_v36  ;;  %915 = vmatmul.mubr.bf16.gmra.mrb[24].mxu1 %v1760_v37 }
  0x5b   : > { %1527 = vmatprep.mubr.msk.bf16.mxu0 %vm609_vm0, %v1761_v38  ;;  %1543 = vmatprep.mubr.msk.bf16.mxu1 %vm609_vm0, %v1763_v39 }
  0x62   : > { %795 = vmatmul.mubr.bf16.gmra.mrb[28].mxu0 %v1765_v40  ;;  %923 = vmatmul.mubr.bf16.gmra.mrb[28].mxu1 %v1766_v41 }
  0x63   : > { %1528 = vmatprep.mubr.msk.bf16.mxu0 %vm609_vm0, %v1767_v42  ;;  %1544 = vmatprep.mubr.msk.bf16.mxu1 %vm609_vm0, %v1769_v43 }
  0x6a   : > { %803 = vmatmul.mubr.bf16.gmra.mrb[32].mxu0 %v1771_v44  ;;  %931 = vmatmul.mubr.bf16.gmra.mrb[32].mxu1 %v1772_v45 }
  0x6b   : > { %1529 = vmatprep.mubr.msk.bf16.mxu0 %vm609_vm0, %v1773_v46  ;;  %1545 = vmatprep.mubr.msk.bf16.mxu1 %vm609_vm0, %v1775_v47 }
  0x72   : > { %811 = vmatmul.mubr.bf16.gmra.mrb[36].mxu0 %v1777_v48  ;;  %939 = vmatmul.mubr.bf16.gmra.mrb[36].mxu1 %v1778_v49 }
  0x73   : > { %1530 = vmatprep.mubr.msk.bf16.mxu0 %vm609_vm0, %v1779_v50  ;;  %1546 = vmatprep.mubr.msk.bf16.mxu1 %vm609_vm0, %v1781_v51 }
  0x7a   : > { %819 = vmatmul.mubr.bf16.gmra.mrb[40].mxu0 %v1783_v52  ;;  %947 = vmatmul.mubr.bf16.gmra.mrb[40].mxu1 %v1784_v53 }
  0x7b   : > { %1531 = vmatprep.mubr.msk.bf16.mxu0 %vm609_vm0, %v1785_v54  ;;  %1547 = vmatprep.mubr.msk.bf16.mxu1 %vm609_vm0, %v1787_v55 }
  0x82   : > { %827 = vmatmul.mubr.bf16.gmra.mrb[44].mxu0 %v1789_v56  ;;  %955 = vmatmul.mubr.bf16.gmra.mrb[44].mxu1 %v1790_v57 }
  0x83   : > { %1532 = vmatprep.mubr.msk.bf16.mxu0 %vm609_vm0, %v1791_v58  ;;  %1548 = vmatprep.mubr.msk.bf16.mxu1 %vm609_vm0, %v1793_v59 }
  0x8a   : > { %835 = vmatmul.mubr.bf16.gmra.mrb[48].mxu0 %v1795_v60  ;;  %963 = vmatmul.mubr.bf16.gmra.mrb[48].mxu1 %v1796_v61 }
  0x8b   : > { %1533 = vmatprep.mubr.msk.bf16.mxu0 %vm609_vm0, %v1797_v62  ;;  %1549 = vmatprep.mubr.msk.bf16.mxu1 %vm609_vm0, %v1799_v63 }
  0x92   : > { %843 = vmatmul.mubr.bf16.gmra.mrb[52].mxu0 %v1801_v0  ;;  %971 = vmatmul.mubr.bf16.gmra.mrb[52].mxu1 %v1802_v1 }
  0x93   : > { %1534 = vmatprep.mubr.msk.bf16.mxu0 %vm609_vm0, %v1803_v2  ;;  %1550 = vmatprep.mubr.msk.bf16.mxu1 %vm609_vm0, %v1805_v3 }
  0x9a   : > { %851 = vmatmul.mubr.bf16.gmra.mrb[56].mxu0 %v1807_v4  ;;  %979 = vmatmul.mubr.bf16.gmra.mrb[56].mxu1 %v1808_v5 }
  0x9b   : > { %1535 = vmatprep.mubr.msk.bf16.mxu0 %vm609_vm0, %v1809_v6  ;;  %1551 = vmatprep.mubr.msk.bf16.mxu1 %vm609_vm0, %v1811_v7 }
  0xa2   : > { %859 = vmatmul.mubr.bf16.gmra.mrb[60].mxu0 %v1813_v8  ;;  %987 = vmatmul.mubr.bf16.gmra.mrb[60].mxu1 %v1814_v9 }
  0xfd   : > { %v740_v11 = vpop.f32.mrb[0].mxu0  ;;  %v868_v12 = vpop.f32.mrb[0].mxu1 }
  0xfe   : > { %v741_v13 = vadd.f32 %v1986_v10, %v740_v11  ;;  %v869_v14 = vadd.f32 %v1986_v10, %v868_v12  ;;  %v742_v15 = vpop.f32.mrb[1].mxu0  ;;  %v870_v16 = vpop.f32.mrb[1].mxu1 }
  0xff   : > { %v743_v17 = vpop.f32.mrb[2].mxu0  ;;  %v871_v18 = vpop.f32.mrb[2].mxu1 }
 0x100   : > { %v995_v19 = vmax.f32 %v741_v13, 0.0  ;;  %v1027_v20 = vmax.f32 %v869_v14, 0.0  ;;  %v744_v21 = vadd.f32 %v1986_v10, %v743_v17  ;;  %v872_v22 = vadd.f32 %v1986_v10, %v871_v18  ;;  %v745_v23 = vpop.f32.mrb[3].mxu0  ;;  %v873_v24 = vpop.f32.mrb[3].mxu1 }
 0x102   : > { %v1619_v25 = vpack.c.bf16 %v995_v19, %v995_v19  ;;  %v1651_v26 = vpack.c.bf16 %v1027_v20, %v1027_v20  ;;  %v996_v27 = vmax.f32 %v744_v21, 0.0  ;;  %v1028_v28 = vmax.f32 %v872_v22, 0.0 }
 0x104   : > { %1316 = vst.msk [vmem:[%s1996_s16] sm:$0xf] %vm1315_vm1, %v1619_v25  ;;  %1348 = vst.msk [vmem:[%s1996_s16 + $0x80] sm:$0xf] %vm1315_vm1, %v1651_v26  ;;  %v1620_v29 = vpack.c.bf16 %v996_v27, %v996_v27  ;;  %v1652_v30 = vpack.c.bf16 %v1028_v28, %v1028_v28 }
 0x105   : > { %v748_v31 = vpop.f32.mrb[4].mxu0  ;;  %v876_v32 = vpop.f32.mrb[4].mxu1 }
 0x106   : > { %1317 = vst.msk [vmem:[%s1996_s16 + $0x4] sm:$0xf] %vm1315_vm1, %v1620_v29  ;;  %1349 = vst.msk [vmem:[%s1996_s16 + $0x84] sm:$0xf] %vm1315_vm1, %v1652_v30  ;;  %v749_v33 = vadd.f32 %v1986_v10, %v748_v31  ;;  %v877_v34 = vadd.f32 %v1986_v10, %v876_v32  ;;  %v750_v35 = vpop.f32.mrb[5].mxu0  ;;  %v878_v36 = vpop.f32.mrb[5].mxu1 }
 0x107   : > { %v751_v37 = vpop.f32.mrb[6].mxu0  ;;  %v879_v38 = vpop.f32.mrb[6].mxu1 }
 0x108   : > { %v997_v39 = vmax.f32 %v749_v33, 0.0  ;;  %v1029_v40 = vmax.f32 %v877_v34, 0.0  ;;  %v752_v41 = vadd.f32 %v1986_v10, %v751_v37  ;;  %v880_v42 = vadd.f32 %v1986_v10, %v879_v38  ;;  %v753_v43 = vpop.f32.mrb[7].mxu0  ;;  %v881_v44 = vpop.f32.mrb[7].mxu1 }
 0x10a   : > { %v1621_v45 = vpack.c.bf16 %v997_v39, %v997_v39  ;;  %v1653_v46 = vpack.c.bf16 %v1029_v40, %v1029_v40  ;;  %v998_v47 = vmax.f32 %v752_v41, 0.0  ;;  %v1030_v48 = vmax.f32 %v880_v42, 0.0 }
 0x10c   : > { %1318 = vst.msk [vmem:[%s1996_s16 + $0x8] sm:$0xf] %vm1315_vm1, %v1621_v45  ;;  %1350 = vst.msk [vmem:[%s1996_s16 + $0x88] sm:$0xf] %vm1315_vm1, %v1653_v46  ;;  %v1622_v49 = vpack.c.bf16 %v998_v47, %v998_v47  ;;  %v1654_v50 = vpack.c.bf16 %v1030_v48, %v1030_v48 }
 0x10d   : > { %v756_v51 = vpop.f32.mrb[8].mxu0  ;;  %v884_v52 = vpop.f32.mrb[8].mxu1 }
 0x10e   : > { %1319 = vst.msk [vmem:[%s1996_s16 + $0xc] sm:$0xf] %vm1315_vm1, %v1622_v49  ;;  %1351 = vst.msk [vmem:[%s1996_s16 + $0x8c] sm:$0xf] %vm1315_vm1, %v1654_v50  ;;  %v757_v53 = vadd.f32 %v1986_v10, %v756_v51  ;;  %v885_v54 = vadd.f32 %v1986_v10, %v884_v52  ;;  %v758_v55 = vpop.f32.mrb[9].mxu0  ;;  %v886_v56 = vpop.f32.mrb[9].mxu1 }
 0x10f   : > { %v759_v57 = vpop.f32.mrb[10].mxu0  ;;  %v887_v58 = vpop.f32.mrb[10].mxu1 }
 0x110   : > { %v999_v59 = vmax.f32 %v757_v53, 0.0  ;;  %v1031_v60 = vmax.f32 %v885_v54, 0.0  ;;  %v760_v61 = vadd.f32 %v1986_v10, %v759_v57  ;;  %v888_v62 = vadd.f32 %v1986_v10, %v887_v58  ;;  %v761_v63 = vpop.f32.mrb[11].mxu0  ;;  %v889_v0 = vpop.f32.mrb[11].mxu1 }
 0x112   : > { %v1623_v1 = vpack.c.bf16 %v999_v59, %v999_v59  ;;  %v1655_v2 = vpack.c.bf16 %v1031_v60, %v1031_v60  ;;  %v1000_v3 = vmax.f32 %v760_v61, 0.0  ;;  %v1032_v4 = vmax.f32 %v888_v62, 0.0 }
 0x114   : > { %1320 = vst.msk [vmem:[%s1996_s16 + $0x10] sm:$0xf] %vm1315_vm1, %v1623_v1  ;;  %1352 = vst.msk [vmem:[%s1996_s16 + $0x90] sm:$0xf] %vm1315_vm1, %v1655_v2  ;;  %v1624_v5 = vpack.c.bf16 %v1000_v3, %v1000_v3  ;;  %v1656_v6 = vpack.c.bf16 %v1032_v4, %v1032_v4 }
 0x115   : > { %v764_v7 = vpop.f32.mrb[12].mxu0  ;;  %v892_v8 = vpop.f32.mrb[12].mxu1 }
 0x116   : > { %1321 = vst.msk [vmem:[%s1996_s16 + $0x14] sm:$0xf] %vm1315_vm1, %v1624_v5  ;;  %1353 = vst.msk [vmem:[%s1996_s16 + $0x94] sm:$0xf] %vm1315_vm1, %v1656_v6  ;;  %v765_v9 = vadd.f32 %v1986_v10, %v764_v7  ;;  %v893_v11 = vadd.f32 %v1986_v10, %v892_v8  ;;  %v766_v12 = vpop.f32.mrb[13].mxu0  ;;  %v894_v13 = vpop.f32.mrb[13].mxu1 }
 0x117   : > { %v767_v14 = vpop.f32.mrb[14].mxu0  ;;  %v895_v15 = vpop.f32.mrb[14].mxu1 }
 0x118   : > { %v1001_v16 = vmax.f32 %v765_v9, 0.0  ;;  %v1033_v17 = vmax.f32 %v893_v11, 0.0  ;;  %v768_v18 = vadd.f32 %v1986_v10, %v767_v14  ;;  %v896_v19 = vadd.f32 %v1986_v10, %v895_v15  ;;  %v769_v20 = vpop.f32.mrb[15].mxu0  ;;  %v897_v21 = vpop.f32.mrb[15].mxu1 }
 0x11a   : > { %v1625_v22 = vpack.c.bf16 %v1001_v16, %v1001_v16  ;;  %v1657_v23 = vpack.c.bf16 %v1033_v17, %v1033_v17  ;;  %v1002_v24 = vmax.f32 %v768_v18, 0.0  ;;  %v1034_v25 = vmax.f32 %v896_v19, 0.0 }
 0x11c   : > { %1322 = vst.msk [vmem:[%s1996_s16 + $0x18] sm:$0xf] %vm1315_vm1, %v1625_v22  ;;  %1354 = vst.msk [vmem:[%s1996_s16 + $0x98] sm:$0xf] %vm1315_vm1, %v1657_v23  ;;  %v1626_v26 = vpack.c.bf16 %v1002_v24, %v1002_v24  ;;  %v1658_v27 = vpack.c.bf16 %v1034_v25, %v1034_v25 }
 0x11d   : > { %v772_v28 = vpop.f32.mrb[16].mxu0  ;;  %v900_v29 = vpop.f32.mrb[16].mxu1 }
 0x11e   : > { %1323 = vst.msk [vmem:[%s1996_s16 + $0x1c] sm:$0xf] %vm1315_vm1, %v1626_v26  ;;  %1355 = vst.msk [vmem:[%s1996_s16 + $0x9c] sm:$0xf] %vm1315_vm1, %v1658_v27  ;;  %v773_v30 = vadd.f32 %v1986_v10, %v772_v28  ;;  %v901_v31 = vadd.f32 %v1986_v10, %v900_v29  ;;  %v774_v32 = vpop.f32.mrb[17].mxu0  ;;  %v902_v33 = vpop.f32.mrb[17].mxu1 }
 0x11f   : > { %v775_v34 = vpop.f32.mrb[18].mxu0  ;;  %v903_v35 = vpop.f32.mrb[18].mxu1 }
 0x120   : > { %v1003_v36 = vmax.f32 %v773_v30, 0.0  ;;  %v1035_v37 = vmax.f32 %v901_v31, 0.0  ;;  %v776_v38 = vadd.f32 %v1986_v10, %v775_v34  ;;  %v904_v39 = vadd.f32 %v1986_v10, %v903_v35  ;;  %v777_v40 = vpop.f32.mrb[19].mxu0  ;;  %v905_v41 = vpop.f32.mrb[19].mxu1 }
 0x122   : > { %v1627_v42 = vpack.c.bf16 %v1003_v36, %v1003_v36  ;;  %v1659_v43 = vpack.c.bf16 %v1035_v37, %v1035_v37  ;;  %v1004_v44 = vmax.f32 %v776_v38, 0.0  ;;  %v1036_v45 = vmax.f32 %v904_v39, 0.0 }
 0x124   : > { %1324 = vst.msk [vmem:[%s1996_s16 + $0x20] sm:$0xf] %vm1315_vm1, %v1627_v42  ;;  %1356 = vst.msk [vmem:[%s1996_s16 + $0xa0] sm:$0xf] %vm1315_vm1, %v1659_v43  ;;  %v1628_v46 = vpack.c.bf16 %v1004_v44, %v1004_v44  ;;  %v1660_v47 = vpack.c.bf16 %v1036_v45, %v1036_v45 }
 0x125   : > { %v780_v48 = vpop.f32.mrb[20].mxu0  ;;  %v908_v49 = vpop.f32.mrb[20].mxu1 }
 0x126   : > { %1325 = vst.msk [vmem:[%s1996_s16 + $0x24] sm:$0xf] %vm1315_vm1, %v1628_v46  ;;  %1357 = vst.msk [vmem:[%s1996_s16 + $0xa4] sm:$0xf] %vm1315_vm1, %v1660_v47  ;;  %v781_v50 = vadd.f32 %v1986_v10, %v780_v48  ;;  %v909_v51 = vadd.f32 %v1986_v10, %v908_v49  ;;  %v782_v52 = vpop.f32.mrb[21].mxu0  ;;  %v910_v53 = vpop.f32.mrb[21].mxu1 }
 0x127   : > { %v783_v54 = vpop.f32.mrb[22].mxu0  ;;  %v911_v55 = vpop.f32.mrb[22].mxu1 }
 0x128   : > { %v1005_v56 = vmax.f32 %v781_v50, 0.0  ;;  %v1037_v57 = vmax.f32 %v909_v51, 0.0  ;;  %v784_v58 = vadd.f32 %v1986_v10, %v783_v54  ;;  %v912_v59 = vadd.f32 %v1986_v10, %v911_v55  ;;  %v785_v60 = vpop.f32.mrb[23].mxu0  ;;  %v913_v61 = vpop.f32.mrb[23].mxu1 }
 0x12a   : > { %v1629_v62 = vpack.c.bf16 %v1005_v56, %v1005_v56  ;;  %v1661_v63 = vpack.c.bf16 %v1037_v57, %v1037_v57  ;;  %v1006_v0 = vmax.f32 %v784_v58, 0.0  ;;  %v1038_v1 = vmax.f32 %v912_v59, 0.0 }
 0x12c   : > { %1326 = vst.msk [vmem:[%s1996_s16 + $0x28] sm:$0xf] %vm1315_vm1, %v1629_v62  ;;  %1358 = vst.msk [vmem:[%s1996_s16 + $0xa8] sm:$0xf] %vm1315_vm1, %v1661_v63  ;;  %v1630_v2 = vpack.c.bf16 %v1006_v0, %v1006_v0  ;;  %v1662_v3 = vpack.c.bf16 %v1038_v1, %v1038_v1 }
 0x12d   : > { %v788_v4 = vpop.f32.mrb[24].mxu0  ;;  %v916_v5 = vpop.f32.mrb[24].mxu1 }
 0x12e   : > { %1327 = vst.msk [vmem:[%s1996_s16 + $0x2c] sm:$0xf] %vm1315_vm1, %v1630_v2  ;;  %1359 = vst.msk [vmem:[%s1996_s16 + $0xac] sm:$0xf] %vm1315_vm1, %v1662_v3  ;;  %v789_v6 = vadd.f32 %v1986_v10, %v788_v4  ;;  %v917_v7 = vadd.f32 %v1986_v10, %v916_v5  ;;  %v790_v8 = vpop.f32.mrb[25].mxu0  ;;  %v918_v9 = vpop.f32.mrb[25].mxu1 }
 0x12f   : > { %v791_v11 = vpop.f32.mrb[26].mxu0  ;;  %v919_v12 = vpop.f32.mrb[26].mxu1 }
 0x130   : > { %v1007_v13 = vmax.f32 %v789_v6, 0.0  ;;  %v1039_v14 = vmax.f32 %v917_v7, 0.0  ;;  %v792_v15 = vadd.f32 %v1986_v10, %v791_v11  ;;  %v920_v16 = vadd.f32 %v1986_v10, %v919_v12  ;;  %v793_v17 = vpop.f32.mrb[27].mxu0  ;;  %v921_v18 = vpop.f32.mrb[27].mxu1 }
 0x132   : > { %v1631_v19 = vpack.c.bf16 %v1007_v13, %v1007_v13  ;;  %v1663_v20 = vpack.c.bf16 %v1039_v14, %v1039_v14  ;;  %v1008_v21 = vmax.f32 %v792_v15, 0.0  ;;  %v1040_v22 = vmax.f32 %v920_v16, 0.0 }
 0x134   : > { %1328 = vst.msk [vmem:[%s1996_s16 + $0x30] sm:$0xf] %vm1315_vm1, %v1631_v19  ;;  %1360 = vst.msk [vmem:[%s1996_s16 + $0xb0] sm:$0xf] %vm1315_vm1, %v1663_v20  ;;  %v1632_v23 = vpack.c.bf16 %v1008_v21, %v1008_v21  ;;  %v1664_v24 = vpack.c.bf16 %v1040_v22, %v1040_v22 }
 0x135   : > { %v796_v25 = vpop.f32.mrb[28].mxu0  ;;  %v924_v26 = vpop.f32.mrb[28].mxu1 }
 0x136   : > { %1329 = vst.msk [vmem:[%s1996_s16 + $0x34] sm:$0xf] %vm1315_vm1, %v1632_v23  ;;  %1361 = vst.msk [vmem:[%s1996_s16 + $0xb4] sm:$0xf] %vm1315_vm1, %v1664_v24  ;;  %v797_v27 = vadd.f32 %v1986_v10, %v796_v25  ;;  %v925_v28 = vadd.f32 %v1986_v10, %v924_v26  ;;  %v798_v29 = vpop.f32.mrb[29].mxu0  ;;  %v926_v30 = vpop.f32.mrb[29].mxu1 }
 0x137   : > { %v799_v31 = vpop.f32.mrb[30].mxu0  ;;  %v927_v32 = vpop.f32.mrb[30].mxu1 }
 0x138   : > { %v1009_v33 = vmax.f32 %v797_v27, 0.0  ;;  %v1041_v34 = vmax.f32 %v925_v28, 0.0  ;;  %v800_v35 = vadd.f32 %v1986_v10, %v799_v31  ;;  %v928_v36 = vadd.f32 %v1986_v10, %v927_v32  ;;  %v801_v37 = vpop.f32.mrb[31].mxu0  ;;  %v929_v38 = vpop.f32.mrb[31].mxu1 }
 0x13a   : > { %v1633_v39 = vpack.c.bf16 %v1009_v33, %v1009_v33  ;;  %v1665_v40 = vpack.c.bf16 %v1041_v34, %v1041_v34  ;;  %v1010_v41 = vmax.f32 %v800_v35, 0.0  ;;  %v1042_v42 = vmax.f32 %v928_v36, 0.0 }
 0x13c   : > { %1330 = vst.msk [vmem:[%s1996_s16 + $0x38] sm:$0xf] %vm1315_vm1, %v1633_v39  ;;  %1362 = vst.msk [vmem:[%s1996_s16 + $0xb8] sm:$0xf] %vm1315_vm1, %v1665_v40  ;;  %v1634_v43 = vpack.c.bf16 %v1010_v41, %v1010_v41  ;;  %v1666_v44 = vpack.c.bf16 %v1042_v42, %v1042_v42 }
 0x13d   : > { %v804_v45 = vpop.f32.mrb[32].mxu0  ;;  %v932_v46 = vpop.f32.mrb[32].mxu1 }
 0x13e   : > { %1331 = vst.msk [vmem:[%s1996_s16 + $0x3c] sm:$0xf] %vm1315_vm1, %v1634_v43  ;;  %1363 = vst.msk [vmem:[%s1996_s16 + $0xbc] sm:$0xf] %vm1315_vm1, %v1666_v44  ;;  %v805_v47 = vadd.f32 %v1986_v10, %v804_v45  ;;  %v933_v48 = vadd.f32 %v1986_v10, %v932_v46  ;;  %v806_v49 = vpop.f32.mrb[33].mxu0  ;;  %v934_v50 = vpop.f32.mrb[33].mxu1 }
 0x13f   : > { %v807_v51 = vpop.f32.mrb[34].mxu0  ;;  %v935_v52 = vpop.f32.mrb[34].mxu1 }
 0x140   : > { %v1011_v53 = vmax.f32 %v805_v47, 0.0  ;;  %v1043_v54 = vmax.f32 %v933_v48, 0.0  ;;  %v808_v55 = vadd.f32 %v1986_v10, %v807_v51  ;;  %v936_v56 = vadd.f32 %v1986_v10, %v935_v52  ;;  %v809_v57 = vpop.f32.mrb[35].mxu0  ;;  %v937_v58 = vpop.f32.mrb[35].mxu1 }
 0x142   : > { %v1635_v59 = vpack.c.bf16 %v1011_v53, %v1011_v53  ;;  %v1667_v60 = vpack.c.bf16 %v1043_v54, %v1043_v54  ;;  %v1012_v61 = vmax.f32 %v808_v55, 0.0  ;;  %v1044_v62 = vmax.f32 %v936_v56, 0.0 }
 0x144   : > { %1332 = vst.msk [vmem:[%s1996_s16 + $0x40] sm:$0xf] %vm1315_vm1, %v1635_v59  ;;  %1364 = vst.msk [vmem:[%s1996_s16 + $0xc0] sm:$0xf] %vm1315_vm1, %v1667_v60  ;;  %v1636_v63 = vpack.c.bf16 %v1012_v61, %v1012_v61  ;;  %v1668_v0 = vpack.c.bf16 %v1044_v62, %v1044_v62 }
 0x145   : > { %v812_v1 = vpop.f32.mrb[36].mxu0  ;;  %v940_v2 = vpop.f32.mrb[36].mxu1 }
 0x146   : > { %1333 = vst.msk [vmem:[%s1996_s16 + $0x44] sm:$0xf] %vm1315_vm1, %v1636_v63  ;;  %1365 = vst.msk [vmem:[%s1996_s16 + $0xc4] sm:$0xf] %vm1315_vm1, %v1668_v0  ;;  %v813_v3 = vadd.f32 %v1986_v10, %v812_v1  ;;  %v941_v4 = vadd.f32 %v1986_v10, %v940_v2  ;;  %v814_v5 = vpop.f32.mrb[37].mxu0  ;;  %v942_v6 = vpop.f32.mrb[37].mxu1 }
 0x147   : > { %v815_v7 = vpop.f32.mrb[38].mxu0  ;;  %v943_v8 = vpop.f32.mrb[38].mxu1 }
 0x148   : > { %v1013_v9 = vmax.f32 %v813_v3, 0.0  ;;  %v1045_v11 = vmax.f32 %v941_v4, 0.0  ;;  %v816_v12 = vadd.f32 %v1986_v10, %v815_v7  ;;  %v944_v13 = vadd.f32 %v1986_v10, %v943_v8  ;;  %v817_v14 = vpop.f32.mrb[39].mxu0  ;;  %v945_v15 = vpop.f32.mrb[39].mxu1 }
 0x14a   : > { %v1637_v16 = vpack.c.bf16 %v1013_v9, %v1013_v9  ;;  %v1669_v17 = vpack.c.bf16 %v1045_v11, %v1045_v11  ;;  %v1014_v18 = vmax.f32 %v816_v12, 0.0  ;;  %v1046_v19 = vmax.f32 %v944_v13, 0.0 }
 0x14c   : > { %1334 = vst.msk [vmem:[%s1996_s16 + $0x48] sm:$0xf] %vm1315_vm1, %v1637_v16  ;;  %1366 = vst.msk [vmem:[%s1996_s16 + $0xc8] sm:$0xf] %vm1315_vm1, %v1669_v17  ;;  %v1638_v20 = vpack.c.bf16 %v1014_v18, %v1014_v18  ;;  %v1670_v21 = vpack.c.bf16 %v1046_v19, %v1046_v19 }
 0x14d   : > { %v820_v22 = vpop.f32.mrb[40].mxu0  ;;  %v948_v23 = vpop.f32.mrb[40].mxu1 }
 0x14e   : > { %1335 = vst.msk [vmem:[%s1996_s16 + $0x4c] sm:$0xf] %vm1315_vm1, %v1638_v20  ;;  %1367 = vst.msk [vmem:[%s1996_s16 + $0xcc] sm:$0xf] %vm1315_vm1, %v1670_v21  ;;  %v821_v24 = vadd.f32 %v1986_v10, %v820_v22  ;;  %v949_v25 = vadd.f32 %v1986_v10, %v948_v23  ;;  %v822_v26 = vpop.f32.mrb[41].mxu0  ;;  %v950_v27 = vpop.f32.mrb[41].mxu1 }
 0x14f   : > { %v823_v28 = vpop.f32.mrb[42].mxu0  ;;  %v951_v29 = vpop.f32.mrb[42].mxu1 }
 0x150   : > { %v1015_v30 = vmax.f32 %v821_v24, 0.0  ;;  %v1047_v31 = vmax.f32 %v949_v25, 0.0  ;;  %v824_v32 = vadd.f32 %v1986_v10, %v823_v28  ;;  %v952_v33 = vadd.f32 %v1986_v10, %v951_v29  ;;  %v825_v34 = vpop.f32.mrb[43].mxu0  ;;  %v953_v35 = vpop.f32.mrb[43].mxu1 }
 0x152   : > { %v1639_v36 = vpack.c.bf16 %v1015_v30, %v1015_v30  ;;  %v1671_v37 = vpack.c.bf16 %v1047_v31, %v1047_v31  ;;  %v1016_v38 = vmax.f32 %v824_v32, 0.0  ;;  %v1048_v39 = vmax.f32 %v952_v33, 0.0 }
 0x154   : > { %1336 = vst.msk [vmem:[%s1996_s16 + $0x50] sm:$0xf] %vm1315_vm1, %v1639_v36  ;;  %1368 = vst.msk [vmem:[%s1996_s16 + $0xd0] sm:$0xf] %vm1315_vm1, %v1671_v37  ;;  %v1640_v40 = vpack.c.bf16 %v1016_v38, %v1016_v38  ;;  %v1672_v41 = vpack.c.bf16 %v1048_v39, %v1048_v39 }
 0x155   : > { %v828_v42 = vpop.f32.mrb[44].mxu0  ;;  %v956_v43 = vpop.f32.mrb[44].mxu1 }
 0x156   : > { %1337 = vst.msk [vmem:[%s1996_s16 + $0x54] sm:$0xf] %vm1315_vm1, %v1640_v40  ;;  %1369 = vst.msk [vmem:[%s1996_s16 + $0xd4] sm:$0xf] %vm1315_vm1, %v1672_v41  ;;  %v829_v44 = vadd.f32 %v1986_v10, %v828_v42  ;;  %v957_v45 = vadd.f32 %v1986_v10, %v956_v43  ;;  %v830_v46 = vpop.f32.mrb[45].mxu0  ;;  %v958_v47 = vpop.f32.mrb[45].mxu1 }
 0x157   : > { %v831_v48 = vpop.f32.mrb[46].mxu0  ;;  %v959_v49 = vpop.f32.mrb[46].mxu1 }
 0x158   : > { %v1017_v50 = vmax.f32 %v829_v44, 0.0  ;;  %v1049_v51 = vmax.f32 %v957_v45, 0.0  ;;  %v832_v52 = vadd.f32 %v1986_v10, %v831_v48  ;;  %v960_v53 = vadd.f32 %v1986_v10, %v959_v49  ;;  %v833_v54 = vpop.f32.mrb[47].mxu0  ;;  %v961_v55 = vpop.f32.mrb[47].mxu1 }
 0x15a   : > { %v1641_v56 = vpack.c.bf16 %v1017_v50, %v1017_v50  ;;  %v1673_v57 = vpack.c.bf16 %v1049_v51, %v1049_v51  ;;  %v1018_v58 = vmax.f32 %v832_v52, 0.0  ;;  %v1050_v59 = vmax.f32 %v960_v53, 0.0 }
 0x15c   : > { %1338 = vst.msk [vmem:[%s1996_s16 + $0x58] sm:$0xf] %vm1315_vm1, %v1641_v56  ;;  %1370 = vst.msk [vmem:[%s1996_s16 + $0xd8] sm:$0xf] %vm1315_vm1, %v1673_v57  ;;  %v1642_v60 = vpack.c.bf16 %v1018_v58, %v1018_v58  ;;  %v1674_v61 = vpack.c.bf16 %v1050_v59, %v1050_v59 }
 0x15d   : > { %v836_v62 = vpop.f32.mrb[48].mxu0  ;;  %v964_v63 = vpop.f32.mrb[48].mxu1 }
 0x15e   : > { %1339 = vst.msk [vmem:[%s1996_s16 + $0x5c] sm:$0xf] %vm1315_vm1, %v1642_v60  ;;  %1371 = vst.msk [vmem:[%s1996_s16 + $0xdc] sm:$0xf] %vm1315_vm1, %v1674_v61  ;;  %v837_v0 = vadd.f32 %v1986_v10, %v836_v62  ;;  %v965_v1 = vadd.f32 %v1986_v10, %v964_v63  ;;  %v838_v2 = vpop.f32.mrb[49].mxu0  ;;  %v966_v3 = vpop.f32.mrb[49].mxu1 }
 0x15f   : > { %v839_v4 = vpop.f32.mrb[50].mxu0  ;;  %v967_v5 = vpop.f32.mrb[50].mxu1 }
 0x160   : > { %v1019_v6 = vmax.f32 %v837_v0, 0.0  ;;  %v1051_v7 = vmax.f32 %v965_v1, 0.0  ;;  %v840_v8 = vadd.f32 %v1986_v10, %v839_v4  ;;  %v968_v9 = vadd.f32 %v1986_v10, %v967_v5  ;;  %v841_v11 = vpop.f32.mrb[51].mxu0  ;;  %v969_v12 = vpop.f32.mrb[51].mxu1 }
 0x162   : > { %v1643_v13 = vpack.c.bf16 %v1019_v6, %v1019_v6  ;;  %v1675_v14 = vpack.c.bf16 %v1051_v7, %v1051_v7  ;;  %v1020_v15 = vmax.f32 %v840_v8, 0.0  ;;  %v1052_v16 = vmax.f32 %v968_v9, 0.0 }
 0x164   : > { %1340 = vst.msk [vmem:[%s1996_s16 + $0x60] sm:$0xf] %vm1315_vm1, %v1643_v13  ;;  %1372 = vst.msk [vmem:[%s1996_s16 + $0xe0] sm:$0xf] %vm1315_vm1, %v1675_v14  ;;  %v1644_v17 = vpack.c.bf16 %v1020_v15, %v1020_v15  ;;  %v1676_v18 = vpack.c.bf16 %v1052_v16, %v1052_v16 }
 0x165   : > { %v844_v19 = vpop.f32.mrb[52].mxu0  ;;  %v972_v20 = vpop.f32.mrb[52].mxu1 }
 0x166   : > { %1341 = vst.msk [vmem:[%s1996_s16 + $0x64] sm:$0xf] %vm1315_vm1, %v1644_v17  ;;  %1373 = vst.msk [vmem:[%s1996_s16 + $0xe4] sm:$0xf] %vm1315_vm1, %v1676_v18  ;;  %v845_v21 = vadd.f32 %v1986_v10, %v844_v19  ;;  %v973_v22 = vadd.f32 %v1986_v10, %v972_v20  ;;  %v846_v23 = vpop.f32.mrb[53].mxu0  ;;  %v974_v24 = vpop.f32.mrb[53].mxu1 }
 0x167   : > { %v847_v25 = vpop.f32.mrb[54].mxu0  ;;  %v975_v26 = vpop.f32.mrb[54].mxu1 }
 0x168   : > { %v1021_v27 = vmax.f32 %v845_v21, 0.0  ;;  %v1053_v28 = vmax.f32 %v973_v22, 0.0  ;;  %v848_v29 = vadd.f32 %v1986_v10, %v847_v25  ;;  %v976_v30 = vadd.f32 %v1986_v10, %v975_v26  ;;  %v849_v31 = vpop.f32.mrb[55].mxu0  ;;  %v977_v32 = vpop.f32.mrb[55].mxu1 }
 0x16a   : > { %v1645_v33 = vpack.c.bf16 %v1021_v27, %v1021_v27  ;;  %v1677_v34 = vpack.c.bf16 %v1053_v28, %v1053_v28  ;;  %v1022_v35 = vmax.f32 %v848_v29, 0.0  ;;  %v1054_v36 = vmax.f32 %v976_v30, 0.0 }
 0x16c   : > { %1342 = vst.msk [vmem:[%s1996_s16 + $0x68] sm:$0xf] %vm1315_vm1, %v1645_v33  ;;  %1374 = vst.msk [vmem:[%s1996_s16 + $0xe8] sm:$0xf] %vm1315_vm1, %v1677_v34  ;;  %v1646_v37 = vpack.c.bf16 %v1022_v35, %v1022_v35  ;;  %v1678_v38 = vpack.c.bf16 %v1054_v36, %v1054_v36 }
 0x16d   : > { %v852_v39 = vpop.f32.mrb[56].mxu0  ;;  %v980_v40 = vpop.f32.mrb[56].mxu1 }
 0x16e   : > { %1343 = vst.msk [vmem:[%s1996_s16 + $0x6c] sm:$0xf] %vm1315_vm1, %v1646_v37  ;;  %1375 = vst.msk [vmem:[%s1996_s16 + $0xec] sm:$0xf] %vm1315_vm1, %v1678_v38  ;;  %v853_v41 = vadd.f32 %v1986_v10, %v852_v39  ;;  %v981_v42 = vadd.f32 %v1986_v10, %v980_v40  ;;  %v854_v43 = vpop.f32.mrb[57].mxu0  ;;  %v982_v44 = vpop.f32.mrb[57].mxu1 }
 0x16f   : > { %v855_v45 = vpop.f32.mrb[58].mxu0  ;;  %v983_v46 = vpop.f32.mrb[58].mxu1 }
 0x170   : > { %v1023_v47 = vmax.f32 %v853_v41, 0.0  ;;  %v1055_v48 = vmax.f32 %v981_v42, 0.0  ;;  %v856_v49 = vadd.f32 %v1986_v10, %v855_v45  ;;  %v984_v50 = vadd.f32 %v1986_v10, %v983_v46  ;;  %v857_v51 = vpop.f32.mrb[59].mxu0  ;;  %v985_v52 = vpop.f32.mrb[59].mxu1 }
 0x172   : > { %v1647_v53 = vpack.c.bf16 %v1023_v47, %v1023_v47  ;;  %v1679_v54 = vpack.c.bf16 %v1055_v48, %v1055_v48  ;;  %v1024_v55 = vmax.f32 %v856_v49, 0.0  ;;  %v1056_v56 = vmax.f32 %v984_v50, 0.0 }
 0x174   : > { %1344 = vst.msk [vmem:[%s1996_s16 + $0x70] sm:$0xf] %vm1315_vm1, %v1647_v53  ;;  %1376 = vst.msk [vmem:[%s1996_s16 + $0xf0] sm:$0xf] %vm1315_vm1, %v1679_v54  ;;  %v1648_v57 = vpack.c.bf16 %v1024_v55, %v1024_v55  ;;  %v1680_v58 = vpack.c.bf16 %v1056_v56, %v1056_v56 }
 0x175   : > { %v860_v59 = vpop.f32.mrb[60].mxu0  ;;  %v988_v60 = vpop.f32.mrb[60].mxu1 }
 0x176   : > { %1345 = vst.msk [vmem:[%s1996_s16 + $0x74] sm:$0xf] %vm1315_vm1, %v1648_v57  ;;  %1377 = vst.msk [vmem:[%s1996_s16 + $0xf4] sm:$0xf] %vm1315_vm1, %v1680_v58  ;;  %v861_v61 = vadd.f32 %v1986_v10, %v860_v59  ;;  %v989_v62 = vadd.f32 %v1986_v10, %v988_v60  ;;  %v862_v63 = vpop.f32.mrb[61].mxu0  ;;  %v990_v0 = vpop.f32.mrb[61].mxu1 }
 0x177   : > { %v863_v1 = vpop.f32.mrb[62].mxu0  ;;  %v991_v2 = vpop.f32.mrb[62].mxu1 }
 0x178   : > { %v1025_v3 = vmax.f32 %v861_v61, 0.0  ;;  %v1057_v4 = vmax.f32 %v989_v62, 0.0  ;;  %v864_v5 = vadd.f32 %v1986_v10, %v863_v1  ;;  %v992_v6 = vadd.f32 %v1986_v10, %v991_v2  ;;  %v865_v7 = vpop.f32.mrb[63].mxu0  ;;  %v993_v8 = vpop.f32.mrb[63].mxu1 }
 0x17a   : > { %v1649_v9 = vpack.c.bf16 %v1025_v3, %v1025_v3  ;;  %v1681_v11 = vpack.c.bf16 %v1057_v4, %v1057_v4  ;;  %v1026_v12 = vmax.f32 %v864_v5, 0.0  ;;  %v1058_v13 = vmax.f32 %v992_v6, 0.0 }
 0x17c   : > { %1346 = vst.msk [vmem:[%s1996_s16 + $0x78] sm:$0xf] %vm1315_vm1, %v1649_v9  ;;  %1378 = vst.msk [vmem:[%s1996_s16 + $0xf8] sm:$0xf] %vm1315_vm1, %v1681_v11  ;;  %v1650_v14 = vpack.c.bf16 %v1026_v12, %v1026_v12  ;;  %v1682_v15 = vpack.c.bf16 %v1058_v13, %v1058_v13 }
 0x17e   : > { %1347 = vst.msk [vmem:[%s1996_s16 + $0x7c] sm:$0xf] %vm1315_vm1, %v1650_v14  ;;  %1379 = vst.msk [vmem:[%s1996_s16 + $0xfc] sm:$0xf] %vm1315_vm1, %v1682_v15 }
 0x17f PF: > { %s13_s12 = sadd.s32 1, %s1821_s12  }
 0x180   : > { %p10_p4 = scmp.ge.s32.totalorder %s13_s12, 4  }
 0x182   :  { %12 = sbr.rel (!%p10_p4) target bundleno = 1 (0x1), region = 62 }

// kernel: rot_invar_siamese_forward.17
= control target key start
LH: loop header
LB: loop body
LE: loop exit
PB: predicated region body
PF: predicated region fallthrough
CT: control target
= control target key end

     0   :  { %s1165_s12 = smov 0   ;;  %s1454_s0 = inlined_call_operand.vmem [shape: bf16[1024,8], index: 0, kind: input, shape index: {}]   ;;  %s1455_s1 = inlined_call_operand.vmem [shape: bf16[8,4], index: 1, kind: input, shape index: {}]   ;;  %s1456_s2 = inlined_call_operand.vmem [shape: f32[1,4], index: 2, kind: input, shape index: {}]   ;;  %s1457_s3 = inlined_call_operand.vmem [shape: f32[1024,4], index: 3, kind: output, shape index: {}]  }
   0x1 LB: > { %s918_s13 = sadd.s32 4294967295, %s1143_s12   ;;  %p922_p0 = scmp.ge.s32.totalorder %s1143_s12, 1  ;;  %s1143_s12 = sphi %s1165_s12, %s13_s12  }
   0x2   : > { %p138_p1 = scmp.lt.s32.totalorder %s1143_s12, 3 }
   0x4   : > { %p139_p2 = pnand %p922_p0, %p138_p1 }
   0x5   : > { %v239_v0 = vld [vmem:[%s1455_s1] sm:$0xf] (!%p139_p2)  ;;  %vm504_vm0 = vcmask (!%p139_p2), 1043456   ;;  %s923_s16 = sshll.u32 (!%p139_p2), %s918_s13, 6  ;;  %vm407_vm1 = vcmask (!%p139_p2), 64512   ;;  %vm797_vm2 = vcmask (!%p139_p2), 31744  }
   0x6   : > { %142 = sbr.rel (%p139_p2) target bundleno = 293 (0x125), region = 32  ;;  %1095 = vmatprep.subr.msk.bf16.mxu0 (!%p139_p2), %vm504_vm0, %v239_v0  ;;  %1096 = vmatprep.subr.msk.bf16.mxu1 (!%p139_p2), %vm504_vm0, %v239_v0  ;;  %v506_v1 = vsel (!%p139_p2), %vm504_vm0, %v239_v0, 0  ;;  %p163_p3 = scmp.lt.s32.totalorder (!%p139_p2), %s923_s16, 127  ;;  %v1252_v34 = vld [vmem:[%s1456_s2] ss:$0 sm:$0xff] (!%p139_p2) }
   0x7   : > { %1028 = vmatpush3.bf16.msra.mxu0 (!%p139_p2), %v506_v1  ;;  %1094 = vmatpush3.bf16.msra.mxu1 (!%p139_p2), %v506_v1 }
   0xd   : > { %s1459_s16 = smov (!%p163_p3, %s923_s16), 127 }
   0xe   : > { %s924_s17 = sshll.u32 %s1459_s16, 2  ;;  %s926_s21 = sshll.u32 %s1459_s16, 3 }
   0xf   : > { %s1182_s20 = scalar_lea.vmem %s1454_s0, %s924_s17  ;;  %s1257_s26 = scalar_lea.vmem %s1457_s3, %s926_s21 }
  0x10   : > { %v1105_v2 = vld [vmem:[%s1182_s20] sm:$0xff]   ;;  %v1107_v4 = vld [vmem:[%s1182_s20 + $0x8] sm:$0xff]   ;;  %v1109_v6 = vld [vmem:[%s1182_s20 + $0x10] sm:$0xff]  }
  0x11   : > { %v1106_v3 = vld [vmem:[%s1182_s20 + $0x80] sm:$0xff]   ;;  %1029 = vmatprep.mubr.msk.bf16.mxu0 %vm407_vm1, %v1105_v2  ;;  %v1108_v5 = vld [vmem:[%s1182_s20 + $0x88] sm:$0xff]   ;;  %v1110_v7 = vld [vmem:[%s1182_s20 + $0x90] sm:$0xff]  }
  0x12   : > { %1061 = vmatprep.mubr.msk.bf16.mxu1 %vm407_vm1, %v1106_v3  ;;  %1030 = vmatmul.mubr.msk.bf16.vlgmr.msra.gmra.mrb[0].mxu0 %vm407_vm1, %v1107_v4  ;;  %v1111_v8 = vld [vmem:[%s1182_s20 + $0x18] sm:$0xff]   ;;  %v1113_v10 = vld [vmem:[%s1182_s20 + $0x20] sm:$0xff]   ;;  %v1115_v12 = vld [vmem:[%s1182_s20 + $0x28] sm:$0xff]  }
  0x13   : > { %1062 = vmatmul.mubr.msk.bf16.vlgmr.msra.gmra.mrb[0].mxu1 %vm407_vm1, %v1108_v5  ;;  %1033 = vmatprep.mubr.msk.bf16.mxu0 %vm407_vm1, %v1109_v6  ;;  %v1112_v9 = vld [vmem:[%s1182_s20 + $0x98] sm:$0xff]   ;;  %v1114_v11 = vld [vmem:[%s1182_s20 + $0xa0] sm:$0xff]   ;;  %v1116_v13 = vld [vmem:[%s1182_s20 + $0xa8] sm:$0xff]  }
  0x14   : > { %1065 = vmatprep.mubr.msk.bf16.mxu1 %vm407_vm1, %v1110_v7  ;;  %v1117_v14 = vld [vmem:[%s1182_s20 + $0x30] sm:$0xff]   ;;  %v1119_v16 = vld [vmem:[%s1182_s20 + $0x38] sm:$0xff]   ;;  %v1121_v18 = vld [vmem:[%s1182_s20 + $0x40] sm:$0xff]  }
  0x15   : > { %v1118_v15 = vld [vmem:[%s1182_s20 + $0xb0] sm:$0xff]   ;;  %v1120_v17 = vld [vmem:[%s1182_s20 + $0xb8] sm:$0xff]   ;;  %v1122_v19 = vld [vmem:[%s1182_s20 + $0xc0] sm:$0xff]  }
  0x16   : > { %v1123_v20 = vld [vmem:[%s1182_s20 + $0x48] sm:$0xff]   ;;  %v1125_v22 = vld [vmem:[%s1182_s20 + $0x50] sm:$0xff]   ;;  %v1127_v24 = vld [vmem:[%s1182_s20 + $0x58] sm:$0xff]  }
  0x17   : > { %v1124_v21 = vld [vmem:[%s1182_s20 + $0xc8] sm:$0xff]   ;;  %v1126_v23 = vld [vmem:[%s1182_s20 + $0xd0] sm:$0xff]   ;;  %v1128_v25 = vld [vmem:[%s1182_s20 + $0xd8] sm:$0xff]  }
  0x18   : > { %v1129_v26 = vld [vmem:[%s1182_s20 + $0x60] sm:$0xff]   ;;  %v1131_v28 = vld [vmem:[%s1182_s20 + $0x68] sm:$0xff]   ;;  %v1133_v30 = vld [vmem:[%s1182_s20 + $0x70] sm:$0xff]  }
  0x19   : > { %v1130_v27 = vld [vmem:[%s1182_s20 + $0xe0] sm:$0xff]   ;;  %v1132_v29 = vld [vmem:[%s1182_s20 + $0xe8] sm:$0xff]   ;;  %v1134_v31 = vld [vmem:[%s1182_s20 + $0xf0] sm:$0xff]  }
  0x1a   : > { %1034 = vmatmul.mubr.msk.bf16.gmra.mrb[4].mxu0 %vm407_vm1, %v1111_v8  ;;  %v1135_v32 = vld [vmem:[%s1182_s20 + $0x78] sm:$0xff]  }
  0x1b   : > { %1066 = vmatmul.mubr.msk.bf16.gmra.mrb[4].mxu1 %vm407_vm1, %v1112_v9  ;;  %1037 = vmatprep.mubr.msk.bf16.mxu0 %vm407_vm1, %v1113_v10  ;;  %v1136_v33 = vld [vmem:[%s1182_s20 + $0xf8] sm:$0xff]  }
  0x1c   : > { %1069 = vmatprep.mubr.msk.bf16.mxu1 %vm407_vm1, %v1114_v11 }
  0x22   : > { %1038 = vmatmul.mubr.msk.bf16.gmra.mrb[8].mxu0 %vm407_vm1, %v1115_v12 }
  0x23   : > { %1070 = vmatmul.mubr.msk.bf16.gmra.mrb[8].mxu1 %vm407_vm1, %v1116_v13  ;;  %1041 = vmatprep.mubr.msk.bf16.mxu0 %vm407_vm1, %v1117_v14 }
  0x24   : > { %1073 = vmatprep.mubr.msk.bf16.mxu1 %vm407_vm1, %v1118_v15 }
  0x2a   : > { %1042 = vmatmul.mubr.msk.bf16.gmra.mrb[12].mxu0 %vm407_vm1, %v1119_v16 }
  0x2b   : > { %1074 = vmatmul.mubr.msk.bf16.gmra.mrb[12].mxu1 %vm407_vm1, %v1120_v17  ;;  %1045 = vmatprep.mubr.msk.bf16.mxu0 %vm407_vm1, %v1121_v18 }
  0x2c   : > { %1077 = vmatprep.mubr.msk.bf16.mxu1 %vm407_vm1, %v1122_v19 }
  0x32   : > { %1046 = vmatmul.mubr.msk.bf16.gmra.mrb[16].mxu0 %vm407_vm1, %v1123_v20 }
  0x33   : > { %1078 = vmatmul.mubr.msk.bf16.gmra.mrb[16].mxu1 %vm407_vm1, %v1124_v21  ;;  %1049 = vmatprep.mubr.msk.bf16.mxu0 %vm407_vm1, %v1125_v22 }
  0x34   : > { %1081 = vmatprep.mubr.msk.bf16.mxu1 %vm407_vm1, %v1126_v23 }
  0x3a   : > { %1050 = vmatmul.mubr.msk.bf16.gmra.mrb[20].mxu0 %vm407_vm1, %v1127_v24 }
  0x3b   : > { %1082 = vmatmul.mubr.msk.bf16.gmra.mrb[20].mxu1 %vm407_vm1, %v1128_v25  ;;  %1053 = vmatprep.mubr.msk.bf16.mxu0 %vm407_vm1, %v1129_v26 }
  0x3c   : > { %1085 = vmatprep.mubr.msk.bf16.mxu1 %vm407_vm1, %v1130_v27 }
  0x42   : > { %1054 = vmatmul.mubr.msk.bf16.gmra.mrb[24].mxu0 %vm407_vm1, %v1131_v28 }
  0x43   : > { %1086 = vmatmul.mubr.msk.bf16.gmra.mrb[24].mxu1 %vm407_vm1, %v1132_v29  ;;  %1057 = vmatprep.mubr.msk.bf16.mxu0 %vm407_vm1, %v1133_v30 }
  0x44   : > { %1089 = vmatprep.mubr.msk.bf16.mxu1 %vm407_vm1, %v1134_v31 }
  0x4a   : > { %1058 = vmatmul.mubr.msk.bf16.gmra.mrb[28].mxu0 %vm407_vm1, %v1135_v32 }
  0x4b   : > { %1090 = vmatmul.mubr.msk.bf16.gmra.mrb[28].mxu1 %vm407_vm1, %v1136_v33 }
  0xe5   : > { %v1031_v35 = vpop.f32.mrb[0].mxu0 }
  0xe6   : > { %v551_v36 = vadd.f32 %v1031_v35, %v1252_v34  ;;  %v1063_v37 = vpop.f32.mrb[0].mxu1  ;;  %v542_v38 = vpop.f32.mrb[1].mxu0 }
  0xe7   : > { %v679_v39 = vadd.f32 %v1063_v37, %v1252_v34  ;;  %v543_v40 = vadd.f32 %v1252_v34, %v542_v38  ;;  %v670_v41 = vpop.f32.mrb[1].mxu1  ;;  %v1032_v42 = vpop.f32.mrb[2].mxu0 }
  0xe8   : > { %800 = vst.msk [vmem:[%s1257_s26 + $0x10] sm:$0xff] %vm797_vm2, %v551_v36  ;;  %v671_v43 = vadd.f32 %v1252_v34, %v670_v41  ;;  %v554_v44 = vadd.f32 %v1032_v42, %v1252_v34  ;;  %v1064_v45 = vpop.f32.mrb[2].mxu1  ;;  %v545_v46 = vpop.f32.mrb[3].mxu0 }
  0xe9   : > { %832 = vst.msk [vmem:[%s1257_s26 + $0x110] sm:$0xff] %vm797_vm2, %v679_v39  ;;  %798 = vst.msk [vmem:[%s1257_s26] sm:$0xff] %vm797_vm2, %v543_v40  ;;  %v682_v47 = vadd.f32 %v1064_v45, %v1252_v34  ;;  %v546_v48 = vadd.f32 %v1252_v34, %v545_v46  ;;  %v673_v49 = vpop.f32.mrb[3].mxu1 }
  0xea   : > { %830 = vst.msk [vmem:[%s1257_s26 + $0x100] sm:$0xff] %vm797_vm2, %v671_v43  ;;  %801 = vst.msk [vmem:[%s1257_s26 + $0x18] sm:$0xff] %vm797_vm2, %v554_v44  ;;  %v674_v50 = vadd.f32 %v1252_v34, %v673_v49 }
  0xeb   : > { %833 = vst.msk [vmem:[%s1257_s26 + $0x118] sm:$0xff] %vm797_vm2, %v682_v47  ;;  %799 = vst.msk [vmem:[%s1257_s26 + $0x8] sm:$0xff] %vm797_vm2, %v546_v48 }
  0xec   : > { %831 = vst.msk [vmem:[%s1257_s26 + $0x108] sm:$0xff] %vm797_vm2, %v674_v50 }
  0xed   : > { %v1035_v51 = vpop.f32.mrb[4].mxu0 }
  0xee   : > { %v567_v52 = vadd.f32 %v1035_v51, %v1252_v34  ;;  %v1067_v53 = vpop.f32.mrb[4].mxu1  ;;  %v558_v54 = vpop.f32.mrb[5].mxu0 }
  0xef   : > { %v695_v55 = vadd.f32 %v1067_v53, %v1252_v34  ;;  %v559_v56 = vadd.f32 %v1252_v34, %v558_v54  ;;  %v686_v57 = vpop.f32.mrb[5].mxu1  ;;  %v1036_v58 = vpop.f32.mrb[6].mxu0 }
  0xf0   : > { %804 = vst.msk [vmem:[%s1257_s26 + $0x30] sm:$0xff] %vm797_vm2, %v567_v52  ;;  %v687_v59 = vadd.f32 %v1252_v34, %v686_v57  ;;  %v570_v60 = vadd.f32 %v1036_v58, %v1252_v34  ;;  %v1068_v61 = vpop.f32.mrb[6].mxu1  ;;  %v561_v62 = vpop.f32.mrb[7].mxu0 }
  0xf1   : > { %836 = vst.msk [vmem:[%s1257_s26 + $0x130] sm:$0xff] %vm797_vm2, %v695_v55  ;;  %802 = vst.msk [vmem:[%s1257_s26 + $0x20] sm:$0xff] %vm797_vm2, %v559_v56  ;;  %v698_v63 = vadd.f32 %v1068_v61, %v1252_v34  ;;  %v562_v0 = vadd.f32 %v1252_v34, %v561_v62  ;;  %v689_v1 = vpop.f32.mrb[7].mxu1 }
  0xf2   : > { %834 = vst.msk [vmem:[%s1257_s26 + $0x120] sm:$0xff] %vm797_vm2, %v687_v59  ;;  %805 = vst.msk [vmem:[%s1257_s26 + $0x38] sm:$0xff] %vm797_vm2, %v570_v60  ;;  %v690_v2 = vadd.f32 %v1252_v34, %v689_v1 }
  0xf3   : > { %837 = vst.msk [vmem:[%s1257_s26 + $0x138] sm:$0xff] %vm797_vm2, %v698_v63  ;;  %803 = vst.msk [vmem:[%s1257_s26 + $0x28] sm:$0xff] %vm797_vm2, %v562_v0 }
  0xf4   : > { %835 = vst.msk [vmem:[%s1257_s26 + $0x128] sm:$0xff] %vm797_vm2, %v690_v2 }
  0xf5   : > { %v1039_v3 = vpop.f32.mrb[8].mxu0 }
  0xf6   : > { %v583_v4 = vadd.f32 %v1039_v3, %v1252_v34  ;;  %v1071_v5 = vpop.f32.mrb[8].mxu1  ;;  %v574_v6 = vpop.f32.mrb[9].mxu0 }
  0xf7   : > { %v711_v7 = vadd.f32 %v1071_v5, %v1252_v34  ;;  %v575_v8 = vadd.f32 %v1252_v34, %v574_v6  ;;  %v702_v9 = vpop.f32.mrb[9].mxu1  ;;  %v1040_v10 = vpop.f32.mrb[10].mxu0 }
  0xf8   : > { %808 = vst.msk [vmem:[%s1257_s26 + $0x50] sm:$0xff] %vm797_vm2, %v583_v4  ;;  %v703_v11 = vadd.f32 %v1252_v34, %v702_v9  ;;  %v586_v12 = vadd.f32 %v1040_v10, %v1252_v34  ;;  %v1072_v13 = vpop.f32.mrb[10].mxu1  ;;  %v577_v14 = vpop.f32.mrb[11].mxu0 }
  0xf9   : > { %840 = vst.msk [vmem:[%s1257_s26 + $0x150] sm:$0xff] %vm797_vm2, %v711_v7  ;;  %806 = vst.msk [vmem:[%s1257_s26 + $0x40] sm:$0xff] %vm797_vm2, %v575_v8  ;;  %v714_v15 = vadd.f32 %v1072_v13, %v1252_v34  ;;  %v578_v16 = vadd.f32 %v1252_v34, %v577_v14  ;;  %v705_v17 = vpop.f32.mrb[11].mxu1 }
  0xfa   : > { %838 = vst.msk [vmem:[%s1257_s26 + $0x140] sm:$0xff] %vm797_vm2, %v703_v11  ;;  %809 = vst.msk [vmem:[%s1257_s26 + $0x58] sm:$0xff] %vm797_vm2, %v586_v12  ;;  %v706_v18 = vadd.f32 %v1252_v34, %v705_v17 }
  0xfb   : > { %841 = vst.msk [vmem:[%s1257_s26 + $0x158] sm:$0xff] %vm797_vm2, %v714_v15  ;;  %807 = vst.msk [vmem:[%s1257_s26 + $0x48] sm:$0xff] %vm797_vm2, %v578_v16 }
  0xfc   : > { %839 = vst.msk [vmem:[%s1257_s26 + $0x148] sm:$0xff] %vm797_vm2, %v706_v18 }
  0xfd   : > { %v1043_v19 = vpop.f32.mrb[12].mxu0 }
  0xfe   : > { %v599_v20 = vadd.f32 %v1043_v19, %v1252_v34  ;;  %v1075_v21 = vpop.f32.mrb[12].mxu1  ;;  %v590_v22 = vpop.f32.mrb[13].mxu0 }
  0xff   : > { %v727_v23 = vadd.f32 %v1075_v21, %v1252_v34  ;;  %v591_v24 = vadd.f32 %v1252_v34, %v590_v22  ;;  %v718_v25 = vpop.f32.mrb[13].mxu1  ;;  %v1044_v26 = vpop.f32.mrb[14].mxu0 }
 0x100   : > { %812 = vst.msk [vmem:[%s1257_s26 + $0x70] sm:$0xff] %vm797_vm2, %v599_v20  ;;  %v719_v27 = vadd.f32 %v1252_v34, %v718_v25  ;;  %v602_v28 = vadd.f32 %v1044_v26, %v1252_v34  ;;  %v1076_v29 = vpop.f32.mrb[14].mxu1  ;;  %v593_v30 = vpop.f32.mrb[15].mxu0 }
 0x101   : > { %844 = vst.msk [vmem:[%s1257_s26 + $0x170] sm:$0xff] %vm797_vm2, %v727_v23  ;;  %810 = vst.msk [vmem:[%s1257_s26 + $0x60] sm:$0xff] %vm797_vm2, %v591_v24  ;;  %v730_v31 = vadd.f32 %v1076_v29, %v1252_v34  ;;  %v594_v32 = vadd.f32 %v1252_v34, %v593_v30  ;;  %v721_v33 = vpop.f32.mrb[15].mxu1 }
 0x102   : > { %842 = vst.msk [vmem:[%s1257_s26 + $0x160] sm:$0xff] %vm797_vm2, %v719_v27  ;;  %813 = vst.msk [vmem:[%s1257_s26 + $0x78] sm:$0xff] %vm797_vm2, %v602_v28  ;;  %v722_v35 = vadd.f32 %v1252_v34, %v721_v33 }
 0x103   : > { %845 = vst.msk [vmem:[%s1257_s26 + $0x178] sm:$0xff] %vm797_vm2, %v730_v31  ;;  %811 = vst.msk [vmem:[%s1257_s26 + $0x68] sm:$0xff] %vm797_vm2, %v594_v32 }
 0x104   : > { %843 = vst.msk [vmem:[%s1257_s26 + $0x168] sm:$0xff] %vm797_vm2, %v722_v35 }
 0x105   : > { %v1047_v36 = vpop.f32.mrb[16].mxu0 }
 0x106   : > { %v615_v37 = vadd.f32 %v1047_v36, %v1252_v34  ;;  %v1079_v38 = vpop.f32.mrb[16].mxu1  ;;  %v606_v39 = vpop.f32.mrb[17].mxu0 }
 0x107   : > { %v743_v40 = vadd.f32 %v1079_v38, %v1252_v34  ;;  %v607_v41 = vadd.f32 %v1252_v34, %v606_v39  ;;  %v734_v42 = vpop.f32.mrb[17].mxu1  ;;  %v1048_v43 = vpop.f32.mrb[18].mxu0 }
 0x108   : > { %816 = vst.msk [vmem:[%s1257_s26 + $0x90] sm:$0xff] %vm797_vm2, %v615_v37  ;;  %v735_v44 = vadd.f32 %v1252_v34, %v734_v42  ;;  %v618_v45 = vadd.f32 %v1048_v43, %v1252_v34  ;;  %v1080_v46 = vpop.f32.mrb[18].mxu1  ;;  %v609_v47 = vpop.f32.mrb[19].mxu0 }
 0x109   : > { %848 = vst.msk [vmem:[%s1257_s26 + $0x190] sm:$0xff] %vm797_vm2, %v743_v40  ;;  %814 = vst.msk [vmem:[%s1257_s26 + $0x80] sm:$0xff] %vm797_vm2, %v607_v41  ;;  %v746_v48 = vadd.f32 %v1080_v46, %v1252_v34  ;;  %v610_v49 = vadd.f32 %v1252_v34, %v609_v47  ;;  %v737_v50 = vpop.f32.mrb[19].mxu1 }
 0x10a   : > { %846 = vst.msk [vmem:[%s1257_s26 + $0x180] sm:$0xff] %vm797_vm2, %v735_v44  ;;  %817 = vst.msk [vmem:[%s1257_s26 + $0x98] sm:$0xff] %vm797_vm2, %v618_v45  ;;  %v738_v51 = vadd.f32 %v1252_v34, %v737_v50 }
 0x10b   : > { %849 = vst.msk [vmem:[%s1257_s26 + $0x198] sm:$0xff] %vm797_vm2, %v746_v48  ;;  %815 = vst.msk [vmem:[%s1257_s26 + $0x88] sm:$0xff] %vm797_vm2, %v610_v49 }
 0x10c   : > { %847 = vst.msk [vmem:[%s1257_s26 + $0x188] sm:$0xff] %vm797_vm2, %v738_v51 }
 0x10d   : > { %v1051_v52 = vpop.f32.mrb[20].mxu0 }
 0x10e   : > { %v631_v53 = vadd.f32 %v1051_v52, %v1252_v34  ;;  %v1083_v54 = vpop.f32.mrb[20].mxu1  ;;  %v622_v55 = vpop.f32.mrb[21].mxu0 }
 0x10f   : > { %v759_v56 = vadd.f32 %v1083_v54, %v1252_v34  ;;  %v623_v57 = vadd.f32 %v1252_v34, %v622_v55  ;;  %v750_v58 = vpop.f32.mrb[21].mxu1  ;;  %v1052_v59 = vpop.f32.mrb[22].mxu0 }
 0x110   : > { %820 = vst.msk [vmem:[%s1257_s26 + $0xb0] sm:$0xff] %vm797_vm2, %v631_v53  ;;  %v751_v60 = vadd.f32 %v1252_v34, %v750_v58  ;;  %v634_v61 = vadd.f32 %v1052_v59, %v1252_v34  ;;  %v1084_v62 = vpop.f32.mrb[22].mxu1  ;;  %v625_v63 = vpop.f32.mrb[23].mxu0 }
 0x111   : > { %852 = vst.msk [vmem:[%s1257_s26 + $0x1b0] sm:$0xff] %vm797_vm2, %v759_v56  ;;  %818 = vst.msk [vmem:[%s1257_s26 + $0xa0] sm:$0xff] %vm797_vm2, %v623_v57  ;;  %v762_v0 = vadd.f32 %v1084_v62, %v1252_v34  ;;  %v626_v1 = vadd.f32 %v1252_v34, %v625_v63  ;;  %v753_v2 = vpop.f32.mrb[23].mxu1 }
 0x112   : > { %850 = vst.msk [vmem:[%s1257_s26 + $0x1a0] sm:$0xff] %vm797_vm2, %v751_v60  ;;  %821 = vst.msk [vmem:[%s1257_s26 + $0xb8] sm:$0xff] %vm797_vm2, %v634_v61  ;;  %v754_v3 = vadd.f32 %v1252_v34, %v753_v2 }
 0x113   : > { %853 = vst.msk [vmem:[%s1257_s26 + $0x1b8] sm:$0xff] %vm797_vm2, %v762_v0  ;;  %819 = vst.msk [vmem:[%s1257_s26 + $0xa8] sm:$0xff] %vm797_vm2, %v626_v1 }
 0x114   : > { %851 = vst.msk [vmem:[%s1257_s26 + $0x1a8] sm:$0xff] %vm797_vm2, %v754_v3 }
 0x115   : > { %v1055_v4 = vpop.f32.mrb[24].mxu0 }
 0x116   : > { %v647_v5 = vadd.f32 %v1055_v4, %v1252_v34  ;;  %v1087_v6 = vpop.f32.mrb[24].mxu1  ;;  %v638_v7 = vpop.f32.mrb[25].mxu0 }
 0x117   : > { %v775_v8 = vadd.f32 %v1087_v6, %v1252_v34  ;;  %v639_v9 = vadd.f32 %v1252_v34, %v638_v7  ;;  %v766_v10 = vpop.f32.mrb[25].mxu1  ;;  %v1056_v11 = vpop.f32.mrb[26].mxu0 }
 0x118   : > { %824 = vst.msk [vmem:[%s1257_s26 + $0xd0] sm:$0xff] %vm797_vm2, %v647_v5  ;;  %v767_v12 = vadd.f32 %v1252_v34, %v766_v10  ;;  %v650_v13 = vadd.f32 %v1056_v11, %v1252_v34  ;;  %v1088_v14 = vpop.f32.mrb[26].mxu1  ;;  %v641_v15 = vpop.f32.mrb[27].mxu0 }
 0x119   : > { %856 = vst.msk [vmem:[%s1257_s26 + $0x1d0] sm:$0xff] %vm797_vm2, %v775_v8  ;;  %822 = vst.msk [vmem:[%s1257_s26 + $0xc0] sm:$0xff] %vm797_vm2, %v639_v9  ;;  %v778_v16 = vadd.f32 %v1088_v14, %v1252_v34  ;;  %v642_v17 = vadd.f32 %v1252_v34, %v641_v15  ;;  %v769_v18 = vpop.f32.mrb[27].mxu1 }
 0x11a   : > { %854 = vst.msk [vmem:[%s1257_s26 + $0x1c0] sm:$0xff] %vm797_vm2, %v767_v12  ;;  %825 = vst.msk [vmem:[%s1257_s26 + $0xd8] sm:$0xff] %vm797_vm2, %v650_v13  ;;  %v770_v19 = vadd.f32 %v1252_v34, %v769_v18 }
 0x11b   : > { %857 = vst.msk [vmem:[%s1257_s26 + $0x1d8] sm:$0xff] %vm797_vm2, %v778_v16  ;;  %823 = vst.msk [vmem:[%s1257_s26 + $0xc8] sm:$0xff] %vm797_vm2, %v642_v17 }
 0x11c   : > { %855 = vst.msk [vmem:[%s1257_s26 + $0x1c8] sm:$0xff] %vm797_vm2, %v770_v19 }
 0x11d   : > { %v1059_v20 = vpop.f32.mrb[28].mxu0 }
 0x11e   : > { %v663_v21 = vadd.f32 %v1059_v20, %v1252_v34  ;;  %v1091_v22 = vpop.f32.mrb[28].mxu1  ;;  %v654_v23 = vpop.f32.mrb[29].mxu0 }
 0x11f   : > { %v791_v24 = vadd.f32 %v1091_v22, %v1252_v34  ;;  %v655_v25 = vadd.f32 %v1252_v34, %v654_v23  ;;  %v782_v26 = vpop.f32.mrb[29].mxu1  ;;  %v1060_v27 = vpop.f32.mrb[30].mxu0 }
 0x120   : > { %828 = vst.msk [vmem:[%s1257_s26 + $0xf0] sm:$0xff] %vm797_vm2, %v663_v21  ;;  %v783_v28 = vadd.f32 %v1252_v34, %v782_v26  ;;  %v666_v29 = vadd.f32 %v1060_v27, %v1252_v34  ;;  %v1092_v30 = vpop.f32.mrb[30].mxu1  ;;  %v657_v31 = vpop.f32.mrb[31].mxu0 }
 0x121   : > { %860 = vst.msk [vmem:[%s1257_s26 + $0x1f0] sm:$0xff] %vm797_vm2, %v791_v24  ;;  %826 = vst.msk [vmem:[%s1257_s26 + $0xe0] sm:$0xff] %vm797_vm2, %v655_v25  ;;  %v794_v32 = vadd.f32 %v1092_v30, %v1252_v34  ;;  %v658_v33 = vadd.f32 %v1252_v34, %v657_v31  ;;  %v785_v35 = vpop.f32.mrb[31].mxu1 }
 0x122   : > { %858 = vst.msk [vmem:[%s1257_s26 + $0x1e0] sm:$0xff] %vm797_vm2, %v783_v28  ;;  %829 = vst.msk [vmem:[%s1257_s26 + $0xf8] sm:$0xff] %vm797_vm2, %v666_v29  ;;  %v786_v36 = vadd.f32 %v1252_v34, %v785_v35 }
 0x123   : > { %861 = vst.msk [vmem:[%s1257_s26 + $0x1f8] sm:$0xff] %vm797_vm2, %v794_v32  ;;  %827 = vst.msk [vmem:[%s1257_s26 + $0xe8] sm:$0xff] %vm797_vm2, %v658_v33 }
 0x124   : > { %859 = vst.msk [vmem:[%s1257_s26 + $0x1e8] sm:$0xff] %vm797_vm2, %v786_v36 }
 0x125 PF: > { %s13_s12 = sadd.s32 1, %s1143_s12  }
 0x126   : > { %p10_p4 = scmp.ge.s32.totalorder %s13_s12, 4  }
 0x128   :  { %12 = sbr.rel (!%p10_p4) target bundleno = 1 (0x1), region = 62 }

// kernel: rot_invar_siamese_forward.13
= control target key start
LH: loop header
LB: loop body
LE: loop exit
PB: predicated region body
PF: predicated region fallthrough
CT: control target
= control target key end

     0   :  { %vm24_vm0 = vcmask 254976   ;;  %vm35_vm2 = vcmask 1024   ;;  %s101_s0 = inlined_call_operand.vmem [shape: f32[2,32], index: 0, kind: input, shape index: {}]   ;;  %s102_s1 = inlined_call_operand.vmem [shape: f32[2,32], index: 1, kind: input, shape index: {}]   ;;  %s103_s2 = inlined_call_operand.vmem [shape: f32[2,32], index: 2, kind: input, shape index: {}]   ;;  %s104_s3 = inlined_call_operand.vmem [shape: f32[2,1], index: 3, kind: output, shape index: {0}]   ;;  %s105_s4 = inlined_call_operand.vmem [shape: f32[2,1], index: 4, kind: output, shape index: {1}]  }
   0x1   :  { %v16_v0 = vld [vmem:[%s101_s0] sm:$0x3] }
   0x2   :  { %v17_v1 = vld [vmem:[%s102_s1] sm:$0x3] }
   0x3   :  { %v20_v2 = vld [vmem:[%s103_s2] sm:$0x3]  ;;  %v18_v3 = vsub.f32 %v16_v0, %v17_v1 }
   0x4   :  { %v21_v4 = vsub.f32 %v16_v0, %v20_v2 }
   0x5   :  { %v19_v5 = vadd.f32 1e-06, %v18_v3 }
   0x6   :  { %v22_v6 = vadd.f32 1e-06, %v21_v4 }
   0x7   :  { %v23_v7 = vmul.f32 %v19_v5, %v19_v5 }
   0x8   :  { %v37_v8 = vmul.f32 %v22_v6, %v22_v6 }
   0x9   :  { %v25_v9 = vsel %vm24_vm0, %v23_v7, 0.0 }
   0xa   :  { %26 = vadd.xlane.f32.xlu0 %v25_v9  ;;  %v38_v10 = vsel %vm24_vm0, %v37_v8, 0.0 }
   0xe   :  { %39 = vadd.xlane.f32.xlu0 %v38_v10 }
  0x97   :  { %v27_v11 = vpop.xlane.xlu0 %26 }
  0x98   :  { %57 = vrsqrt.f32 %v27_v11  ;;  %vm30_vm1 = vcmp.eq.f32.partialorder %v27_v11, inf  ;;  %v33_v15 = vand.u32 2147483648, %v27_v11  ;;  %vm32_vm3 = vcmp.eq.f32.partialorder %v27_v11, 0.0 }
  0x9b   :  { %v40_v12 = vpop.xlane.xlu0 %39 }
  0x9c   :  { %59 = vrsqrt.f32 %v40_v12  ;;  %vm43_vm4 = vcmp.eq.f32.partialorder %v40_v12, inf  ;;  %v46_v20 = vand.u32 2147483648, %v40_v12  ;;  %vm45_vm5 = vcmp.eq.f32.partialorder %v40_v12, 0.0 }
  0xa2   :  { %v58_v13 = vpop.eup %57 }
  0xa3   :  { %v29_v14 = vmul.f32 %v58_v13, %v27_v11 }
  0xa5   :  { %v31_v16 = vsel %vm30_vm1, %v27_v11, %v29_v14 }
  0xa6   :  { %v60_v17 = vpop.eup %59  ;;  %v34_v18 = vsel %vm32_vm3, %v33_v15, %v31_v16 }
  0xa7   :  { %36 = vst.msk [vmem:[%s104_s3] sm:$0x3] %vm35_vm2, %v34_v18  ;;  %v42_v19 = vmul.f32 %v60_v17, %v40_v12 }
  0xa9   :  { %v44_v21 = vsel %vm43_vm4, %v40_v12, %v42_v19 }
  0xaa   :  { %v47_v22 = vsel %vm45_vm5, %v46_v20, %v44_v21 }
  0xab   :  { %48 = vst.msk [vmem:[%s105_s4] sm:$0x3] %vm35_vm2, %v47_v22 }

</bundles_post_ra>
